<compile_context>
chip_gen: v6e
topology: v6e:2x2x1
jax: 0.10.0
libtpu: 0.0.40
codegen_flags: <defaults>
</compile_context>

<pallas_src>
import functools

import jax
import jax.numpy as jnp
import numpy as np
from jax.experimental import pallas as pl
from jax.experimental.pallas import tpu as pltpu

EPS = 1e-5      # BatchNorm eps (PyTorch default)
ALPHA = 0.2     # LeakyReLU negative slope (layers.LinearCombo / Deconv1DCombo default)

_SHIFT_MODE = None


def _probe_roll_mode():
    """Pin down pltpu.roll's shift convention with a tiny one-time device probe.

    Returns "roll_np"  if pltpu.roll(x, s, 0)[i] == x[i - s]  (np.roll convention),
            "roll_rev" if pltpu.roll(x, s, 0)[i] == x[i + s],
            "concat"   if roll is unusable (fallback: aligned 2-piece concat shifts).
    """
    try:
        x_np = np.arange(24 * 128, dtype=np.float32).reshape(24, 128)

        def k(x_ref, o_ref):
            o_ref[...] = pltpu.roll(x_ref[...], 8, axis=0)

        vmem = pl.BlockSpec(memory_space=pltpu.MemorySpace.VMEM)
        y = pl.pallas_call(
            k, out_shape=jax.ShapeDtypeStruct((24, 128), jnp.float32),
            in_specs=[vmem], out_specs=vmem)(jnp.asarray(x_np))
        v = float(jax.device_get(y)[8, 0])
        if v == float(x_np[0, 0]):
            return "roll_np"
        if v == float(x_np[16, 0]):
            return "roll_rev"
    except Exception:
        pass
    return "concat"


def _get_shift_mode():
    global _SHIFT_MODE
    if _SHIFT_MODE is None:
        _SHIFT_MODE = _probe_roll_mode()
    return _SHIFT_MODE


def _shift(h2, n, wn, direction, mode):
    """Shift the position-major activation (wn, C) by one N-row position block.

    direction=+1: result[j] = h2[j-1] (zero block at j=0) — the "previous position".
    direction=-1: result[j] = h2[j+1] (zero block at j=W-1) — the "next position".
    """
    if mode == "concat":   # fallback: sublane-tile-aligned 2-piece concat (n, wn multiples of 8)
        zeros = jnp.zeros((n, h2.shape[1]), h2.dtype)
        if direction > 0:
            return jnp.concatenate([zeros, h2[:wn - n, :]], axis=0)
        return jnp.concatenate([h2[n:, :], zeros], axis=0)
    amt = n * direction
    if mode == "roll_rev":
        amt = -amt
    rolled = pltpu.roll(h2, amt % wn, axis=0)                     # XLU sublane rotation
    rows = jax.lax.broadcasted_iota(jnp.int32, h2.shape, 0)
    keep = rows >= n if direction > 0 else rows < wn - n
    return jnp.where(keep, rolled, 0.0)


# ---------------------------------------------------------------------------
# Fused forward kernel (built per architecture / batch; Python loops unroll at trace time)
# ---------------------------------------------------------------------------
def _make_fused_kernel(n, in_width, n_dense, n_deconv, shift_mode):
    def kernel(*refs):
        it = iter(refs)
        x_ref = next(it)
        dense_w = [next(it) for _ in range(n_dense)]
        deconv_w = [next(it) for _ in range(n_deconv)]
        vec_ref, whT_ref, bhT_ref, out_ref = next(it), next(it), next(it), next(it)

        def gamma_beta(idx, f):
            return (vec_ref[2 * idx:2 * idx + 1, :f],
                    vec_ref[2 * idx + 1:2 * idx + 2, :f])

        # ---- dense MLP: Linear (bias cancelled by BN) -> BatchNorm1d(train) -> LeakyReLU ----
        h = x_ref[...]                                                    # (N, Fin)
        for li, w_ref in enumerate(dense_w):
            y = jnp.dot(h, w_ref[...], preferred_element_type=jnp.float32)
            mean = jnp.mean(y, axis=0, keepdims=True)
            yc = y - mean
            var = jnp.mean(yc * yc, axis=0, keepdims=True)                # two-pass, biased
            g, bt = gamma_beta(li, y.shape[1])
            t = yc * (g * jax.lax.rsqrt(var + EPS)) + bt
            h = jnp.maximum(t, ALPHA * t)                                 # LeakyReLU(0.2)

        # ---- repack (N, W*Cpad) -> position-major (W*N, Cpad); 128-aligned lane slices ----
        c0p = deconv_w[0].shape[1]
        h2 = jnp.concatenate([h[:, w * c0p:(w + 1) * c0p] for w in range(in_width)], axis=0)

        # ---- deconv: ConvTranspose1d(k=4,s=2,p=1) -> BatchNorm1d(train) -> LeakyReLU ----
        #   out[2j]   = x[j] @ W[:,:,1] + x[j-1] @ W[:,:,3]     (bias cancelled by BN)
        #   out[2j+1] = x[j] @ W[:,:,2] + x[j+1] @ W[:,:,0]
        width = in_width
        even_a = odd_a = None
        for di, w_ref in enumerate(deconv_w):
            wn = width * n
            cout = w_ref.shape[2]
            xp = _shift(h2, n, wn, +1, shift_mode)     # x[j-1], zero block at j = 0
            xn = _shift(h2, n, wn, -1, shift_mode)     # x[j+1], zero block at j = W-1
            even = (jnp.dot(h2, w_ref[0], preferred_element_type=jnp.float32) +
                    jnp.dot(xp, w_ref[1], preferred_element_type=jnp.float32))
            odd = (jnp.dot(h2, w_ref[2], preferred_element_type=jnp.float32) +
                   jnp.dot(xn, w_ref[3], preferred_element_type=jnp.float32))

            cnt = 2.0 * wn                              # samples/channel = batch * out_width
            mean = (jnp.sum(even, axis=0, keepdims=True) +
                    jnp.sum(odd, axis=0, keepdims=True)) / cnt
            ec, oc = even - mean, odd - mean
            var = (jnp.sum(ec * ec, axis=0, keepdims=True) +
                   jnp.sum(oc * oc, axis=0, keepdims=True)) / cnt
            g, bt = gamma_beta(n_dense + di, cout)
            scale = g * jax.lax.rsqrt(var + EPS)
            te, to = ec * scale + bt, oc * scale + bt
            even_a = jnp.maximum(te, ALPHA * te)
            odd_a = jnp.maximum(to, ALPHA * to)

            if di < n_deconv - 1:
                # Interleave even/odd position blocks (batch = one 8-row sublane tile) so the
                # next layer stays position-major.  Skipped for the last layer (heads don't care).
                e3 = even_a.reshape(width, n, cout)
                o3 = odd_a.reshape(width, n, cout)
                h2 = jnp.concatenate([e3, o3], axis=1).reshape(2 * wn, cout)
            width *= 2

        # ---- heads: Conv1d(C,2,1)+Tanh and Conv1d(C,1,1)+Sigmoid, lane-dense (3, n_cp*N) ----
        # Contract the channel axis directly (A @ B^T) — no materialized transpose of h.
        whT, bh = whT_ref[...], bhT_ref[...]
        dn = (((1,), (1,)), ((), ()))
        ye = jax.lax.dot_general(whT, even_a, dn, preferred_element_type=jnp.float32) + bh
        yo = jax.lax.dot_general(whT, odd_a, dn, preferred_element_type=jnp.float32) + bh
        yT = jnp.concatenate([ye, yo], axis=1)          # 128-aligned lane concat
        out_ref[0:2, :] = jnp.tanh(yT[0:2, :])
        # exact EUP reciprocal (approx=True would need looser tolerances)
        out_ref[2:3, :] = pl.reciprocal(1.0 + jnp.exp(-yT[2:3, :]))

    return kernel


# ---------------------------------------------------------------------------
# Wrapper: host-side weight packing + single pallas_call + layout glue
# ---------------------------------------------------------------------------
@functools.partial(jax.jit, static_argnums=(2, 3, 4))
def _cpw_forward(x, params, in_chnl, in_width, shift_mode):
    n = x.shape[0]
    n_dense = len(params['dense'])
    n_deconv = len(params['deconv'])
    n_cp = in_width * (2 ** n_deconv)
    c0_pad = ((in_chnl + 127) // 128) * 128             # lane-tile aligned channel block

    dense_ws, deconv_ws, gb_rows = [], [], []

    # Dense layers: pass W^T (Fin, Fout); biases dropped (cancelled by training-mode BN).
    # The LAST layer's output features are scattered into W-major, 128-padded channel blocks
    # (new col = w*c0_pad + c), so the kernel's per-position slices are whole lane tiles.
    for li, (w, _b, g, bt) in enumerate(params['dense']):
        wt_ = w.T.astype(jnp.float32)
        if li == n_dense - 1:
            f = np.arange(in_chnl * in_width)
            dst = (f % in_width) * c0_pad + (f // in_width)   # PyTorch .view(-1,C,W): f = c*W + w
            wt_ = jnp.zeros((wt_.shape[0], in_width * c0_pad), jnp.float32).at[:, dst].set(wt_)
            g = jnp.zeros((in_width * c0_pad,), jnp.float32).at[dst].set(g)
            bt = jnp.zeros((in_width * c0_pad,), jnp.float32).at[dst].set(bt)
        dense_ws.append(wt_)
        gb_rows.append((g, bt))

    # Deconv layers: 4 taps of ConvTranspose1d(Cin, Cout, 4) packed as (4, Cin, Cout) in the
    # order [center->even (k=1), prev->even (k=3), center->odd (k=2), next->odd (k=0)].
    # Layer 0's Cin is zero-padded to the 128-aligned channel block.  Biases dropped (BN).
    for di, (w, _b, g, bt) in enumerate(params['deconv']):
        taps = jnp.stack([w[:, :, 1], w[:, :, 3], w[:, :, 2], w[:, :, 0]], axis=0)
        if di == 0 and c0_pad != w.shape[0]:
            taps = jnp.pad(taps, ((0, 0), (0, c0_pad - w.shape[0]), (0, 0)))
        deconv_ws.append(taps.astype(jnp.float32))
        gb_rows.append((g, bt))

    # All BN gamma/beta vectors packed into ONE VMEM input (row 2i = gamma_i, row 2i+1 = beta_i).
    fmax = max(g.shape[0] for g, _ in gb_rows)
    vec = jnp.stack([jnp.pad(v, (0, fmax - v.shape[0]))
                     for g, bt in gb_rows for v in (g, bt)], axis=0)

    # Heads: fuse cp (C,2) and w (C,1) 1x1 convs into one (3, C) weight + (3, 1) bias.
    wcp, bcp, ww, bw = params['heads']
    whT = jnp.concatenate([wcp[:, :, 0], ww[:, :, 0]], axis=0)
    bhT = jnp.concatenate([bcp, bw]).reshape(3, 1)

    inputs = [x] + dense_ws + deconv_ws + [vec, whT, bhT]
    vmem = pl.BlockSpec(memory_space=pltpu.MemorySpace.VMEM)
    out = pl.pallas_call(
        _make_fused_kernel(n, in_width, n_dense, n_deconv, shift_mode),
        out_shape=jax.ShapeDtypeStruct((3, n_cp * n), jnp.float32),
        in_specs=[vmem] * len(inputs),
        out_specs=vmem,
    )(*inputs)

    # Kernel columns: [even half | odd half], each ordered (position block j, batch b).
    # (3, n_cp*N) -> (N, 3, n_cp) with control-point index p = 2j + parity (pure layout glue).
    half = n_cp // 2
    res = jnp.transpose(out.reshape(3, 2, half, n), (3, 0, 2, 1)).reshape(n, 3, n_cp)
    return res[:, 0:2, :], res[:, 2:3, :]


def cpw_generator_forward(x, params, in_chnl, in_width):
    assert x.shape[0] % 8 == 0, "batch must be a multiple of the 8-row sublane tile"
    return _cpw_forward(x, params, in_chnl, in_width, _get_shift_mode())


# ---------------------------------------------------------------------------
# Deterministic parameter construction (synthetic; PyTorch-convention shapes)
# ---------------------------------------------------------------------------
def init_params(key, in_features, n_control_points, dense_layers, deconv_channels):
    n_l = len(deconv_channels) - 1
    in_chnl = deconv_channels[0]
    in_width = n_control_points // (2 ** n_l)
    assert in_width >= 4, "Too many deconvolutional layers for the control points."
    params = {'dense': [], 'deconv': [], 'heads': None}
    widths = [in_features] + dense_layers + [in_chnl * in_width]
    keys = iter(jax.random.split(key, 64))
    for fin, fout in zip(widths[:-1], widths[1:]):
        w = jax.random.normal(next(keys), (fout, fin), jnp.float32) / np.sqrt(fin)
        b = 0.1 * jax.random.normal(next(keys), (fout,), jnp.float32)
        g = 1.0 + 0.1 * jax.random.normal(next(keys), (fout,), jnp.float32)
        bt = 0.1 * jax.random.normal(next(keys), (fout,), jnp.float32)
        params['dense'].append((w, b, g, bt))
    for cin, cout in zip(deconv_channels[:-1], deconv_channels[1:]):
        w = jax.random.normal(next(keys), (cin, cout, 4), jnp.float32) / np.sqrt(cin * 4)
        b = 0.1 * jax.random.normal(next(keys), (cout,), jnp.float32)
        g = 1.0 + 0.1 * jax.random.normal(next(keys), (cout,), jnp.float32)
        bt = 0.1 * jax.random.normal(next(keys), (cout,), jnp.float32)
        params['deconv'].append((w, b, g, bt))
    c = deconv_channels[-1]
    wcp = jax.random.normal(next(keys), (2, c, 1), jnp.float32) / np.sqrt(c)
    bcp = 0.1 * jax.random.normal(next(keys), (2,), jnp.float32)
    ww = jax.random.normal(next(keys), (1, c, 1), jnp.float32) / np.sqrt(c)
    bw = 0.1 * jax.random.normal(next(keys), (1,), jnp.float32)
    params['heads'] = (wcp, bcp, ww, bw)
    return params, in_chnl, in_width


# ---------------------------------------------------------------------------
# Pure-JAX reference (mirrors PyTorch semantics, NCW layout, WITH biases) for verification
# ---------------------------------------------------------------------------
def reference_forward(x, params, in_chnl, in_width):
    h = x
    for (w, b, g, bt) in params['dense']:
        y = h @ w.T + b
        mean = jnp.mean(y, axis=0)
        var = jnp.mean((y - mean) ** 2, axis=0)
        y = g * (y - mean) / jnp.sqrt(var + EPS) + bt
        h = jnp.where(y >= 0, y, ALPHA * y)
    n = x.shape[0]
    h = h.reshape(n, in_chnl, in_width)
    for (w, b, g, bt) in params['deconv']:
        rhs = jnp.flip(jnp.transpose(w, (1, 0, 2)), axis=2)   # (Cout, Cin, K)
        y = jax.lax.conv_general_dilated(
            h, rhs, window_strides=(1,), padding=[(2, 2)], lhs_dilation=(2,),
            dimension_numbers=('NCH', 'OIH', 'NCH')) + b[None, :, None]
        mean = jnp.mean(y, axis=(0, 2), keepdims=True)
        var = jnp.mean((y - mean) ** 2, axis=(0, 2), keepdims=True)
        y = g[None, :, None] * (y - mean) / jnp.sqrt(var + EPS) + bt[None, :, None]
        h = jnp.where(y >= 0, y, ALPHA * y)
    wcp, bcp, ww, bw = params['heads']
    cp = jnp.tanh(jnp.einsum('ncw,oc->now', h, wcp[:, :, 0]) + bcp[None, :, None])
    wt = 1.0 / (1.0 + jnp.exp(-(jnp.einsum('ncw,oc->now', h, ww[:, :, 0]) + bw[None, :, None])))
    return cp, wt


if __name__ == "__main__":
    key = jax.random.PRNGKey(0)
    k_x, k_p = jax.random.split(key)

    # Small but structurally faithful configuration (batch=8 keeps each position block exactly
    # one sublane tile, so all in-kernel reshapes / shifts are tile-aligned).
    batch = 8
    in_features = 16
    n_control_points = 32            # even; in_width = 32 / 2**3 = 4 >= 4
    dense_layers = [64]
    deconv_channels = [64, 32, 16, 8]

    params, in_chnl, in_width = init_params(
        k_p, in_features, n_control_points, dense_layers, deconv_channels)
    x = jax.random.normal(k_x, (batch, in_features), jnp.float32)

    cp, wt = cpw_generator_forward(x, params, in_chnl, in_width)
    jax.block_until_ready((cp, wt))

    assert cp.shape == (batch, 2, n_control_points)
    assert wt.shape == (batch, 1, n_control_points)

    cp_ref, wt_ref = reference_forward(x, params, in_chnl, in_width)
    np.testing.assert_allclose(np.asarray(cp), np.asarray(cp_ref), rtol=1e-4, atol=2e-4)
    np.testing.assert_allclose(np.asarray(wt), np.asarray(wt_ref), rtol=1e-4, atol=2e-4)

    print("KERNEL_OK")
</pallas_src>

<mosaic_0001>
module attributes {stable_mosaic.version = 11 : i64} {
  func.func @k(%arg0: memref<24x128xf32, #tpu.memory_space<vmem>>, %arg1: memref<24x128xf32, #tpu.memory_space<vmem>>) attributes {dimension_semantics = [], scalar_prefetch = 0 : i64, scratch_operands = 0 : i64, tpu.core_type = #tpu.core_type<tc>} {
    %c0 = arith.constant 0 : index
    %c0_0 = arith.constant 0 : index
    %0 = vector.load %arg0[%c0, %c0_0] : memref<24x128xf32, #tpu.memory_space<vmem>>, vector<24x128xf32>
    %c8_i32 = arith.constant 8 : i32
    %1 = tpu.dynamic_rotate %0 by %c8_i32 dim 0 : vector<24x128xf32>, i32 -> vector<24x128xf32>
    %c0_1 = arith.constant 0 : index
    %c0_2 = arith.constant 0 : index
    %2 = vector.load %arg1[%c0_1, %c0_2] : memref<24x128xf32, #tpu.memory_space<vmem>>, vector<24x128xf32>
    tpu.vector_store %arg1[%c0_1, %c0_2], %1 {strides = array<i32>} : memref<24x128xf32, #tpu.memory_space<vmem>>, vector<24x128xf32>,
    return
  }
}

module attributes {stable_mosaic.version = 11 : i64} {
  func.func @kernel(%arg0: memref<8x16xf32, #tpu.memory_space<vmem>>, %arg1: memref<16x64xf32, #tpu.memory_space<vmem>>, %arg2: memref<64x512xf32, #tpu.memory_space<vmem>>, %arg3: memref<4x128x32xf32, #tpu.memory_space<vmem>>, %arg4: memref<4x32x16xf32, #tpu.memory_space<vmem>>, %arg5: memref<4x16x8xf32, #tpu.memory_space<vmem>>, %arg6: memref<10x512xf32, #tpu.memory_space<vmem>>, %arg7: memref<3x8xf32, #tpu.memory_space<vmem>>, %arg8: memref<3x1xf32, #tpu.memory_space<vmem>>, %arg9: memref<3x256xf32, #tpu.memory_space<vmem>>) attributes {dimension_semantics = [], scalar_prefetch = 0 : i64, scratch_operands = 0 : i64, tpu.core_type = #tpu.core_type<tc>} {
    %c0 = arith.constant 0 : index
    %c0_0 = arith.constant 0 : index
    %0 = vector.load %arg0[%c0, %c0_0] : memref<8x16xf32, #tpu.memory_space<vmem>>, vector<8x16xf32>
    %c0_1 = arith.constant 0 : index
    %c0_2 = arith.constant 0 : index
    %1 = vector.load %arg1[%c0_1, %c0_2] : memref<16x64xf32, #tpu.memory_space<vmem>>, vector<16x64xf32>
    %cst = arith.constant dense<0.000000e+00> : vector<8x64xf32>
    %2 = tpu.matmul %0, %1, %cst {dimension_numbers = #tpu.dot_dimension_numbers<[1], [0], [0], [1], [0, 0, 1, 1], [], []>} : vector<8x16xf32>, vector<16x64xf32>, vector<8x64xf32> -> vector<8x64xf32>
    %cst_3 = arith.constant dense<0.000000e+00> : vector<64xf32>
    %3 = vector.multi_reduction <add>, %2, %cst_3 [0] : vector<8x64xf32> to vector<64xf32>
    %4 = vector.shape_cast %3 : vector<64xf32> to vector<1x64xf32>
    %cst_4 = arith.constant 8.000000e+00 : f32
    %5 = vector.broadcast %cst_4 : f32 to vector<1x64xf32>
    %6 = arith.divf %4, %5 : vector<1x64xf32>
    %7 = vector.broadcast %6 : vector<1x64xf32> to vector<8x64xf32>
    %8 = arith.subf %2, %7 : vector<8x64xf32>
    %9 = arith.mulf %8, %8 : vector<8x64xf32>
    %cst_5 = arith.constant dense<0.000000e+00> : vector<64xf32>
    %10 = vector.multi_reduction <add>, %9, %cst_5 [0] : vector<8x64xf32> to vector<64xf32>
    %11 = vector.shape_cast %10 : vector<64xf32> to vector<1x64xf32>
    %cst_6 = arith.constant 8.000000e+00 : f32
    %12 = vector.broadcast %cst_6 : f32 to vector<1x64xf32>
    %13 = arith.divf %11, %12 : vector<1x64xf32>
    %c0_7 = arith.constant 0 : index
    %c0_8 = arith.constant 0 : index
    %14 = vector.load %arg6[%c0_7, %c0_8] : memref<10x512xf32, #tpu.memory_space<vmem>>, vector<1x64xf32>
    %c1 = arith.constant 1 : index
    %c0_9 = arith.constant 0 : index
    %15 = vector.load %arg6[%c1, %c0_9] : memref<10x512xf32, #tpu.memory_space<vmem>>, vector<1x64xf32>
    %cst_10 = arith.constant 9.99999974E-6 : f32
    %16 = vector.broadcast %cst_10 : f32 to vector<1x64xf32>
    %17 = arith.addf %13, %16 : vector<1x64xf32>
    %18 = math.rsqrt %17 : vector<1x64xf32>
    %19 = arith.mulf %14, %18 : vector<1x64xf32>
    %20 = vector.broadcast %19 : vector<1x64xf32> to vector<8x64xf32>
    %21 = arith.mulf %8, %20 : vector<8x64xf32>
    %22 = vector.broadcast %15 : vector<1x64xf32> to vector<8x64xf32>
    %23 = arith.addf %21, %22 : vector<8x64xf32>
    %cst_11 = arith.constant 2.000000e-01 : f32
    %24 = vector.broadcast %cst_11 : f32 to vector<8x64xf32>
    %25 = arith.mulf %24, %23 : vector<8x64xf32>
    %26 = arith.maximumf %23, %25 : vector<8x64xf32>
    %c0_12 = arith.constant 0 : index
    %c0_13 = arith.constant 0 : index
    %27 = vector.load %arg2[%c0_12, %c0_13] : memref<64x512xf32, #tpu.memory_space<vmem>>, vector<64x512xf32>
    %cst_14 = arith.constant dense<0.000000e+00> : vector<8x512xf32>
    %28 = tpu.matmul %26, %27, %cst_14 {dimension_numbers = #tpu.dot_dimension_numbers<[1], [0], [0], [1], [0, 0, 1, 1], [], []>} : vector<8x64xf32>, vector<64x512xf32>, vector<8x512xf32> -> vector<8x512xf32>
    %cst_15 = arith.constant dense<0.000000e+00> : vector<512xf32>
    %29 = vector.multi_reduction <add>, %28, %cst_15 [0] : vector<8x512xf32> to vector<512xf32>
    %30 = vector.shape_cast %29 : vector<512xf32> to vector<1x512xf32>
    %cst_16 = arith.constant 8.000000e+00 : f32
    %31 = vector.broadcast %cst_16 : f32 to vector<1x512xf32>
    %32 = arith.divf %30, %31 : vector<1x512xf32>
    %33 = vector.broadcast %32 : vector<1x512xf32> to vector<8x512xf32>
    %34 = arith.subf %28, %33 : vector<8x512xf32>
    %35 = arith.mulf %34, %34 : vector<8x512xf32>
    %cst_17 = arith.constant dense<0.000000e+00> : vector<512xf32>
    %36 = vector.multi_reduction <add>, %35, %cst_17 [0] : vector<8x512xf32> to vector<512xf32>
    %37 = vector.shape_cast %36 : vector<512xf32> to vector<1x512xf32>
    %cst_18 = arith.constant 8.000000e+00 : f32
    %38 = vector.broadcast %cst_18 : f32 to vector<1x512xf32>
    %39 = arith.divf %37, %38 : vector<1x512xf32>
    %c2 = arith.constant 2 : index
    %c0_19 = arith.constant 0 : index
    %40 = vector.load %arg6[%c2, %c0_19] : memref<10x512xf32, #tpu.memory_space<vmem>>, vector<1x512xf32>
    %c3 = arith.constant 3 : index
    %c0_20 = arith.constant 0 : index
    %41 = vector.load %arg6[%c3, %c0_20] : memref<10x512xf32, #tpu.memory_space<vmem>>, vector<1x512xf32>
    %cst_21 = arith.constant 9.99999974E-6 : f32
    %42 = vector.broadcast %cst_21 : f32 to vector<1x512xf32>
    %43 = arith.addf %39, %42 : vector<1x512xf32>
    %44 = math.rsqrt %43 : vector<1x512xf32>
    %45 = arith.mulf %40, %44 : vector<1x512xf32>
    %46 = vector.broadcast %45 : vector<1x512xf32> to vector<8x512xf32>
    %47 = arith.mulf %34, %46 : vector<8x512xf32>
    %48 = vector.broadcast %41 : vector<1x512xf32> to vector<8x512xf32>
    %49 = arith.addf %47, %48 : vector<8x512xf32>
    %cst_22 = arith.constant 2.000000e-01 : f32
    %50 = vector.broadcast %cst_22 : f32 to vector<8x512xf32>
    %51 = arith.mulf %50, %49 : vector<8x512xf32>
    %52 = arith.maximumf %49, %51 : vector<8x512xf32>
    %53 = vector.extract_strided_slice %52 {offsets = [0, 0], sizes = [8, 128], strides = [1, 1]} : vector<8x512xf32> to vector<8x128xf32>
    %54 = vector.extract_strided_slice %52 {offsets = [0, 128], sizes = [8, 128], strides = [1, 1]} : vector<8x512xf32> to vector<8x128xf32>
    %55 = vector.extract_strided_slice %52 {offsets = [0, 256], sizes = [8, 128], strides = [1, 1]} : vector<8x512xf32> to vector<8x128xf32>
    %56 = vector.extract_strided_slice %52 {offsets = [0, 384], sizes = [8, 128], strides = [1, 1]} : vector<8x512xf32> to vector<8x128xf32>
    %57 = tpu.concatenate %53, %54, %55, %56 in 0 : vector<8x128xf32>, vector<8x128xf32>, vector<8x128xf32>, vector<8x128xf32> -> vector<32x128xf32>
    %cst_23 = arith.constant 0.000000e+00 : f32
    %58 = vector.broadcast %cst_23 : f32 to vector<8x128xf32>
    %59 = vector.extract_strided_slice %57 {offsets = [0, 0], sizes = [24, 128], strides = [1, 1]} : vector<32x128xf32> to vector<24x128xf32>
    %60 = tpu.concatenate %58, %59 in 0 : vector<8x128xf32>, vector<24x128xf32> -> vector<32x128xf32>
    %cst_24 = arith.constant 0.000000e+00 : f32
    %61 = vector.broadcast %cst_24 : f32 to vector<8x128xf32>
    %62 = vector.extract_strided_slice %57 {offsets = [8, 0], sizes = [24, 128], strides = [1, 1]} : vector<32x128xf32> to vector<24x128xf32>
    %63 = tpu.concatenate %62, %61 in 0 : vector<24x128xf32>, vector<8x128xf32> -> vector<32x128xf32>
    %c0_25 = arith.constant 0 : index
    %c0_26 = arith.constant 0 : index
    %c0_27 = arith.constant 0 : index
    %64 = vector.load %arg3[%c0_25, %c0_26, %c0_27] : memref<4x128x32xf32, #tpu.memory_space<vmem>>, vector<1x128x32xf32>
    %65 = vector.shape_cast %64 : vector<1x128x32xf32> to vector<128x32xf32>
    %cst_28 = arith.constant dense<0.000000e+00> : vector<32x32xf32>
    %66 = tpu.matmul %57, %65, %cst_28 {dimension_numbers = #tpu.dot_dimension_numbers<[1], [0], [0], [1], [0, 0, 1, 1], [], []>} : vector<32x128xf32>, vector<128x32xf32>, vector<32x32xf32> -> vector<32x32xf32>
    %c1_29 = arith.constant 1 : index
    %c0_30 = arith.constant 0 : index
    %c0_31 = arith.constant 0 : index
    %67 = vector.load %arg3[%c1_29, %c0_30, %c0_31] : memref<4x128x32xf32, #tpu.memory_space<vmem>>, vector<1x128x32xf32>
    %68 = vector.shape_cast %67 : vector<1x128x32xf32> to vector<128x32xf32>
    %cst_32 = arith.constant dense<0.000000e+00> : vector<32x32xf32>
    %69 = tpu.matmul %60, %68, %cst_32 {dimension_numbers = #tpu.dot_dimension_numbers<[1], [0], [0], [1], [0, 0, 1, 1], [], []>} : vector<32x128xf32>, vector<128x32xf32>, vector<32x32xf32> -> vector<32x32xf32>
    %70 = arith.addf %66, %69 : vector<32x32xf32>
    %c2_33 = arith.constant 2 : index
    %c0_34 = arith.constant 0 : index
    %c0_35 = arith.constant 0 : index
    %71 = vector.load %arg3[%c2_33, %c0_34, %c0_35] : memref<4x128x32xf32, #tpu.memory_space<vmem>>, vector<1x128x32xf32>
    %72 = vector.shape_cast %71 : vector<1x128x32xf32> to vector<128x32xf32>
    %cst_36 = arith.constant dense<0.000000e+00> : vector<32x32xf32>
    %73 = tpu.matmul %57, %72, %cst_36 {dimension_numbers = #tpu.dot_dimension_numbers<[1], [0], [0], [1], [0, 0, 1, 1], [], []>} : vector<32x128xf32>, vector<128x32xf32>, vector<32x32xf32> -> vector<32x32xf32>
    %c3_37 = arith.constant 3 : index
    %c0_38 = arith.constant 0 : index
    %c0_39 = arith.constant 0 : index
    %74 = vector.load %arg3[%c3_37, %c0_38, %c0_39] : memref<4x128x32xf32, #tpu.memory_space<vmem>>, vector<1x128x32xf32>
    %75 = vector.shape_cast %74 : vector<1x128x32xf32> to vector<128x32xf32>
    %cst_40 = arith.constant dense<0.000000e+00> : vector<32x32xf32>
    %76 = tpu.matmul %63, %75, %cst_40 {dimension_numbers = #tpu.dot_dimension_numbers<[1], [0], [0], [1], [0, 0, 1, 1], [], []>} : vector<32x128xf32>, vector<128x32xf32>, vector<32x32xf32> -> vector<32x32xf32>
    %77 = arith.addf %73, %76 : vector<32x32xf32>
    %cst_41 = arith.constant dense<0.000000e+00> : vector<32xf32>
    %78 = vector.multi_reduction <add>, %70, %cst_41 [0] : vector<32x32xf32> to vector<32xf32>
    %79 = vector.shape_cast %78 : vector<32xf32> to vector<1x32xf32>
    %cst_42 = arith.constant dense<0.000000e+00> : vector<32xf32>
    %80 = vector.multi_reduction <add>, %77, %cst_42 [0] : vector<32x32xf32> to vector<32xf32>
    %81 = vector.shape_cast %80 : vector<32xf32> to vector<1x32xf32>
    %82 = arith.addf %79, %81 : vector<1x32xf32>
    %cst_43 = arith.constant 6.400000e+01 : f32
    %83 = vector.broadcast %cst_43 : f32 to vector<1x32xf32>
    %84 = arith.divf %82, %83 : vector<1x32xf32>
    %85 = vector.broadcast %84 : vector<1x32xf32> to vector<32x32xf32>
    %86 = arith.subf %70, %85 : vector<32x32xf32>
    %87 = vector.broadcast %84 : vector<1x32xf32> to vector<32x32xf32>
    %88 = arith.subf %77, %87 : vector<32x32xf32>
    %89 = arith.mulf %86, %86 : vector<32x32xf32>
    %cst_44 = arith.constant dense<0.000000e+00> : vector<32xf32>
    %90 = vector.multi_reduction <add>, %89, %cst_44 [0] : vector<32x32xf32> to vector<32xf32>
    %91 = vector.shape_cast %90 : vector<32xf32> to vector<1x32xf32>
    %92 = arith.mulf %88, %88 : vector<32x32xf32>
    %cst_45 = arith.constant dense<0.000000e+00> : vector<32xf32>
    %93 = vector.multi_reduction <add>, %92, %cst_45 [0] : vector<32x32xf32> to vector<32xf32>
    %94 = vector.shape_cast %93 : vector<32xf32> to vector<1x32xf32>
    %95 = arith.addf %91, %94 : vector<1x32xf32>
    %cst_46 = arith.constant 6.400000e+01 : f32
    %96 = vector.broadcast %cst_46 : f32 to vector<1x32xf32>
    %97 = arith.divf %95, %96 : vector<1x32xf32>
    %c4 = arith.constant 4 : index
    %c0_47 = arith.constant 0 : index
    %98 = vector.load %arg6[%c4, %c0_47] : memref<10x512xf32, #tpu.memory_space<vmem>>, vector<1x32xf32>
    %c5 = arith.constant 5 : index
    %c0_48 = arith.constant 0 : index
    %99 = vector.load %arg6[%c5, %c0_48] : memref<10x512xf32, #tpu.memory_space<vmem>>, vector<1x32xf32>
    %cst_49 = arith.constant 9.99999974E-6 : f32
    %100 = vector.broadcast %cst_49 : f32 to vector<1x32xf32>
    %101 = arith.addf %97, %100 : vector<1x32xf32>
    %102 = math.rsqrt %101 : vector<1x32xf32>
    %103 = arith.mulf %98, %102 : vector<1x32xf32>
    %104 = vector.broadcast %103 : vector<1x32xf32> to vector<32x32xf32>
    %105 = arith.mulf %86, %104 : vector<32x32xf32>
    %106 = vector.broadcast %99 : vector<1x32xf32> to vector<32x32xf32>
    %107 = arith.addf %105, %106 : vector<32x32xf32>
    %108 = vector.broadcast %103 : vector<1x32xf32> to vector<32x32xf32>
    %109 = arith.mulf %88, %108 : vector<32x32xf32>
    %110 = vector.broadcast %99 : vector<1x32xf32> to vector<32x32xf32>
    %111 = arith.addf %109, %110 : vector<32x32xf32>
    %cst_50 = arith.constant 2.000000e-01 : f32
    %112 = vector.broadcast %cst_50 : f32 to vector<32x32xf32>
    %113 = arith.mulf %112, %107 : vector<32x32xf32>
    %114 = arith.maximumf %107, %113 : vector<32x32xf32>
    %cst_51 = arith.constant 2.000000e-01 : f32
    %115 = vector.broadcast %cst_51 : f32 to vector<32x32xf32>
    %116 = arith.mulf %115, %111 : vector<32x32xf32>
    %117 = arith.maximumf %111, %116 : vector<32x32xf32>
    %118 = vector.shape_cast %114 : vector<32x32xf32> to vector<4x8x32xf32>
    %119 = vector.shape_cast %117 : vector<32x32xf32> to vector<4x8x32xf32>
    %120 = tpu.concatenate %118, %119 in 1 : vector<4x8x32xf32>, vector<4x8x32xf32> -> vector<4x16x32xf32>
    %121 = vector.shape_cast %120 : vector<4x16x32xf32> to vector<64x32xf32>
    %cst_52 = arith.constant 0.000000e+00 : f32
    %122 = vector.broadcast %cst_52 : f32 to vector<8x32xf32>
    %123 = vector.extract_strided_slice %121 {offsets = [0, 0], sizes = [56, 32], strides = [1, 1]} : vector<64x32xf32> to vector<56x32xf32>
    %124 = tpu.concatenate %122, %123 in 0 : vector<8x32xf32>, vector<56x32xf32> -> vector<64x32xf32>
    %cst_53 = arith.constant 0.000000e+00 : f32
    %125 = vector.broadcast %cst_53 : f32 to vector<8x32xf32>
    %126 = vector.extract_strided_slice %121 {offsets = [8, 0], sizes = [56, 32], strides = [1, 1]} : vector<64x32xf32> to vector<56x32xf32>
    %127 = tpu.concatenate %126, %125 in 0 : vector<56x32xf32>, vector<8x32xf32> -> vector<64x32xf32>
    %c0_54 = arith.constant 0 : index
    %c0_55 = arith.constant 0 : index
    %c0_56 = arith.constant 0 : index
    %128 = vector.load %arg4[%c0_54, %c0_55, %c0_56] : memref<4x32x16xf32, #tpu.memory_space<vmem>>, vector<1x32x16xf32>
    %129 = vector.shape_cast %128 : vector<1x32x16xf32> to vector<32x16xf32>
    %cst_57 = arith.constant dense<0.000000e+00> : vector<64x16xf32>
    %130 = tpu.matmul %121, %129, %cst_57 {dimension_numbers = #tpu.dot_dimension_numbers<[1], [0], [0], [1], [0, 0, 1, 1], [], []>} : vector<64x32xf32>, vector<32x16xf32>, vector<64x16xf32> -> vector<64x16xf32>
    %c1_58 = arith.constant 1 : index
    %c0_59 = arith.constant 0 : index
    %c0_60 = arith.constant 0 : index
    %131 = vector.load %arg4[%c1_58, %c0_59, %c0_60] : memref<4x32x16xf32, #tpu.memory_space<vmem>>, vector<1x32x16xf32>
    %132 = vector.shape_cast %131 : vector<1x32x16xf32> to vector<32x16xf32>
    %cst_61 = arith.constant dense<0.000000e+00> : vector<64x16xf32>
    %133 = tpu.matmul %124, %132, %cst_61 {dimension_numbers = #tpu.dot_dimension_numbers<[1], [0], [0], [1], [0, 0, 1, 1], [], []>} : vector<64x32xf32>, vector<32x16xf32>, vector<64x16xf32> -> vector<64x16xf32>
    %134 = arith.addf %130, %133 : vector<64x16xf32>
    %c2_62 = arith.constant 2 : index
    %c0_63 = arith.constant 0 : index
    %c0_64 = arith.constant 0 : index
    %135 = vector.load %arg4[%c2_62, %c0_63, %c0_64] : memref<4x32x16xf32, #tpu.memory_space<vmem>>, vector<1x32x16xf32>
    %136 = vector.shape_cast %135 : vector<1x32x16xf32> to vector<32x16xf32>
    %cst_65 = arith.constant dense<0.000000e+00> : vector<64x16xf32>
    %137 = tpu.matmul %121, %136, %cst_65 {dimension_numbers = #tpu.dot_dimension_numbers<[1], [0], [0], [1], [0, 0, 1, 1], [], []>} : vector<64x32xf32>, vector<32x16xf32>, vector<64x16xf32> -> vector<64x16xf32>
    %c3_66 = arith.constant 3 : index
    %c0_67 = arith.constant 0 : index
    %c0_68 = arith.constant 0 : index
    %138 = vector.load %arg4[%c3_66, %c0_67, %c0_68] : memref<4x32x16xf32, #tpu.memory_space<vmem>>, vector<1x32x16xf32>
    %139 = vector.shape_cast %138 : vector<1x32x16xf32> to vector<32x16xf32>
    %cst_69 = arith.constant dense<0.000000e+00> : vector<64x16xf32>
    %140 = tpu.matmul %127, %139, %cst_69 {dimension_numbers = #tpu.dot_dimension_numbers<[1], [0], [0], [1], [0, 0, 1, 1], [], []>} : vector<64x32xf32>, vector<32x16xf32>, vector<64x16xf32> -> vector<64x16xf32>
    %141 = arith.addf %137, %140 : vector<64x16xf32>
    %cst_70 = arith.constant dense<0.000000e+00> : vector<16xf32>
    %142 = vector.multi_reduction <add>, %134, %cst_70 [0] : vector<64x16xf32> to vector<16xf32>
    %143 = vector.shape_cast %142 : vector<16xf32> to vector<1x16xf32>
    %cst_71 = arith.constant dense<0.000000e+00> : vector<16xf32>
    %144 = vector.multi_reduction <add>, %141, %cst_71 [0] : vector<64x16xf32> to vector<16xf32>
    %145 = vector.shape_cast %144 : vector<16xf32> to vector<1x16xf32>
    %146 = arith.addf %143, %145 : vector<1x16xf32>
    %cst_72 = arith.constant 1.280000e+02 : f32
    %147 = vector.broadcast %cst_72 : f32 to vector<1x16xf32>
    %148 = arith.divf %146, %147 : vector<1x16xf32>
    %149 = vector.broadcast %148 : vector<1x16xf32> to vector<64x16xf32>
    %150 = arith.subf %134, %149 : vector<64x16xf32>
    %151 = vector.broadcast %148 : vector<1x16xf32> to vector<64x16xf32>
    %152 = arith.subf %141, %151 : vector<64x16xf32>
    %153 = arith.mulf %150, %150 : vector<64x16xf32>
    %cst_73 = arith.constant dense<0.000000e+00> : vector<16xf32>
    %154 = vector.multi_reduction <add>, %153, %cst_73 [0] : vector<64x16xf32> to vector<16xf32>
    %155 = vector.shape_cast %154 : vector<16xf32> to vector<1x16xf32>
    %156 = arith.mulf %152, %152 : vector<64x16xf32>
    %cst_74 = arith.constant dense<0.000000e+00> : vector<16xf32>
    %157 = vector.multi_reduction <add>, %156, %cst_74 [0] : vector<64x16xf32> to vector<16xf32>
    %158 = vector.shape_cast %157 : vector<16xf32> to vector<1x16xf32>
    %159 = arith.addf %155, %158 : vector<1x16xf32>
    %cst_75 = arith.constant 1.280000e+02 : f32
    %160 = vector.broadcast %cst_75 : f32 to vector<1x16xf32>
    %161 = arith.divf %159, %160 : vector<1x16xf32>
    %c6 = arith.constant 6 : index
    %c0_76 = arith.constant 0 : index
    %162 = vector.load %arg6[%c6, %c0_76] : memref<10x512xf32, #tpu.memory_space<vmem>>, vector<1x16xf32>
    %c7 = arith.constant 7 : index
    %c0_77 = arith.constant 0 : index
    %163 = vector.load %arg6[%c7, %c0_77] : memref<10x512xf32, #tpu.memory_space<vmem>>, vector<1x16xf32>
    %cst_78 = arith.constant 9.99999974E-6 : f32
    %164 = vector.broadcast %cst_78 : f32 to vector<1x16xf32>
    %165 = arith.addf %161, %164 : vector<1x16xf32>
    %166 = math.rsqrt %165 : vector<1x16xf32>
    %167 = arith.mulf %162, %166 : vector<1x16xf32>
    %168 = vector.broadcast %167 : vector<1x16xf32> to vector<64x16xf32>
    %169 = arith.mulf %150, %168 : vector<64x16xf32>
    %170 = vector.broadcast %163 : vector<1x16xf32> to vector<64x16xf32>
    %171 = arith.addf %169, %170 : vector<64x16xf32>
    %172 = vector.broadcast %167 : vector<1x16xf32> to vector<64x16xf32>
    %173 = arith.mulf %152, %172 : vector<64x16xf32>
    %174 = vector.broadcast %163 : vector<1x16xf32> to vector<64x16xf32>
    %175 = arith.addf %173, %174 : vector<64x16xf32>
    %cst_79 = arith.constant 2.000000e-01 : f32
    %176 = vector.broadcast %cst_79 : f32 to vector<64x16xf32>
    %177 = arith.mulf %176, %171 : vector<64x16xf32>
    %178 = arith.maximumf %171, %177 : vector<64x16xf32>
    %cst_80 = arith.constant 2.000000e-01 : f32
    %179 = vector.broadcast %cst_80 : f32 to vector<64x16xf32>
    %180 = arith.mulf %179, %175 : vector<64x16xf32>
    %181 = arith.maximumf %175, %180 : vector<64x16xf32>
    %182 = vector.shape_cast %178 : vector<64x16xf32> to vector<8x8x16xf32>
    %183 = vector.shape_cast %181 : vector<64x16xf32> to vector<8x8x16xf32>
    %184 = tpu.concatenate %182, %183 in 1 : vector<8x8x16xf32>, vector<8x8x16xf32> -> vector<8x16x16xf32>
    %185 = vector.shape_cast %184 : vector<8x16x16xf32> to vector<128x16xf32>
    %cst_81 = arith.constant 0.000000e+00 : f32
    %186 = vector.broadcast %cst_81 : f32 to vector<8x16xf32>
    %187 = vector.extract_strided_slice %185 {offsets = [0, 0], sizes = [120, 16], strides = [1, 1]} : vector<128x16xf32> to vector<120x16xf32>
    %188 = tpu.concatenate %186, %187 in 0 : vector<8x16xf32>, vector<120x16xf32> -> vector<128x16xf32>
    %cst_82 = arith.constant 0.000000e+00 : f32
    %189 = vector.broadcast %cst_82 : f32 to vector<8x16xf32>
    %190 = vector.extract_strided_slice %185 {offsets = [8, 0], sizes = [120, 16], strides = [1, 1]} : vector<128x16xf32> to vector<120x16xf32>
    %191 = tpu.concatenate %190, %189 in 0 : vector<120x16xf32>, vector<8x16xf32> -> vector<128x16xf32>
    %c0_83 = arith.constant 0 : index
    %c0_84 = arith.constant 0 : index
    %c0_85 = arith.constant 0 : index
    %192 = vector.load %arg5[%c0_83, %c0_84, %c0_85] : memref<4x16x8xf32, #tpu.memory_space<vmem>>, vector<1x16x8xf32>
    %193 = vector.shape_cast %192 : vector<1x16x8xf32> to vector<16x8xf32>
    %cst_86 = arith.constant dense<0.000000e+00> : vector<128x8xf32>
    %194 = tpu.matmul %185, %193, %cst_86 {dimension_numbers = #tpu.dot_dimension_numbers<[1], [0], [0], [1], [0, 0, 1, 1], [], []>} : vector<128x16xf32>, vector<16x8xf32>, vector<128x8xf32> -> vector<128x8xf32>
    %c1_87 = arith.constant 1 : index
    %c0_88 = arith.constant 0 : index
    %c0_89 = arith.constant 0 : index
    %195 = vector.load %arg5[%c1_87, %c0_88, %c0_89] : memref<4x16x8xf32, #tpu.memory_space<vmem>>, vector<1x16x8xf32>
    %196 = vector.shape_cast %195 : vector<1x16x8xf32> to vector<16x8xf32>
    %cst_90 = arith.constant dense<0.000000e+00> : vector<128x8xf32>
    %197 = tpu.matmul %188, %196, %cst_90 {dimension_numbers = #tpu.dot_dimension_numbers<[1], [0], [0], [1], [0, 0, 1, 1], [], []>} : vector<128x16xf32>, vector<16x8xf32>, vector<128x8xf32> -> vector<128x8xf32>
    %198 = arith.addf %194, %197 : vector<128x8xf32>
    %c2_91 = arith.constant 2 : index
    %c0_92 = arith.constant 0 : index
    %c0_93 = arith.constant 0 : index
    %199 = vector.load %arg5[%c2_91, %c0_92, %c0_93] : memref<4x16x8xf32, #tpu.memory_space<vmem>>, vector<1x16x8xf32>
    %200 = vector.shape_cast %199 : vector<1x16x8xf32> to vector<16x8xf32>
    %cst_94 = arith.constant dense<0.000000e+00> : vector<128x8xf32>
    %201 = tpu.matmul %185, %200, %cst_94 {dimension_numbers = #tpu.dot_dimension_numbers<[1], [0], [0], [1], [0, 0, 1, 1], [], []>} : vector<128x16xf32>, vector<16x8xf32>, vector<128x8xf32> -> vector<128x8xf32>
    %c3_95 = arith.constant 3 : index
    %c0_96 = arith.constant 0 : index
    %c0_97 = arith.constant 0 : index
    %202 = vector.load %arg5[%c3_95, %c0_96, %c0_97] : memref<4x16x8xf32, #tpu.memory_space<vmem>>, vector<1x16x8xf32>
    %203 = vector.shape_cast %202 : vector<1x16x8xf32> to vector<16x8xf32>
    %cst_98 = arith.constant dense<0.000000e+00> : vector<128x8xf32>
    %204 = tpu.matmul %191, %203, %cst_98 {dimension_numbers = #tpu.dot_dimension_numbers<[1], [0], [0], [1], [0, 0, 1, 1], [], []>} : vector<128x16xf32>, vector<16x8xf32>, vector<128x8xf32> -> vector<128x8xf32>
    %205 = arith.addf %201, %204 : vector<128x8xf32>
    %cst_99 = arith.constant dense<0.000000e+00> : vector<8xf32>
    %206 = vector.multi_reduction <add>, %198, %cst_99 [0] : vector<128x8xf32> to vector<8xf32>
    %207 = vector.shape_cast %206 : vector<8xf32> to vector<1x8xf32>
    %cst_100 = arith.constant dense<0.000000e+00> : vector<8xf32>
    %208 = vector.multi_reduction <add>, %205, %cst_100 [0] : vector<128x8xf32> to vector<8xf32>
    %209 = vector.shape_cast %208 : vector<8xf32> to vector<1x8xf32>
    %210 = arith.addf %207, %209 : vector<1x8xf32>
    %cst_101 = arith.constant 2.560000e+02 : f32
    %211 = vector.broadcast %cst_101 : f32 to vector<1x8xf32>
    %212 = arith.divf %210, %211 : vector<1x8xf32>
    %213 = vector.broadcast %212 : vector<1x8xf32> to vector<128x8xf32>
    %214 = arith.subf %198, %213 : vector<128x8xf32>
    %215 = vector.broadcast %212 : vector<1x8xf32> to vector<128x8xf32>
    %216 = arith.subf %205, %215 : vector<128x8xf32>
    %217 = arith.mulf %214, %214 : vector<128x8xf32>
    %cst_102 = arith.constant dense<0.000000e+00> : vector<8xf32>
    %218 = vector.multi_reduction <add>, %217, %cst_102 [0] : vector<128x8xf32> to vector<8xf32>
    %219 = vector.shape_cast %218 : vector<8xf32> to vector<1x8xf32>
    %220 = arith.mulf %216, %216 : vector<128x8xf32>
    %cst_103 = arith.constant dense<0.000000e+00> : vector<8xf32>
    %221 = vector.multi_reduction <add>, %220, %cst_103 [0] : vector<128x8xf32> to vector<8xf32>
    %222 = vector.shape_cast %221 : vector<8xf32> to vector<1x8xf32>
    %223 = arith.addf %219, %222 : vector<1x8xf32>
    %cst_104 = arith.constant 2.560000e+02 : f32
    %224 = vector.broadcast %cst_104 : f32 to vector<1x8xf32>
    %225 = arith.divf %223, %224 : vector<1x8xf32>
    %c8 = arith.constant 8 : index
    %c0_105 = arith.constant 0 : index
    %226 = vector.load %arg6[%c8, %c0_105] : memref<10x512xf32, #tpu.memory_space<vmem>>, vector<1x8xf32>
    %c9 = arith.constant 9 : index
    %c0_106 = arith.constant 0 : index
    %227 = vector.load %arg6[%c9, %c0_106] : memref<10x512xf32, #tpu.memory_space<vmem>>, vector<1x8xf32>
    %cst_107 = arith.constant 9.99999974E-6 : f32
    %228 = vector.broadcast %cst_107 : f32 to vector<1x8xf32>
    %229 = arith.addf %225, %228 : vector<1x8xf32>
    %230 = math.rsqrt %229 : vector<1x8xf32>
    %231 = arith.mulf %226, %230 : vector<1x8xf32>
    %232 = vector.broadcast %231 : vector<1x8xf32> to vector<128x8xf32>
    %233 = arith.mulf %214, %232 : vector<128x8xf32>
    %234 = vector.broadcast %227 : vector<1x8xf32> to vector<128x8xf32>
    %235 = arith.addf %233, %234 : vector<128x8xf32>
    %236 = vector.broadcast %231 : vector<1x8xf32> to vector<128x8xf32>
    %237 = arith.mulf %216, %236 : vector<128x8xf32>
    %238 = vector.broadcast %227 : vector<1x8xf32> to vector<128x8xf32>
    %239 = arith.addf %237, %238 : vector<128x8xf32>
    %cst_108 = arith.constant 2.000000e-01 : f32
    %240 = vector.broadcast %cst_108 : f32 to vector<128x8xf32>
    %241 = arith.mulf %240, %235 : vector<128x8xf32>
    %242 = arith.maximumf %235, %241 : vector<128x8xf32>
    %cst_109 = arith.constant 2.000000e-01 : f32
    %243 = vector.broadcast %cst_109 : f32 to vector<128x8xf32>
    %244 = arith.mulf %243, %239 : vector<128x8xf32>
    %245 = arith.maximumf %239, %244 : vector<128x8xf32>
    %c0_110 = arith.constant 0 : index
    %c0_111 = arith.constant 0 : index
    %246 = vector.load %arg7[%c0_110, %c0_111] : memref<3x8xf32, #tpu.memory_space<vmem>>, vector<3x8xf32>
    %c0_112 = arith.constant 0 : index
    %c0_113 = arith.constant 0 : index
    %247 = vector.load %arg8[%c0_112, %c0_113] : memref<3x1xf32, #tpu.memory_space<vmem>>, vector<3x1xf32>
    %cst_114 = arith.constant dense<0.000000e+00> : vector<3x128xf32>
    %248 = tpu.matmul %246, %242, %cst_114 {dimension_numbers = #tpu.dot_dimension_numbers<[1], [1], [0], [0], [0, 0, 1, 0], [], []>} : vector<3x8xf32>, vector<128x8xf32>, vector<3x128xf32> -> vector<3x128xf32>
    %249 = vector.broadcast %247 : vector<3x1xf32> to vector<3x128xf32>
    %250 = arith.addf %248, %249 : vector<3x128xf32>
    %cst_115 = arith.constant dense<0.000000e+00> : vector<3x128xf32>
    %251 = tpu.matmul %246, %245, %cst_115 {dimension_numbers = #tpu.dot_dimension_numbers<[1], [1], [0], [0], [0, 0, 1, 0], [], []>} : vector<3x8xf32>, vector<128x8xf32>, vector<3x128xf32> -> vector<3x128xf32>
    %252 = vector.broadcast %247 : vector<3x1xf32> to vector<3x128xf32>
    %253 = arith.addf %251, %252 : vector<3x128xf32>
    %254 = tpu.concatenate %250, %253 in 1 : vector<3x128xf32>, vector<3x128xf32> -> vector<3x256xf32>
    %255 = vector.extract_strided_slice %254 {offsets = [0, 0], sizes = [2, 256], strides = [1, 1]} : vector<3x256xf32> to vector<2x256xf32>
    %256 = math.tanh %255 : vector<2x256xf32>
    %c0_116 = arith.constant 0 : index
    %c0_117 = arith.constant 0 : index
    %257 = vector.load %arg9[%c0_116, %c0_117] : memref<3x256xf32, #tpu.memory_space<vmem>>, vector<2x256xf32>
    tpu.vector_store %arg9[%c0_116, %c0_117], %256 {strides = array<i32>} : memref<3x256xf32, #tpu.memory_space<vmem>>, vector<2x256xf32>,
    %258 = vector.extract_strided_slice %254 {offsets = [2, 0], sizes = [1, 256], strides = [1, 1]} : vector<3x256xf32> to vector<1x256xf32>
    %cst_118 = arith.constant 0.000000e+00 : f32
    %259 = vector.broadcast %cst_118 : f32 to vector<1x256xf32>
    %260 = arith.subf %259, %258 : vector<1x256xf32>
    %261 = math.exp %260 : vector<1x256xf32>
    %cst_119 = arith.constant 1.000000e+00 : f32
    %262 = vector.broadcast %cst_119 : f32 to vector<1x256xf32>
    %263 = arith.addf %262, %261 : vector<1x256xf32>
    %264 = tpu.reciprocal %263 : vector<1x256xf32> -> vector<1x256xf32>
    %c2_120 = arith.constant 2 : index
    %c0_121 = arith.constant 0 : index
    %265 = vector.load %arg9[%c2_120, %c0_121] : memref<3x256xf32, #tpu.memory_space<vmem>>, vector<1x256xf32>
    tpu.vector_store %arg9[%c2_120, %c0_121], %264 {strides = array<i32>} : memref<3x256xf32, #tpu.memory_space<vmem>>, vector<1x256xf32>,
    return
  }
}

</mosaic_0001>

<bundles_post_ra>
// kernel: tpu_custom_call.1
= control target key start
LH: loop header
LB: loop body
LE: loop exit
PB: predicated region body
PF: predicated region fallthrough
CT: control target
= control target key end

     0   :  { %6 = vsyncpa [#allocation3], 0  ;;  %s114_s0 = inlined_call_operand.hbm [shape: f32[24,128], index: 0, kind: input, shape index: {}]   ;;  %s115_s1 = inlined_call_operand.hbm [shape: f32[24,128], index: 1, kind: output, shape index: {}]  }
   0x1   :  { %7 = vsyncpa [#allocation4], 0  ;;  %s94_s6 = smov [#allocation2]  }
   0x2   :  { %s13_s7 = sshll.u32 %s94_s6, 4  ;;  %s14_s7 = int_to_ptr.vmem [resolvable:$true] %s13_s7 }
   0x3   :  { %s58_s8 = scalar_lea.vmem %s14_s7, 384  ;;  %p63_p1 = scmp.lt.s32.totalorder %s14_s7, %s14_s7 }
   0x4   :  { %p59_p0 = scmp.ne.s32.totalorder %s14_s7, %s58_s8  ;;  %p64_p2 = scmp.lt.s32.totalorder %s58_s8, %s58_s8 }
   0x6   :  { %p65_p3 = por %p64_p2, %p63_p1 }
   0x8   :  { %p66_p4 = pnand %p65_p3, %p59_p0 }
   0xa   :  { %69 = shalt.err (!%p66_p4)
}
   0xb   :  { %s95_s9 = smov 128   ;;  %s96_s10 = smov 8  }
   0xc   :  { %19 = dma.hbm_to_vmem [thread:$0]  %s114_s0, 384, %s14_s7, [#allocation3], %s95_s9, %s95_s9, %s96_s10  }
   0xd   :  { %90 = dma.done.wait [#allocation3], 384  }
   0xe   :  { %91 = vsyncadd [#allocation3], 4294966912  ;;  %s97_s13 = smov [#allocation5]   ;;  %v25_v0 = vld [vmem:[#allocation2 + $0x10] sm:$0xff]  ;;  %v23_v1 = vld [vmem:[#allocation2] sm:$0xff] }
   0xf   :  { %s34_s14 = sshll.u32 %s97_s13, 4  ;;  %v24_v2 = vld [vmem:[#allocation2 + $0x8] sm:$0xff]  ;;  %26 = vst [vmem:[#allocation5] sm:$0xff] %v25_v0  ;;  %27 = vst [vmem:[#allocation5 + $0x8] sm:$0xff] %v23_v1  ;;  %s35_s14 = int_to_ptr.vmem [resolvable:$true] %s34_s14 }
  0x10   :  { %28 = vst [vmem:[#allocation5 + $0x10] sm:$0xff] %v24_v2  ;;  %s70_s15 = scalar_lea.vmem %s35_s14, 384  ;;  %p75_p6 = scmp.lt.s32.totalorder %s35_s14, %s35_s14 }
  0x11   :  { %p71_p5 = scmp.ne.s32.totalorder %s35_s14, %s70_s15  ;;  %p76_p7 = scmp.lt.s32.totalorder %s70_s15, %s70_s15 }
  0x13   :  { %p77_p8 = por %p76_p7, %p75_p6 }
  0x15   :  { %p78_p9 = pnand %p77_p8, %p71_p5 }
  0x17   :  { %81 = shalt.err (!%p78_p9)
}
  0x18   :  { %40 = dma.vmem_to_hbm [thread:$0]  %s35_s14, 384, %s115_s1, [#allocation4], %s95_s9, %s95_s9, %s96_s10  }
  0x19   :  { %92 = dma.done.wait [#allocation4], 384  }
  0x1a   :  { %93 = vsyncadd [#allocation4], 4294966912 }
  0x1b   :  { %44 = vsyncpa [#allocation3], 1 }
  0x1c   :  { %45 = vsyncpa [#allocation4], 1 }

// kernel: _cpw_forward.1
= control target key start
LH: loop header
LB: loop body
LE: loop exit
PB: predicated region body
PF: predicated region fallthrough
CT: control target
= control target key end

     0   :  { %v3826_v0 = vmov 0.0   ;;  %vm3827_vm0 = vmmov 0   ;;  %vm35_vm1 = vcmask 130048   ;;  %vm109_vm2 = vcmask 523264   ;;  %s5229_s1 = inlined_call_operand.vmem [shape: f32[16,64], index: 1, kind: input, shape index: {}]   ;;  %s5230_s0 = inlined_call_operand.vmem [shape: f32[8,16], index: 0, kind: input, shape index: {}]   ;;  %s5231_s2 = inlined_call_operand.vmem [shape: f32[64,512], index: 2, kind: input, shape index: {}]   ;;  %s5232_s6 = inlined_call_operand.vmem [shape: f32[10,512], index: 6, kind: input, shape index: {}]   ;;  %s5233_s3 = inlined_call_operand.vmem [shape: f32[4,128,32], index: 3, kind: input, shape index: {}]   ;;  %s5234_s4 = inlined_call_operand.vmem [shape: f32[4,32,16], index: 4, kind: input, shape index: {}]   ;;  %s5235_s5 = inlined_call_operand.vmem [shape: f32[4,16,8], index: 5, kind: input, shape index: {}]   ;;  %s5236_s8 = inlined_call_operand.vmem [shape: f32[3,1], index: 8, kind: input, shape index: {}]   ;;  %s5237_s7 = inlined_call_operand.vmem [shape: f32[3,8], index: 7, kind: input, shape index: {}]   ;;  %s5238_s9 = inlined_call_operand.vmem [shape: f32[3,256], index: 9, kind: output, shape index: {}]  }
   0x1   :  { %3372 = vmatprep.subr.mxu0 %v3826_v0  ;;  %v34_v1 = vld [vmem:[%s5229_s1 + $0x8] sm:$0xff]  ;;  %v33_v2 = vld [vmem:[%s5229_s1] sm:$0xff]  ;;  %3376 = vmatprep.mubr.msk.f32.mxu0 %vm3827_vm0, %v3826_v0  ;;  %v169_v5 = vld [vmem:[%s5231_s2 + $0xf8] sm:$0xff]  ;;  %vm886_vm3 = vcmask 261120   ;;  %vm2294_vm4 = vcmask 64512  }
   0x2   :  { %3373 = vmatpush3.msra.mxu0 %v34_v1  ;;  %v32_v3 = vld [vmem:[%s5230_s0] sm:$0xff]  ;;  %237 = vmatprep.mubr.f32.mxu1 %v3826_v0  ;;  %v167_v4 = vld [vmem:[%s5231_s2 + $0xe8] sm:$0xff]  ;;  %v168_v7 = vld [vmem:[%s5231_s2 + $0xf0] sm:$0xff] }
   0x3   :  { %3374 = vmatprep.subr.mxu0 %v3826_v0  ;;  %189 = vmatprep.subr.mxu1 %v167_v4  ;;  %v166_v6 = vld [vmem:[%s5231_s2 + $0xe0] sm:$0xff]  ;;  %v163_v8 = vld [vmem:[%s5231_s2 + $0xc8] sm:$0xff]  ;;  %v165_v9 = vld [vmem:[%s5231_s2 + $0xd8] sm:$0xff] }
   0x4   :  { %3375 = vmatpush3.msra.mxu0 %v33_v2  ;;  %190 = vmatpush1.msra.mxu1 %v166_v6  ;;  %v162_v10 = vld [vmem:[%s5231_s2 + $0xc0] sm:$0xff]  ;;  %v164_v11 = vld [vmem:[%s5231_s2 + $0xd0] sm:$0xff]  ;;  %v159_v12 = vld [vmem:[%s5231_s2 + $0xa8] sm:$0xff] }
   0x5   :  { %3377 = vmatmul.mubr.msk.f32.vlgmr.msra.gmra.mxu0 %vm35_vm1, %v32_v3  ;;  %260 = vmatprep.subr.mxu0 %v169_v5  ;;  %v161_v13 = vld [vmem:[%s5231_s2 + $0xb8] sm:$0xff]  ;;  %v158_v14 = vld [vmem:[%s5231_s2 + $0xa0] sm:$0xff]  ;;  %v160_v15 = vld [vmem:[%s5231_s2 + $0xb0] sm:$0xff] }
   0x6   :  { %308 = vmatprep.mubr.f32.mxu0 %v3826_v0  ;;  %261 = vmatpush1.msra.mxu0 %v168_v7  ;;  %v155_v16 = vld [vmem:[%s5231_s2 + $0x88] sm:$0xff]  ;;  %v157_v17 = vld [vmem:[%s5231_s2 + $0x98] sm:$0xff]  ;;  %v154_v18 = vld [vmem:[%s5231_s2 + $0x80] sm:$0xff] }
   0x7   :  { %191 = vmatprep.subr.mxu1 %v163_v8  ;;  %262 = vmatprep.subr.mxu0 %v165_v9  ;;  %v156_v19 = vld [vmem:[%s5231_s2 + $0x90] sm:$0xff]  ;;  %v151_v20 = vld [vmem:[%s5231_s2 + $0x68] sm:$0xff]  ;;  %v153_v21 = vld [vmem:[%s5231_s2 + $0x78] sm:$0xff] }
   0x8   :  { %192 = vmatpush1.msra.mxu1 %v162_v10  ;;  %263 = vmatpush1.msra.mxu0 %v164_v11  ;;  %v150_v22 = vld [vmem:[%s5231_s2 + $0x60] sm:$0xff]  ;;  %v152_v23 = vld [vmem:[%s5231_s2 + $0x70] sm:$0xff]  ;;  %v147_v24 = vld [vmem:[%s5231_s2 + $0x48] sm:$0xff] }
   0x9   :  { %193 = vmatprep.subr.mxu1 %v159_v12  ;;  %264 = vmatprep.subr.mxu0 %v161_v13  ;;  %v149_v25 = vld [vmem:[%s5231_s2 + $0x58] sm:$0xff]  ;;  %v146_v26 = vld [vmem:[%s5231_s2 + $0x40] sm:$0xff]  ;;  %v148_v27 = vld [vmem:[%s5231_s2 + $0x50] sm:$0xff] }
   0xa   :  { %194 = vmatpush1.msra.mxu1 %v158_v14  ;;  %265 = vmatpush1.msra.mxu0 %v160_v15  ;;  %v143_v28 = vld [vmem:[%s5231_s2 + $0x28] sm:$0xff]  ;;  %v145_v29 = vld [vmem:[%s5231_s2 + $0x38] sm:$0xff]  ;;  %v142_v30 = vld [vmem:[%s5231_s2 + $0x20] sm:$0xff] }
   0xb   :  { %195 = vmatprep.subr.mxu1 %v155_v16  ;;  %266 = vmatprep.subr.mxu0 %v157_v17  ;;  %v144_v31 = vld [vmem:[%s5231_s2 + $0x30] sm:$0xff]  ;;  %v139_v32 = vld [vmem:[%s5231_s2 + $0x8] sm:$0xff]  ;;  %v141_v33 = vld [vmem:[%s5231_s2 + $0x18] sm:$0xff] }
   0xc   :  { %196 = vmatpush1.msra.mxu1 %v154_v18  ;;  %267 = vmatpush1.msra.mxu0 %v156_v19  ;;  %v138_v34 = vld [vmem:[%s5231_s2] sm:$0xff]  ;;  %v140_v35 = vld [vmem:[%s5231_s2 + $0x10] sm:$0xff]  ;;  %v2957_v2 = vld [vmem:[%s5233_s3 + $0xf8] sm:$0xff] }
   0xd   :  { %197 = vmatprep.subr.mxu1 %v151_v20  ;;  %268 = vmatprep.subr.mxu0 %v153_v21  ;;  %v129_v57 = vld [vmem:[%s5232_s6] ss:$0 sm:$0xff]  ;;  %v130_v60 = vld [vmem:[%s5232_s6 + $0x1] ss:$0 sm:$0xff]  ;;  %v494_v3 = vld [vmem:[%s5233_s3 + $0x78] sm:$0xff] }
   0xe   :  { %198 = vmatpush1.msra.mxu1 %v150_v22  ;;  %269 = vmatpush1.msra.mxu0 %v152_v23  ;;  %v2956_v4 = vld [vmem:[%s5233_s3 + $0xf0] sm:$0xff]  ;;  %v2955_v6 = vld [vmem:[%s5233_s3 + $0xe8] sm:$0xff]  ;;  %v2954_v8 = vld [vmem:[%s5233_s3 + $0xe0] sm:$0xff] }
   0xf   :  { %199 = vmatprep.subr.mxu1 %v147_v24  ;;  %270 = vmatprep.subr.mxu0 %v149_v25  ;;  %v493_v5 = vld [vmem:[%s5233_s3 + $0x70] sm:$0xff]  ;;  %v492_v7 = vld [vmem:[%s5233_s3 + $0x68] sm:$0xff]  ;;  %v491_v9 = vld [vmem:[%s5233_s3 + $0x60] sm:$0xff] }
  0x10   :  { %200 = vmatpush1.msra.mxu1 %v146_v26  ;;  %271 = vmatpush1.msra.mxu0 %v148_v27  ;;  %v2953_v10 = vld [vmem:[%s5233_s3 + $0xd8] sm:$0xff]  ;;  %v2952_v12 = vld [vmem:[%s5233_s3 + $0xd0] sm:$0xff]  ;;  %v2951_v14 = vld [vmem:[%s5233_s3 + $0xc8] sm:$0xff] }
  0x11   :  { %201 = vmatprep.subr.mxu1 %v143_v28  ;;  %272 = vmatprep.subr.mxu0 %v145_v29  ;;  %v490_v11 = vld [vmem:[%s5233_s3 + $0x58] sm:$0xff]  ;;  %v489_v13 = vld [vmem:[%s5233_s3 + $0x50] sm:$0xff]  ;;  %v488_v15 = vld [vmem:[%s5233_s3 + $0x48] sm:$0xff] }
  0x12   :  { %202 = vmatpush1.msra.mxu1 %v142_v30  ;;  %273 = vmatpush1.msra.mxu0 %v144_v31  ;;  %v2950_v16 = vld [vmem:[%s5233_s3 + $0xc0] sm:$0xff]  ;;  %v2949_v18 = vld [vmem:[%s5233_s3 + $0xb8] sm:$0xff]  ;;  %v2948_v20 = vld [vmem:[%s5233_s3 + $0xb0] sm:$0xff] }
  0x13   :  { %203 = vmatprep.subr.mxu1 %v139_v32  ;;  %274 = vmatprep.subr.mxu0 %v141_v33  ;;  %v487_v17 = vld [vmem:[%s5233_s3 + $0x40] sm:$0xff]  ;;  %v486_v19 = vld [vmem:[%s5233_s3 + $0x38] sm:$0xff]  ;;  %v485_v21 = vld [vmem:[%s5233_s3 + $0x30] sm:$0xff] }
  0x14   :  { %204 = vmatpush1.msra.mxu1 %v138_v34  ;;  %275 = vmatpush1.msra.mxu0 %v140_v35  ;;  %v2947_v22 = vld [vmem:[%s5233_s3 + $0xa8] sm:$0xff]  ;;  %v2946_v24 = vld [vmem:[%s5233_s3 + $0xa0] sm:$0xff]  ;;  %v2945_v26 = vld [vmem:[%s5233_s3 + $0x98] sm:$0xff] }
  0x15   :  { %3379 = vmatprep.subr.mxu1 %v2957_v2  ;;  %3417 = vmatprep.subr.mxu0 %v494_v3  ;;  %v484_v23 = vld [vmem:[%s5233_s3 + $0x28] sm:$0xff]  ;;  %v483_v25 = vld [vmem:[%s5233_s3 + $0x20] sm:$0xff]  ;;  %v482_v27 = vld [vmem:[%s5233_s3 + $0x18] sm:$0xff] }
  0x16   :  { %v2944_v28 = vld [vmem:[%s5233_s3 + $0x90] sm:$0xff]  ;;  %v2943_v30 = vld [vmem:[%s5233_s3 + $0x88] sm:$0xff]  ;;  %v2942_v32 = vld [vmem:[%s5233_s3 + $0x80] sm:$0xff] }
  0x17   :  { %v481_v29 = vld [vmem:[%s5233_s3 + $0x10] sm:$0xff]  ;;  %v480_v31 = vld [vmem:[%s5233_s3 + $0x8] sm:$0xff]  ;;  %v479_v33 = vld [vmem:[%s5233_s3] sm:$0xff] }
  0x18   :  { %v4102_v34 = vld [vmem:[%s5233_s3 + $0x1f8] sm:$0xff] }
  0x19   :  { %v4108_v35 = vld [vmem:[%s5233_s3 + $0x178] sm:$0xff] }
  0xc5   :  { %v105_v36 = vpop.f32.mrf.mxu0 }
  0xc6   :  { %v110_v37 = vsel %vm109_vm2, %v105_v36, 0.0 }
  0xc7   :  { %v111_v38 = vrot.slane %v110_v37, 4  ;;  %v3378_v39 = vpop.f32.mrf.mxu0 }
  0xc9   :  { %v112_v40 = vadd.f32 %v111_v38, %v110_v37 }
  0xcb   :  { %v113_v41 = vrot.slane %v112_v40, 2 }
  0xcd   :  { %v114_v42 = vadd.f32 %v113_v41, %v112_v40 }
  0xcf   :  { %v115_v43 = vrot.slane %v114_v42, 1 }
  0xd1   :  { %v116_v44 = vadd.f32 %v115_v43, %v114_v42 }
  0xd3   :  { %v118_v45 = vmul.f32 0.125, %v116_v44 }
  0xd5   :  { %v119_v46 = vsub.f32 %v105_v36, %v118_v45 }
  0xd7   :  { %v120_v47 = vmul.f32 %v119_v46, %v119_v46 }
  0xd9   :  { %v121_v48 = vsel %vm109_vm2, %v120_v47, 0.0 }
  0xda   :  { %v122_v49 = vrot.slane %v121_v48, 4 }
  0xdc   :  { %v123_v50 = vadd.f32 %v122_v49, %v121_v48 }
  0xde   :  { %v124_v51 = vrot.slane %v123_v50, 2 }
  0xe0   :  { %v125_v52 = vadd.f32 %v124_v51, %v123_v50 }
  0xe2   :  { %v126_v53 = vrot.slane %v125_v52, 1 }
  0xe4   :  { %v127_v54 = vadd.f32 %v126_v53, %v125_v52 }
  0xe6   :  { %v128_v55 = vmul.f32 0.125, %v127_v54 }
  0xe8   :  { %v131_v56 = vadd.f32 1e-05, %v128_v55 }
  0xea   :  { %3798 = vrsqrt.f32 %v131_v56 }
  0xf7   :  { %v3799_v58 = vpop.eup %3798 }
  0xf8   :  { %v133_v59 = vmul.f32 %v3799_v58, %v129_v57 }
  0xfa   :  { %v134_v61 = vmul.f32 %v133_v59, %v119_v46 }
  0xfc   :  { %v135_v62 = vadd.f32 %v134_v61, %v130_v60 }
  0xfe   :  { %v136_v63 = vmul.f32 0.2, %v135_v62 }
 0x100   :  { %v137_v1 = vmax.f32 %v135_v62, %v136_v63 }
 0x102   :  { %2938 = vmatmul.mubr.msk.f32.vlgmr.msra.gmra.mxu1 %vm109_vm2, %v137_v1  ;;  %2939 = vmatmul.mubr.msk.f32.vlgmr.msra.gmra.mxu0 %vm109_vm2, %v137_v1 }
 0x103   :  { %3411 = vmatprep.mubr.f32.mxu1 %v3826_v0  ;;  %3380 = vmatpush3.msra.mxu1 %v2957_v2 }
 0x104   :  { %3381 = vmatprep.subr.mxu1 %v2956_v4  ;;  %3418 = vmatpush3.msra.mxu0 %v494_v3 }
 0x105   :  { %3382 = vmatpush3.msra.mxu1 %v2956_v4  ;;  %3419 = vmatprep.subr.mxu0 %v493_v5 }
 0x106   :  { %3383 = vmatprep.subr.mxu1 %v2955_v6  ;;  %3420 = vmatpush3.msra.mxu0 %v493_v5 }
 0x107   :  { %3384 = vmatpush3.msra.mxu1 %v2955_v6  ;;  %3421 = vmatprep.subr.mxu0 %v492_v7 }
 0x108   :  { %3385 = vmatprep.subr.mxu1 %v2954_v8  ;;  %3422 = vmatpush3.msra.mxu0 %v492_v7 }
 0x109   :  { %3386 = vmatpush3.msra.mxu1 %v2954_v8  ;;  %3423 = vmatprep.subr.mxu0 %v491_v9 }
 0x10a   :  { %3387 = vmatprep.subr.mxu1 %v2953_v10  ;;  %3424 = vmatpush3.msra.mxu0 %v491_v9 }
 0x10b   :  { %3388 = vmatpush3.msra.mxu1 %v2953_v10  ;;  %3425 = vmatprep.subr.mxu0 %v490_v11 }
 0x10c   :  { %3389 = vmatprep.subr.mxu1 %v2952_v12  ;;  %3426 = vmatpush3.msra.mxu0 %v490_v11 }
 0x10d   :  { %3390 = vmatpush3.msra.mxu1 %v2952_v12  ;;  %3427 = vmatprep.subr.mxu0 %v489_v13 }
 0x10e   :  { %3391 = vmatprep.subr.mxu1 %v2951_v14  ;;  %3428 = vmatpush3.msra.mxu0 %v489_v13 }
 0x10f   :  { %3392 = vmatpush3.msra.mxu1 %v2951_v14  ;;  %3429 = vmatprep.subr.mxu0 %v488_v15 }
 0x110   :  { %3393 = vmatprep.subr.mxu1 %v2950_v16  ;;  %3430 = vmatpush3.msra.mxu0 %v488_v15 }
 0x111   :  { %3394 = vmatpush3.msra.mxu1 %v2950_v16  ;;  %3431 = vmatprep.subr.mxu0 %v487_v17 }
 0x112   :  { %3395 = vmatprep.subr.mxu1 %v2949_v18  ;;  %3432 = vmatpush3.msra.mxu0 %v487_v17 }
 0x113   :  { %3396 = vmatpush3.msra.mxu1 %v2949_v18  ;;  %3433 = vmatprep.subr.mxu0 %v486_v19 }
 0x114   :  { %3397 = vmatprep.subr.mxu1 %v2948_v20  ;;  %3434 = vmatpush3.msra.mxu0 %v486_v19 }
 0x115   :  { %3398 = vmatpush3.msra.mxu1 %v2948_v20  ;;  %3435 = vmatprep.subr.mxu0 %v485_v21 }
 0x116   :  { %3399 = vmatprep.subr.mxu1 %v2947_v22  ;;  %3436 = vmatpush3.msra.mxu0 %v485_v21 }
 0x117   :  { %3400 = vmatpush3.msra.mxu1 %v2947_v22  ;;  %3437 = vmatprep.subr.mxu0 %v484_v23 }
 0x118   :  { %3401 = vmatprep.subr.mxu1 %v2946_v24  ;;  %3438 = vmatpush3.msra.mxu0 %v484_v23 }
 0x119   :  { %3402 = vmatpush3.msra.mxu1 %v2946_v24  ;;  %3439 = vmatprep.subr.mxu0 %v483_v25 }
 0x11a   :  { %3403 = vmatprep.subr.mxu1 %v2945_v26  ;;  %3440 = vmatpush3.msra.mxu0 %v483_v25 }
 0x11b   :  { %3404 = vmatpush3.msra.mxu1 %v2945_v26  ;;  %3441 = vmatprep.subr.mxu0 %v482_v27 }
 0x11c   :  { %3405 = vmatprep.subr.mxu1 %v2944_v28  ;;  %3442 = vmatpush3.msra.mxu0 %v482_v27 }
 0x11d   :  { %3406 = vmatpush3.msra.mxu1 %v2944_v28  ;;  %3443 = vmatprep.subr.mxu0 %v481_v29 }
 0x11e   :  { %3407 = vmatprep.subr.mxu1 %v2943_v30  ;;  %3444 = vmatpush3.msra.mxu0 %v481_v29 }
 0x11f   :  { %3408 = vmatpush3.msra.mxu1 %v2943_v30  ;;  %3445 = vmatprep.subr.mxu0 %v480_v31 }
 0x120   :  { %3409 = vmatprep.subr.mxu1 %v2942_v32  ;;  %3446 = vmatpush3.msra.mxu0 %v480_v31 }
 0x121   :  { %3410 = vmatpush3.msra.mxu1 %v2942_v32  ;;  %3447 = vmatprep.subr.mxu0 %v479_v33 }
 0x122   :  { %3448 = vmatpush3.msra.mxu0 %v479_v33  ;;  %3455 = vmatprep.subr.mxu1 %v4102_v34 }
 0x123   :  { %3493 = vmatprep.subr.mxu0 %v4108_v35 }
 0x1c2   :  { %v239_v36 = vpop.f32.mrf.mxu1  ;;  %v310_v37 = vpop.f32.mrf.mxu0 }
 0x1c3   :  { %v315_v38 = vrot.slane %v239_v36, 4  ;;  %v327_v39 = vrot.slane %v310_v37, 4 }
 0x1c4   :  { %v241_v40 = vpop.f32.mrf.mxu1  ;;  %v312_v41 = vpop.f32.mrf.mxu0 }
 0x1c5   :  { %v316_v42 = vadd.f32 %v315_v38, %v239_v36  ;;  %v328_v43 = vadd.f32 %v327_v39, %v310_v37  ;;  %v321_v44 = vrot.slane %v241_v40, 4  ;;  %v333_v45 = vrot.slane %v312_v41, 4 }
 0x1c7   :  { %v317_v46 = vrot.slane %v316_v42, 2  ;;  %v329_v47 = vrot.slane %v328_v43, 2  ;;  %v322_v48 = vadd.f32 %v321_v44, %v241_v40  ;;  %v334_v49 = vadd.f32 %v333_v45, %v312_v41 }
 0x1c9   :  { %v318_v50 = vadd.f32 %v317_v46, %v316_v42  ;;  %v330_v51 = vadd.f32 %v329_v47, %v328_v43  ;;  %v323_v52 = vrot.slane %v322_v48, 2  ;;  %v335_v53 = vrot.slane %v334_v49, 2 }
 0x1ca   :  { %v3828_v47 = vmov 1966171168  }
 0x1cb   :  { %v319_v54 = vrot.slane %v318_v50, 1  ;;  %v331_v55 = vrot.slane %v330_v51, 1  ;;  %v324_v56 = vadd.f32 %v323_v52, %v322_v48  ;;  %v336_v57 = vadd.f32 %v335_v53, %v334_v49 }
 0x1cc   :  { %v398_v48 = vunpack.c.l.s4 %v3828_v47  ;;  %v400_v49 = vlaneseq  ;;  %v2980_v47 = vld [vmem:[%s5233_s3 + $0x1b0] sm:$0xff] }
 0x1cd   :  { %v320_v58 = vadd.f32 %v319_v54, %v318_v50  ;;  %v332_v59 = vadd.f32 %v331_v55, %v330_v51  ;;  %v325_v60 = vrot.slane %v324_v56, 1  ;;  %v337_v61 = vrot.slane %v336_v57, 1 }
 0x1ce   :  { %v399_v50 = vunpack.c.0.s8 %v398_v48  ;;  %v401_v51 = vshrl.u32 %v400_v49, 7  ;;  %v2964_v48 = vld [vmem:[%s5233_s3 + $0x130] sm:$0xff]  ;;  %vm2929_vm5 = vcmp.lt.s32.totalorder %v400_v49, 256 }
 0x1cf   :  { %v339_v62 = vmul.f32 0.125, %v320_v58  ;;  %v341_v63 = vmul.f32 0.125, %v332_v59  ;;  %v326_v1 = vadd.f32 %v325_v60, %v324_v56  ;;  %v338_v2 = vadd.f32 %v337_v61, %v336_v57 }
 0x1d0   :  { %v4128_v54 = vsub.s32 %v399_v50, %v401_v51  ;;  %v2979_v50 = vld [vmem:[%s5233_s3 + $0x1a8] sm:$0xff] }
 0x1d1   :  { %v4111_v3 = vsub.f32 %v239_v36, %v339_v62  ;;  %v4113_v4 = vsub.f32 %v310_v37, %v341_v63  ;;  %v340_v5 = vmul.f32 0.125, %v326_v1  ;;  %v342_v6 = vmul.f32 0.125, %v338_v2  ;;  %v2940_v62 = vld [vmem:[%s5232_s6 + $0x2] ss:$8 sm:$0xf] }
 0x1d2   :  { %v436_v63 = vsub.s32 3, %v401_v51  ;;  %v2941_v2 = vld [vmem:[%s5232_s6 + $0x3] ss:$8 sm:$0xf] }
 0x1d3   :  { %v347_v7 = vmul.f32 %v4111_v3, %v4111_v3  ;;  %v349_v8 = vmul.f32 %v4113_v4, %v4113_v4  ;;  %v4119_v9 = vsub.f32 %v241_v40, %v340_v5  ;;  %v4121_v10 = vsub.f32 %v312_v41, %v342_v6 }
 0x1d4   :  { %v424_v5 = vsub.s32 0, %v401_v51  ;;  %v428_v6 = vsub.s32 1, %v401_v51 }
 0x1d5   :  { %v351_v11 = vrot.slane %v347_v7, 4  ;;  %v363_v12 = vrot.slane %v349_v8, 4  ;;  %v348_v13 = vmul.f32 %v4119_v9, %v4119_v9  ;;  %v350_v14 = vmul.f32 %v4121_v10, %v4121_v10 }
 0x1d7   :  { %v352_v15 = vadd.f32 %v351_v11, %v347_v7  ;;  %v364_v16 = vadd.f32 %v363_v12, %v349_v8  ;;  %v357_v17 = vrot.slane %v348_v13, 4  ;;  %v369_v18 = vrot.slane %v350_v14, 4 }
 0x1d8   :  { %v432_v7 = vsub.s32 2, %v401_v51  ;;  %v450_v11 = vrot.slane %v2941_v2, %v424_v5  ;;  %v454_v12 = vrot.slane %v2941_v2, %v428_v6  ;;  %v2963_v51 = vld [vmem:[%s5233_s3 + $0x128] sm:$0xff] }
 0x1d9   :  { %v353_v19 = vrot.slane %v352_v15, 2  ;;  %v365_v20 = vrot.slane %v364_v16, 2  ;;  %v358_v21 = vadd.f32 %v357_v17, %v348_v13  ;;  %v370_v22 = vadd.f32 %v369_v18, %v350_v14 }
 0x1da   :  { %v458_v13 = vrot.slane %v2941_v2, %v432_v7 }
 0x1db   :  { %v354_v23 = vadd.f32 %v353_v19, %v352_v15  ;;  %v366_v24 = vadd.f32 %v365_v20, %v364_v16  ;;  %v359_v25 = vrot.slane %v358_v21, 2  ;;  %v371_v26 = vrot.slane %v370_v22, 2 }
 0x1dd   :  { %v355_v27 = vrot.slane %v354_v23, 1  ;;  %v367_v28 = vrot.slane %v366_v24, 1  ;;  %v360_v29 = vadd.f32 %v359_v25, %v358_v21  ;;  %v372_v30 = vadd.f32 %v371_v26, %v370_v22 }
 0x1de   :  { %v462_v22 = vrot.slane %v2941_v2, %v436_v63  ;;  %v2992_v2 = vld [vmem:[%s5234_s4 + $0x30] sm:$0xff] }
 0x1df   :  { %v356_v31 = vadd.f32 %v355_v27, %v354_v23  ;;  %v368_v32 = vadd.f32 %v367_v28, %v366_v24  ;;  %v361_v33 = vrot.slane %v360_v29, 1  ;;  %v373_v36 = vrot.slane %v372_v30, 1 }
 0x1e1   :  { %v375_v37 = vmul.f32 0.125, %v356_v31  ;;  %v377_v38 = vmul.f32 0.125, %v368_v32  ;;  %v362_v39 = vadd.f32 %v361_v33, %v360_v29  ;;  %v374_v40 = vadd.f32 %v373_v36, %v372_v30  ;;  %v2987_v32 = vld [vmem:[%s5233_s3 + $0x1e8] sm:$0xff]  ;;  %v2986_v36 = vld [vmem:[%s5233_s3 + $0x1e0] sm:$0xff] }
 0x1e3   :  { %v383_v41 = vadd.f32 1e-05, %v375_v37  ;;  %v385_v42 = vadd.f32 1e-05, %v377_v38  ;;  %v376_v43 = vmul.f32 0.125, %v362_v39  ;;  %v378_v44 = vmul.f32 0.125, %v374_v40 }
 0x1e4   :  { %v2985_v37 = vld [vmem:[%s5233_s3 + $0x1d8] sm:$0xff]  ;;  %v2984_v39 = vld [vmem:[%s5233_s3 + $0x1d0] sm:$0xff] }
 0x1e5   :  { %3800 = vrsqrt.f32 %v383_v41  ;;  %v384_v45 = vadd.f32 1e-05, %v376_v43  ;;  %v386_v46 = vadd.f32 1e-05, %v378_v44  ;;  %v2969_v38 = vld [vmem:[%s5233_s3 + $0x158] sm:$0xff]  ;;  %v2968_v40 = vld [vmem:[%s5233_s3 + $0x150] sm:$0xff] }
 0x1e6   :  { %3802 = vrsqrt.f32 %v385_v42  ;;  %v2983_v41 = vld [vmem:[%s5233_s3 + $0x1c8] sm:$0xff]  ;;  %v2982_v43 = vld [vmem:[%s5233_s3 + $0x1c0] sm:$0xff] }
 0x1e7   :  { %3804 = vrsqrt.f32 %v384_v45  ;;  %v2967_v42 = vld [vmem:[%s5233_s3 + $0x148] sm:$0xff]  ;;  %v2966_v44 = vld [vmem:[%s5233_s3 + $0x140] sm:$0xff]  ;;  %v2981_v45 = vld [vmem:[%s5233_s3 + $0x1b8] sm:$0xff] }
 0x1e8   :  { %3806 = vrsqrt.f32 %v386_v46  ;;  %v2965_v46 = vld [vmem:[%s5233_s3 + $0x138] sm:$0xff] }
 0x1f2   :  { %v3801_v52 = vpop.eup %3800 }
 0x1f3   :  { %v3803_v53 = vpop.eup %3802 }
 0x1f4   :  { %v3805_v55 = vpop.eup %3804 }
 0x1f5   :  { %v3807_v56 = vpop.eup %3806  ;;  %v395_v57 = vcombine.low %v3801_v52, %v3805_v55  ;;  %v2978_v52 = vld [vmem:[%s5233_s3 + $0x1a0] sm:$0xff]  ;;  %v2977_v55 = vld [vmem:[%s5233_s3 + $0x198] sm:$0xff] }
 0x1f6   :  { %v396_v58 = vcombine.low %v3803_v53, %v3807_v56  ;;  %v2962_v53 = vld [vmem:[%s5233_s3 + $0x120] sm:$0xff]  ;;  %v2961_v56 = vld [vmem:[%s5233_s3 + $0x118] sm:$0xff] }
 0x1f7   :  { %v403_v59 = vrot.slane %v395_v57, %v4128_v54  ;;  %v2976_v57 = vld [vmem:[%s5233_s3 + $0x190] sm:$0xff] }
 0x1f8   :  { %v410_v60 = vrot.slane %v396_v58, %v4128_v54  ;;  %v2960_v58 = vld [vmem:[%s5233_s3 + $0x110] sm:$0xff] }
 0x1fa   :  { %v411_v61 = vcombine.low %v403_v59, %v410_v60  ;;  %v2975_v59 = vld [vmem:[%s5233_s3 + $0x188] sm:$0xff] }
 0x1fb   :  { %v2959_v60 = vld [vmem:[%s5233_s3 + $0x108] sm:$0xff] }
 0x1fc   :  { %v418_v1 = vrot.slane %v411_v61, %v4128_v54  ;;  %v2974_v61 = vld [vmem:[%s5233_s3 + $0x180] sm:$0xff] }
 0x1fe   :  { %v420_v8 = vmul.f32 %v2940_v62, %v418_v1  ;;  %v2958_v62 = vld [vmem:[%s5233_s3 + $0x100] sm:$0xff]  ;;  %v1000_v1 = vld [vmem:[%s5234_s4 + $0x18] sm:$0xff] }
 0x200   :  { %v437_v14 = vrot.slane %v420_v8, %v436_v63  ;;  %v425_v15 = vrot.slane %v420_v8, %v424_v5  ;;  %v429_v16 = vrot.slane %v420_v8, %v428_v6  ;;  %v433_v17 = vrot.slane %v420_v8, %v432_v7  ;;  %v2993_v63 = vld [vmem:[%s5234_s4 + $0x38] sm:$0xff]  ;;  %v999_v5 = vld [vmem:[%s5234_s4 + $0x10] sm:$0xff]  ;;  %v2991_v6 = vld [vmem:[%s5234_s4 + $0x28] sm:$0xff] }
 0x201   :  { %v998_v7 = vld [vmem:[%s5234_s4 + $0x8] sm:$0xff]  ;;  %v2990_v8 = vld [vmem:[%s5234_s4 + $0x20] sm:$0xff] }
 0x202   :  { %v442_v18 = vmul.f32 %v425_v15, %v4111_v3  ;;  %v443_v19 = vmul.f32 %v429_v16, %v4119_v9  ;;  %v444_v20 = vmul.f32 %v433_v17, %v4113_v4  ;;  %v445_v21 = vmul.f32 %v437_v14, %v4121_v10  ;;  %v2988_v3 = vld [vmem:[%s5233_s3 + $0x1f0] sm:$0xff] }
 0x203   :  { %v2972_v9 = vld [vmem:[%s5233_s3 + $0x170] sm:$0xff] }
 0x204   :  { %v467_v23 = vadd.f32 %v450_v11, %v442_v18  ;;  %v468_v24 = vadd.f32 %v454_v12, %v443_v19  ;;  %v469_v25 = vadd.f32 %v458_v13, %v444_v20  ;;  %v470_v29 = vadd.f32 %v462_v22, %v445_v21  ;;  %v997_v11 = vld [vmem:[%s5234_s4] sm:$0xff]  ;;  %v4281_v12 = vld [vmem:[%s5234_s4 + $0x78] sm:$0xff] }
 0x205   :  { %v4286_v13 = vld [vmem:[%s5234_s4 + $0x58] sm:$0xff] }
 0x206   :  { %v471_v26 = vmul.f32 0.2, %v467_v23  ;;  %v472_v27 = vmul.f32 0.2, %v468_v24  ;;  %v473_v28 = vmul.f32 0.2, %v469_v25 }
 0x207   :  { %v474_v10 = vmul.f32 0.2, %v470_v29 }
 0x208   :  { %v475_v30 = vmax.f32 %v467_v23, %v471_v26  ;;  %v4143_v31 = vmax.f32 %v468_v24, %v472_v27  ;;  %v4150_v4 = vmax.f32 %v469_v25, %v473_v28 }
 0x209   :  { %v4164_v33 = vmax.f32 %v470_v29, %v474_v10 }
 0x20a   :  { %3412 = vmatmul.mubr.f32.vlgmr.msra.gmra.mxu1 %v475_v30  ;;  %3449 = vmatprep.mubr.f32.mxu0 %v475_v30 }
 0x20b   :  { %3456 = vmatpush3.msra.mxu1 %v4102_v34  ;;  %3414 = vmatprep.mubr.f32.mxu1 %v4143_v31  ;;  %v2971_v34 = vld [vmem:[%s5233_s3 + $0x168] sm:$0xff] }
 0x20c   :  { %3450 = vmatmul.mubr.f32.vlgmr.msra.gmra.mxu0 %v4143_v31  ;;  %3457 = vmatprep.subr.mxu1 %v2988_v3 }
 0x20d   :  { %3494 = vmatpush3.msra.mxu0 %v4108_v35  ;;  %3452 = vmatprep.mubr.f32.mxu0 %v4150_v4  ;;  %v2970_v35 = vld [vmem:[%s5233_s3 + $0x160] sm:$0xff] }
 0x20e   :  { %3458 = vmatpush3.msra.mxu1 %v2988_v3  ;;  %3495 = vmatprep.subr.mxu0 %v2972_v9 }
 0x20f   :  { %3459 = vmatprep.subr.mxu1 %v2987_v32  ;;  %3496 = vmatpush3.msra.mxu0 %v2972_v9 }
 0x210   :  { %3415 = vmatmul.mubr.f32.gmra.mxu1 %v4150_v4  ;;  %3497 = vmatprep.subr.mxu0 %v2971_v34 }
 0x211   :  { %3460 = vmatpush3.msra.mxu1 %v2987_v32  ;;  %3453 = vmatmul.mubr.f32.gmra.mxu0 %v4164_v33 }
 0x212   :  { %3461 = vmatprep.subr.mxu1 %v2986_v36  ;;  %3487 = vmatprep.mubr.f32.mxu1 %v4143_v31 }
 0x213   :  { %3498 = vmatpush3.msra.mxu0 %v2971_v34  ;;  %3462 = vmatpush3.msra.mxu1 %v2986_v36 }
 0x214   :  { %3499 = vmatprep.subr.mxu0 %v2970_v35  ;;  %3525 = vmatprep.mubr.f32.mxu0 %v475_v30 }
 0x215   :  { %3463 = vmatprep.subr.mxu1 %v2985_v37  ;;  %3500 = vmatpush3.msra.mxu0 %v2970_v35 }
 0x216   :  { %3464 = vmatpush3.msra.mxu1 %v2985_v37  ;;  %3501 = vmatprep.subr.mxu0 %v2969_v38 }
 0x217   :  { %3465 = vmatprep.subr.mxu1 %v2984_v39  ;;  %3502 = vmatpush3.msra.mxu0 %v2969_v38 }
 0x218   :  { %3466 = vmatpush3.msra.mxu1 %v2984_v39  ;;  %3503 = vmatprep.subr.mxu0 %v2968_v40 }
 0x219   :  { %3467 = vmatprep.subr.mxu1 %v2983_v41  ;;  %3504 = vmatpush3.msra.mxu0 %v2968_v40 }
 0x21a   :  { %3468 = vmatpush3.msra.mxu1 %v2983_v41  ;;  %3505 = vmatprep.subr.mxu0 %v2967_v42 }
 0x21b   :  { %3469 = vmatprep.subr.mxu1 %v2982_v43  ;;  %3506 = vmatpush3.msra.mxu0 %v2967_v42 }
 0x21c   :  { %3470 = vmatpush3.msra.mxu1 %v2982_v43  ;;  %3507 = vmatprep.subr.mxu0 %v2966_v44 }
 0x21d   :  { %3471 = vmatprep.subr.mxu1 %v2981_v45  ;;  %3508 = vmatpush3.msra.mxu0 %v2966_v44 }
 0x21e   :  { %3472 = vmatpush3.msra.mxu1 %v2981_v45  ;;  %3509 = vmatprep.subr.mxu0 %v2965_v46 }
 0x21f   :  { %3473 = vmatprep.subr.mxu1 %v2980_v47  ;;  %3510 = vmatpush3.msra.mxu0 %v2965_v46 }
 0x220   :  { %3474 = vmatpush3.msra.mxu1 %v2980_v47  ;;  %3511 = vmatprep.subr.mxu0 %v2964_v48 }
 0x221   :  { %3475 = vmatprep.subr.mxu1 %v2979_v50  ;;  %3512 = vmatpush3.msra.mxu0 %v2964_v48 }
 0x222   :  { %3476 = vmatpush3.msra.mxu1 %v2979_v50  ;;  %3513 = vmatprep.subr.mxu0 %v2963_v51 }
 0x223   :  { %3477 = vmatprep.subr.mxu1 %v2978_v52  ;;  %3514 = vmatpush3.msra.mxu0 %v2963_v51 }
 0x224   :  { %3478 = vmatpush3.msra.mxu1 %v2978_v52  ;;  %3515 = vmatprep.subr.mxu0 %v2962_v53 }
 0x225   :  { %3479 = vmatprep.subr.mxu1 %v2977_v55  ;;  %3516 = vmatpush3.msra.mxu0 %v2962_v53 }
 0x226   :  { %3480 = vmatpush3.msra.mxu1 %v2977_v55  ;;  %3517 = vmatprep.subr.mxu0 %v2961_v56 }
 0x227   :  { %3481 = vmatprep.subr.mxu1 %v2976_v57  ;;  %3518 = vmatpush3.msra.mxu0 %v2961_v56 }
 0x228   :  { %3482 = vmatpush3.msra.mxu1 %v2976_v57  ;;  %3519 = vmatprep.subr.mxu0 %v2960_v58 }
 0x229   :  { %3483 = vmatprep.subr.mxu1 %v2975_v59  ;;  %3520 = vmatpush3.msra.mxu0 %v2960_v58 }
 0x22a   :  { %3484 = vmatpush3.msra.mxu1 %v2975_v59  ;;  %3521 = vmatprep.subr.mxu0 %v2959_v60 }
 0x22b   :  { %3485 = vmatprep.subr.mxu1 %v2974_v61  ;;  %3522 = vmatpush3.msra.mxu0 %v2959_v60 }
 0x22c   :  { %3486 = vmatpush3.msra.mxu1 %v2974_v61  ;;  %3523 = vmatprep.subr.mxu0 %v2958_v62 }
 0x22d   :  { %3488 = vmatmul.mubr.f32.vlgmr.msra.gmra.mxu1 %v4150_v4  ;;  %3524 = vmatpush3.msra.mxu0 %v2958_v62 }
 0x22e   :  { %3490 = vmatprep.mubr.f32.mxu1 %v4164_v33  ;;  %3526 = vmatmul.mubr.f32.vlgmr.msra.gmra.mxu0 %v4143_v31 }
 0x22f   :  { %3528 = vmatprep.mubr.f32.mxu0 %v4150_v4  ;;  %3531 = vmatprep.subr.mxu1 %v2993_v63 }
 0x230   :  { %3551 = vmatprep.subr.mxu0 %v1000_v1  ;;  %3532 = vmatpush3.msra.mxu1 %v2993_v63 }
 0x231   :  { %3491 = vmatmul.mubr.f32.gmra.mxu1 %v3826_v0  ;;  %3552 = vmatpush3.msra.mxu0 %v1000_v1 }
 0x232   :  { %3529 = vmatmul.mubr.f32.gmra.mxu0 %v4164_v33  ;;  %3539 = vmatprep.mubr.f32.mxu1 %v3826_v0 }
 0x233   :  { %3533 = vmatprep.subr.mxu1 %v2992_v2  ;;  %3553 = vmatprep.subr.mxu0 %v999_v5 }
 0x234   :  { %3534 = vmatpush3.msra.mxu1 %v2992_v2  ;;  %3554 = vmatpush3.msra.mxu0 %v999_v5 }
 0x235   :  { %3535 = vmatprep.subr.mxu1 %v2991_v6  ;;  %3555 = vmatprep.subr.mxu0 %v998_v7 }
 0x236   :  { %3536 = vmatpush3.msra.mxu1 %v2991_v6  ;;  %3556 = vmatpush3.msra.mxu0 %v998_v7 }
 0x237   :  { %3537 = vmatprep.subr.mxu1 %v2990_v8  ;;  %3557 = vmatprep.subr.mxu0 %v997_v11 }
 0x238   :  { %3538 = vmatpush3.msra.mxu1 %v2990_v8  ;;  %3558 = vmatpush3.msra.mxu0 %v997_v11 }
 0x239   :  { %3571 = vmatprep.subr.mxu1 %v4281_v12  ;;  %3591 = vmatprep.subr.mxu0 %v4286_v13 }
 0x2ca   :  { %v3413_v14 = vpop.f32.mrf.mxu1 }
 0x2cc   :  { %v3451_v15 = vpop.f32.mrf.mxu0  ;;  %v578_v16 = vpop.f32.mrf.mxu1 }
 0x2cd   :  { %v669_v23 = vadd.f32 %v3451_v15, %v3413_v14 }
 0x2ce   :  { %v663_v17 = vpop.f32.mrf.mxu0 }
 0x2cf   :  { %v664_v22 = vadd.f32 %v663_v17, %v578_v16  ;;  %v888_v26 = vsel %vm886_vm3, %v669_v23, 0.0 }
 0x2d0   :  { %v3416_v18 = vpop.f32.mrf.mxu1 }
 0x2d1   :  { %v3454_v19 = vpop.f32.mrf.mxu0  ;;  %v887_v25 = vsel %vm886_vm3, %v664_v22, 0.0 }
 0x2d2   :  { %v588_v20 = vpop.f32.mrf.mxu1  ;;  %v889_v28 = vadd.f32 %v888_v26, %v887_v25  ;;  %v679_v29 = vadd.f32 %v3454_v19, %v3416_v18 }
 0x2d3   :  { %v673_v21 = vpop.f32.mrf.mxu0 }
 0x2d4   :  { %v674_v24 = vadd.f32 %v673_v21, %v588_v20  ;;  %v892_v31 = vsel %vm886_vm3, %v679_v29, 0.0 }
 0x2d6   :  { %v890_v27 = vsel %vm886_vm3, %v674_v24, 0.0 }
 0x2d7   :  { %v891_v30 = vadd.f32 %v890_v27, %v889_v28 }
 0x2d9   :  { %v893_v4 = vadd.f32 %v892_v31, %v891_v30 }
 0x2db   :  { %v894_v35 = vrot.slane %v893_v4, 4 }
 0x2dd   :  { %v895_v44 = vadd.f32 %v894_v35, %v893_v4 }
 0x2df   :  { %v896_v50 = vrot.slane %v895_v44, 2 }
 0x2e1   :  { %v897_v53 = vadd.f32 %v896_v50, %v895_v44 }
 0x2e3   :  { %v898_v57 = vrot.slane %v897_v53, 1 }
 0x2e5   :  { %v899_v60 = vadd.f32 %v898_v57, %v897_v53 }
 0x2ed   :  { %v3489_v3 = vpop.f32.mrf.mxu1 }
 0x2ee   :  { %v3527_v9 = vpop.f32.mrf.mxu0 }
 0x2ef   :  { %v782_v10 = vpop.f32.mrf.mxu1  ;;  %v873_v34 = vadd.f32 %v3527_v9, %v3489_v3 }
 0x2f0   :  { %v867_v32 = vpop.f32.mrf.mxu0 }
 0x2f1   :  { %v868_v33 = vadd.f32 %v867_v32, %v782_v10  ;;  %v3492_v36 = vpop.f32.mrf.mxu1  ;;  %v901_v41 = vsel %vm886_vm3, %v873_v34, 0.0 }
 0x2f2   :  { %v3530_v37 = vpop.f32.mrf.mxu0 }
 0x2f3   :  { %v900_v38 = vsel %vm886_vm3, %v868_v33, 0.0  ;;  %v792_v39 = vpop.f32.mrf.mxu1  ;;  %v883_v42 = vadd.f32 %v3530_v37, %v3492_v36 }
 0x2f4   :  { %v877_v40 = vpop.f32.mrf.mxu0  ;;  %v902_v45 = vadd.f32 %v901_v41, %v900_v38 }
 0x2f5   :  { %v878_v43 = vadd.f32 %v877_v40, %v792_v39  ;;  %v905_v48 = vsel %vm886_vm3, %v883_v42, 0.0 }
 0x2f7   :  { %v903_v46 = vsel %vm886_vm3, %v878_v43, 0.0 }
 0x2f8   :  { %v904_v47 = vadd.f32 %v903_v46, %v902_v45 }
 0x2fa   :  { %v906_v51 = vadd.f32 %v905_v48, %v904_v47  ;;  %v960_v48 = vld [vmem:[%s5232_s6 + $0x4] ss:$0 sm:$0xff] }
 0x2fc   :  { %v907_v52 = vrot.slane %v906_v51, 4 }
 0x2fe   :  { %v908_v55 = vadd.f32 %v907_v52, %v906_v51  ;;  %v961_v52 = vld [vmem:[%s5232_s6 + $0x5] ss:$0 sm:$0xff] }
 0x300   :  { %v909_v56 = vrot.slane %v908_v55, 2 }
 0x302   :  { %v910_v58 = vadd.f32 %v909_v56, %v908_v55 }
 0x304   :  { %v911_v59 = vrot.slane %v910_v58, 1 }
 0x306   :  { %v912_v61 = vadd.f32 %v911_v59, %v910_v58 }
 0x308   :  { %v913_v62 = vadd.f32 %v912_v61, %v899_v60 }
 0x30a   :  { %v915_v63 = vmul.f32 0.015625, %v913_v62 }
 0x30c   :  { %v916_v1 = vsub.f32 %v664_v22, %v915_v63  ;;  %v917_v2 = vsub.f32 %v669_v23, %v915_v63  ;;  %v918_v5 = vsub.f32 %v674_v24, %v915_v63  ;;  %v919_v6 = vsub.f32 %v679_v29, %v915_v63 }
 0x30d   :  { %v920_v7 = vsub.f32 %v868_v33, %v915_v63  ;;  %v921_v8 = vsub.f32 %v873_v34, %v915_v63  ;;  %v922_v11 = vsub.f32 %v878_v43, %v915_v63  ;;  %v923_v14 = vsub.f32 %v883_v42, %v915_v63 }
 0x30e   :  { %v924_v15 = vmul.f32 %v916_v1, %v916_v1  ;;  %v925_v16 = vmul.f32 %v917_v2, %v917_v2  ;;  %v926_v17 = vmul.f32 %v918_v5, %v918_v5  ;;  %v927_v21 = vmul.f32 %v919_v6, %v919_v6 }
 0x30f   :  { %v941_v18 = vmul.f32 %v920_v7, %v920_v7  ;;  %v942_v19 = vmul.f32 %v921_v8, %v921_v8  ;;  %v943_v20 = vmul.f32 %v922_v11, %v922_v11  ;;  %v944_v22 = vmul.f32 %v923_v14, %v923_v14 }
 0x310   :  { %v928_v25 = vsel %vm886_vm3, %v924_v15, 0.0  ;;  %v929_v26 = vsel %vm886_vm3, %v925_v16, 0.0  ;;  %v931_v28 = vsel %vm886_vm3, %v926_v17, 0.0  ;;  %v933_v3 = vsel %vm886_vm3, %v927_v21, 0.0 }
 0x311   :  { %v930_v27 = vadd.f32 %v929_v26, %v928_v25  ;;  %v945_v23 = vsel %vm886_vm3, %v941_v18, 0.0  ;;  %v946_v24 = vsel %vm886_vm3, %v942_v19, 0.0  ;;  %v948_v31 = vsel %vm886_vm3, %v943_v20, 0.0 }
 0x312   :  { %v947_v29 = vadd.f32 %v946_v24, %v945_v23  ;;  %v950_v10 = vsel %vm886_vm3, %v944_v22, 0.0  ;;  %v3014_v22 = vld [vmem:[%s5234_s4 + $0x68] sm:$0xff] }
 0x313   :  { %v932_v30 = vadd.f32 %v931_v28, %v930_v27 }
 0x314   :  { %v949_v4 = vadd.f32 %v948_v31, %v947_v29  ;;  %v3013_v29 = vld [vmem:[%s5234_s4 + $0x60] sm:$0xff] }
 0x315   :  { %v934_v9 = vadd.f32 %v933_v3, %v932_v30  ;;  %v3009_v31 = vld [vmem:[%s5234_s4 + $0x40] sm:$0xff] }
 0x316   :  { %v951_v32 = vadd.f32 %v950_v10, %v949_v4  ;;  %v3033_v4 = vld [vmem:[%s5235_s5 + $0x18] sm:$0xff]  ;;  %v3032_v10 = vld [vmem:[%s5235_s5 + $0x10] sm:$0xff] }
 0x317   :  { %v935_v34 = vrot.slane %v934_v9, 4 }
 0x318   :  { %v952_v33 = vrot.slane %v951_v32, 4 }
 0x319   :  { %v936_v36 = vadd.f32 %v935_v34, %v934_v9  ;;  %v1654_v9 = vld [vmem:[%s5235_s5 + $0x8] sm:$0xff]  ;;  %v4379_v34 = vld [vmem:[%s5235_s5 + $0x38] sm:$0xff] }
 0x31a   :  { %v953_v35 = vadd.f32 %v952_v33, %v951_v32  ;;  %v1653_v32 = vld [vmem:[%s5235_s5] sm:$0xff]  ;;  %v4384_v33 = vld [vmem:[%s5235_s5 + $0x28] sm:$0xff] }
 0x31b   :  { %v937_v37 = vrot.slane %v936_v36, 2 }
 0x31c   :  { %v954_v38 = vrot.slane %v953_v35, 2 }
 0x31d   :  { %v938_v39 = vadd.f32 %v937_v37, %v936_v36 }
 0x31e   :  { %v955_v40 = vadd.f32 %v954_v38, %v953_v35 }
 0x31f   :  { %v939_v41 = vrot.slane %v938_v39, 1 }
 0x320   :  { %v956_v42 = vrot.slane %v955_v40, 1 }
 0x321   :  { %v940_v43 = vadd.f32 %v939_v41, %v938_v39 }
 0x322   :  { %v957_v44 = vadd.f32 %v956_v42, %v955_v40 }
 0x324   :  { %v958_v45 = vadd.f32 %v957_v44, %v940_v43 }
 0x326   :  { %v959_v46 = vmul.f32 0.015625, %v958_v45 }
 0x328   :  { %v962_v47 = vadd.f32 1e-05, %v959_v46 }
 0x32a   :  { %3808 = vrsqrt.f32 %v962_v47 }
 0x337   :  { %v3809_v50 = vpop.eup %3808 }
 0x338   :  { %v964_v51 = vmul.f32 %v3809_v50, %v960_v48 }
 0x33a   :  { %v965_v53 = vmul.f32 %v964_v51, %v916_v1  ;;  %v973_v55 = vmul.f32 %v964_v51, %v920_v7  ;;  %v966_v56 = vmul.f32 %v964_v51, %v917_v2  ;;  %v974_v57 = vmul.f32 %v964_v51, %v921_v8  ;;  %v3015_v1 = vld [vmem:[%s5234_s4 + $0x70] sm:$0xff] }
 0x33b   :  { %v967_v58 = vmul.f32 %v964_v51, %v918_v5  ;;  %v975_v62 = vmul.f32 %v964_v51, %v922_v11  ;;  %v968_v19 = vmul.f32 %v964_v51, %v919_v6  ;;  %v976_v27 = vmul.f32 %v964_v51, %v923_v14  ;;  %v3011_v5 = vld [vmem:[%s5234_s4 + $0x50] sm:$0xff] }
 0x33c   :  { %v969_v59 = vadd.f32 %v965_v53, %v961_v52  ;;  %v977_v60 = vadd.f32 %v973_v55, %v961_v52  ;;  %v970_v61 = vadd.f32 %v966_v56, %v961_v52  ;;  %v978_v63 = vadd.f32 %v974_v57, %v961_v52 }
 0x33d   :  { %v971_v18 = vadd.f32 %v967_v58, %v961_v52  ;;  %v979_v25 = vadd.f32 %v975_v62, %v961_v52  ;;  %v972_v7 = vadd.f32 %v968_v19, %v961_v52  ;;  %v980_v14 = vadd.f32 %v976_v27, %v961_v52 }
 0x33e   :  { %v981_v15 = vmul.f32 0.2, %v969_v59  ;;  %v989_v16 = vmul.f32 0.2, %v977_v60  ;;  %v982_v17 = vmul.f32 0.2, %v970_v61 }
 0x33f   :  { %v990_v26 = vmul.f32 0.2, %v978_v63  ;;  %v983_v6 = vmul.f32 0.2, %v971_v18  ;;  %v991_v8 = vmul.f32 0.2, %v979_v25 }
 0x340   :  { %v985_v20 = vmax.f32 %v969_v59, %v981_v15  ;;  %v993_v21 = vmax.f32 %v977_v60, %v989_v16  ;;  %v986_v2 = vmax.f32 %v970_v61, %v982_v17  ;;  %v984_v23 = vmul.f32 0.2, %v972_v7 }
 0x341   :  { %v994_v11 = vmax.f32 %v978_v63, %v990_v26  ;;  %v995_v24 = vmax.f32 %v979_v25, %v991_v8  ;;  %v992_v28 = vmul.f32 0.2, %v980_v14 }
 0x342   :  { %3540 = vmatmul.mubr.msk.f32.vlgmr.msra.gmra.mxu1 %vm886_vm3, %v985_v20  ;;  %3559 = vmatprep.mubr.msk.f32.mxu0 %vm886_vm3, %v985_v20  ;;  %v988_v30 = vmax.f32 %v972_v7, %v984_v23 }
 0x343   :  { %3542 = vmatprep.mubr.msk.f32.mxu1 %vm886_vm3, %v993_v21  ;;  %3560 = vmatmul.mubr.msk.f32.vlgmr.msra.gmra.mxu0 %vm886_vm3, %v993_v21  ;;  %v996_v3 = vmax.f32 %v980_v14, %v992_v28 }
 0x344   :  { %3572 = vmatpush3.msra.mxu1 %v4281_v12  ;;  %3592 = vmatpush3.msra.mxu0 %v4286_v13  ;;  %v987_v12 = vmax.f32 %v971_v18, %v983_v6  ;;  %v3010_v13 = vld [vmem:[%s5234_s4 + $0x48] sm:$0xff] }
 0x345   :  { %3562 = vmatprep.mubr.msk.f32.mxu0 %vm886_vm3, %v986_v2  ;;  %3573 = vmatprep.subr.mxu1 %v3015_v1 }
 0x346   :  { %3543 = vmatmul.mubr.msk.f32.gmra.mxu1 %vm886_vm3, %v986_v2  ;;  %3593 = vmatprep.subr.mxu0 %v3011_v5 }
 0x347   :  { %3545 = vmatprep.mubr.msk.f32.mxu1 %vm886_vm3, %v994_v11  ;;  %3563 = vmatmul.mubr.msk.f32.gmra.mxu0 %vm886_vm3, %v994_v11 }
 0x348   :  { %3574 = vmatpush3.msra.mxu1 %v3015_v1  ;;  %3594 = vmatpush3.msra.mxu0 %v3011_v5 }
 0x349   :  { %3565 = vmatprep.mubr.msk.f32.mxu0 %vm886_vm3, %v987_v12  ;;  %3575 = vmatprep.subr.mxu1 %v3014_v22 }
 0x34a   :  { %3546 = vmatmul.mubr.msk.f32.gmra.mxu1 %vm886_vm3, %v987_v12  ;;  %3595 = vmatprep.subr.mxu0 %v3010_v13 }
 0x34b   :  { %3548 = vmatprep.mubr.msk.f32.mxu1 %vm886_vm3, %v995_v24  ;;  %3566 = vmatmul.mubr.msk.f32.gmra.mxu0 %vm886_vm3, %v995_v24 }
 0x34c   :  { %3576 = vmatpush3.msra.mxu1 %v3014_v22  ;;  %3596 = vmatpush3.msra.mxu0 %v3010_v13 }
 0x34d   :  { %3568 = vmatprep.mubr.msk.f32.mxu0 %vm886_vm3, %v988_v30  ;;  %3577 = vmatprep.subr.mxu1 %v3013_v29 }
 0x34e   :  { %3549 = vmatmul.mubr.msk.f32.gmra.mxu1 %vm886_vm3, %v988_v30  ;;  %3597 = vmatprep.subr.mxu0 %v3009_v31 }
 0x34f   :  { %3569 = vmatmul.mubr.msk.f32.gmra.mxu0 %vm886_vm3, %v996_v3  ;;  %3578 = vmatpush3.msra.mxu1 %v3013_v29 }
 0x350   :  { %3579 = vmatprep.mubr.msk.f32.mxu1 %vm886_vm3, %v993_v21  ;;  %3598 = vmatpush3.msra.mxu0 %v3009_v31 }
 0x351   :  { %3599 = vmatprep.mubr.msk.f32.mxu0 %vm886_vm3, %v985_v20  ;;  %3611 = vmatprep.subr.mxu1 %v3033_v4 }
 0x352   :  { %3580 = vmatmul.mubr.msk.f32.vlgmr.msra.gmra.mxu1 %vm886_vm3, %v986_v2  ;;  %3639 = vmatprep.subr.mxu0 %v1654_v9 }
 0x353   :  { %3582 = vmatprep.mubr.msk.f32.mxu1 %vm886_vm3, %v994_v11  ;;  %3600 = vmatmul.mubr.msk.f32.vlgmr.msra.gmra.mxu0 %vm886_vm3, %v993_v21 }
 0x354   :  { %3602 = vmatprep.mubr.msk.f32.mxu0 %vm886_vm3, %v986_v2  ;;  %3612 = vmatpush3.msra.mxu1 %v3033_v4 }
 0x355   :  { %3640 = vmatpush3.msra.mxu0 %v1654_v9  ;;  %3613 = vmatprep.subr.mxu1 %v3032_v10 }
 0x356   :  { %3583 = vmatmul.mubr.msk.f32.gmra.mxu1 %vm886_vm3, %v987_v12  ;;  %3641 = vmatprep.subr.mxu0 %v1653_v32 }
 0x357   :  { %3585 = vmatprep.mubr.msk.f32.mxu1 %vm886_vm3, %v995_v24  ;;  %3603 = vmatmul.mubr.msk.f32.gmra.mxu0 %vm886_vm3, %v994_v11 }
 0x358   :  { %3605 = vmatprep.mubr.msk.f32.mxu0 %vm886_vm3, %v987_v12  ;;  %3614 = vmatpush3.msra.mxu1 %v3032_v10 }
 0x359   :  { %3642 = vmatpush3.msra.mxu0 %v1653_v32  ;;  %3667 = vmatprep.subr.mxu1 %v4379_v34 }
 0x35a   :  { %3586 = vmatmul.mubr.msk.f32.gmra.mxu1 %vm886_vm3, %v988_v30  ;;  %3695 = vmatprep.subr.mxu0 %v4384_v33 }
 0x35b   :  { %3588 = vmatprep.mubr.msk.f32.mxu1 %vm886_vm3, %v996_v3  ;;  %3606 = vmatmul.mubr.msk.f32.gmra.mxu0 %vm886_vm3, %v995_v24 }
 0x35c   :  { %3608 = vmatprep.mubr.msk.f32.mxu0 %vm886_vm3, %v988_v30 }
 0x35e   :  { %3589 = vmatmul.mubr.f32.gmra.mxu1 %v3826_v0 }
 0x35f   :  { %3609 = vmatmul.mubr.msk.f32.gmra.mxu0 %vm886_vm3, %v996_v3  ;;  %3615 = vmatprep.mubr.f32.mxu1 %v3826_v0 }
 0x402   :  { %v3541_v36 = vpop.f32.mrf.mxu1 }
 0x403   :  { %v3561_v35 = vpop.f32.mrf.mxu0 }
 0x404   :  { %v1096_v37 = vpop.f32.mrf.mxu1  ;;  %v4388_v39 = vadd.f32 %v3561_v35, %v3541_v36 }
 0x405   :  { %v1204_v38 = vpop.f32.mrf.mxu0 }
 0x406   :  { %v4390_v40 = vadd.f32 %v1204_v38, %v1096_v37  ;;  %v3544_v41 = vpop.f32.mrf.mxu1  ;;  %v1464_v46 = vsel %vm35_vm1, %v4388_v39, 0.0 }
 0x407   :  { %v3564_v42 = vpop.f32.mrf.mxu0 }
 0x408   :  { %v1463_v43 = vsel %vm35_vm1, %v4390_v40, 0.0  ;;  %v1106_v44 = vpop.f32.mrf.mxu1  ;;  %v4396_v47 = vadd.f32 %v3564_v42, %v3544_v41 }
 0x409   :  { %v1214_v45 = vpop.f32.mrf.mxu0  ;;  %v1465_v51 = vadd.f32 %v1464_v46, %v1463_v43 }
 0x40a   :  { %v4398_v48 = vadd.f32 %v1214_v45, %v1106_v44  ;;  %v3547_v50 = vpop.f32.mrf.mxu1  ;;  %v1468_v58 = vsel %vm35_vm1, %v4396_v47, 0.0 }
 0x40b   :  { %v3567_v52 = vpop.f32.mrf.mxu0 }
 0x40c   :  { %v1466_v53 = vsel %vm35_vm1, %v4398_v48, 0.0  ;;  %v1116_v55 = vpop.f32.mrf.mxu1  ;;  %v4404_v59 = vadd.f32 %v3567_v52, %v3547_v50 }
 0x40d   :  { %v1467_v56 = vadd.f32 %v1466_v53, %v1465_v51  ;;  %v1224_v57 = vpop.f32.mrf.mxu0 }
 0x40e   :  { %v4406_v60 = vadd.f32 %v1224_v57, %v1116_v55  ;;  %v3550_v61 = vpop.f32.mrf.mxu1  ;;  %v1472_v19 = vsel %vm35_vm1, %v4404_v59, 0.0 }
 0x40f   :  { %v1469_v62 = vadd.f32 %v1468_v58, %v1467_v56  ;;  %v3570_v63 = vpop.f32.mrf.mxu0 }
 0x410   :  { %v1470_v15 = vsel %vm35_vm1, %v4406_v60, 0.0  ;;  %v1126_v16 = vpop.f32.mrf.mxu1  ;;  %v4416_v5 = vadd.f32 %v3570_v63, %v3550_v61 }
 0x411   :  { %v1471_v17 = vadd.f32 %v1470_v15, %v1469_v62  ;;  %v1234_v18 = vpop.f32.mrf.mxu0 }
 0x412   :  { %v4412_v20 = vadd.f32 %v1234_v18, %v1126_v16  ;;  %v3581_v21 = vpop.f32.mrf.mxu1  ;;  %v1476_v23 = vsel %vm35_vm1, %v4416_v5, 0.0 }
 0x413   :  { %v1473_v25 = vadd.f32 %v1472_v19, %v1471_v17  ;;  %v3601_v26 = vpop.f32.mrf.mxu0 }
 0x414   :  { %v1474_v27 = vsel %vm35_vm1, %v4412_v20, 0.0  ;;  %v1319_v1 = vpop.f32.mrf.mxu1  ;;  %v1430_v6 = vadd.f32 %v3601_v26, %v3581_v21 }
 0x415   :  { %v1424_v2 = vpop.f32.mrf.mxu0  ;;  %v1475_v11 = vadd.f32 %v1474_v27, %v1473_v25 }
 0x416   :  { %v1425_v7 = vadd.f32 %v1424_v2, %v1319_v1  ;;  %v3584_v8 = vpop.f32.mrf.mxu1  ;;  %v1485_v24 = vsel %vm35_vm1, %v1430_v6, 0.0 }
 0x417   :  { %v3604_v14 = vpop.f32.mrf.mxu0  ;;  %v1477_v31 = vadd.f32 %v1476_v23, %v1475_v11 }
 0x418   :  { %v1484_v22 = vsel %vm35_vm1, %v1425_v7, 0.0  ;;  %v1329_v12 = vpop.f32.mrf.mxu1  ;;  %v1440_v28 = vadd.f32 %v3604_v14, %v3584_v8 }
 0x419   :  { %v1434_v13 = vpop.f32.mrf.mxu0  ;;  %v1486_v3 = vadd.f32 %v1485_v24, %v1484_v22  ;;  %v1478_v42 = vrot.slane %v1477_v31, 4 }
 0x41a   :  { %v1435_v29 = vadd.f32 %v1434_v13, %v1329_v12  ;;  %v3587_v30 = vpop.f32.mrf.mxu1  ;;  %v1489_v35 = vsel %vm35_vm1, %v1440_v28, 0.0 }
 0x41b   :  { %v3607_v4 = vpop.f32.mrf.mxu0  ;;  %v1479_v56 = vadd.f32 %v1478_v42, %v1477_v31 }
 0x41c   :  { %v1487_v9 = vsel %vm35_vm1, %v1435_v29, 0.0  ;;  %v1339_v10 = vpop.f32.mrf.mxu1  ;;  %v1450_v37 = vadd.f32 %v3607_v4, %v3587_v30 }
 0x41d   :  { %v1488_v32 = vadd.f32 %v1487_v9, %v1486_v3  ;;  %v1444_v36 = vpop.f32.mrf.mxu0  ;;  %v1480_v63 = vrot.slane %v1479_v56, 2 }
 0x41e   :  { %v1445_v38 = vadd.f32 %v1444_v36, %v1339_v10  ;;  %v3590_v41 = vpop.f32.mrf.mxu1  ;;  %v1493_v52 = vsel %vm35_vm1, %v1450_v37, 0.0 }
 0x41f   :  { %v1490_v43 = vadd.f32 %v1489_v35, %v1488_v32  ;;  %v3610_v44 = vpop.f32.mrf.mxu0  ;;  %v1481_v17 = vadd.f32 %v1480_v63, %v1479_v56 }
 0x420   :  { %v1491_v45 = vsel %vm35_vm1, %v1445_v38, 0.0  ;;  %v1349_v46 = vpop.f32.mrf.mxu1  ;;  %v1460_v53 = vadd.f32 %v3610_v44, %v3590_v41 }
 0x421   :  { %v1492_v50 = vadd.f32 %v1491_v45, %v1490_v43  ;;  %v1454_v51 = vpop.f32.mrf.mxu0  ;;  %v1482_v21 = vrot.slane %v1481_v17, 1 }
 0x422   :  { %v1455_v55 = vadd.f32 %v1454_v51, %v1349_v46  ;;  %v1497_v62 = vsel %vm35_vm1, %v1460_v53, 0.0 }
 0x423   :  { %v1494_v57 = vadd.f32 %v1493_v52, %v1492_v50  ;;  %v1483_v27 = vadd.f32 %v1482_v21, %v1481_v17 }
 0x424   :  { %v1495_v58 = vsel %vm35_vm1, %v1455_v55, 0.0 }
 0x425   :  { %v1496_v61 = vadd.f32 %v1495_v58, %v1494_v57 }
 0x427   :  { %v1498_v15 = vadd.f32 %v1497_v62, %v1496_v61 }
 0x429   :  { %v1499_v16 = vrot.slane %v1498_v15, 4 }
 0x42b   :  { %v1500_v18 = vadd.f32 %v1499_v16, %v1498_v15 }
 0x42d   :  { %v1501_v19 = vrot.slane %v1500_v18, 2 }
 0x42f   :  { %v1502_v25 = vadd.f32 %v1501_v19, %v1500_v18 }
 0x431   :  { %v1503_v26 = vrot.slane %v1502_v25, 1 }
 0x433   :  { %v1504_v1 = vadd.f32 %v1503_v26, %v1502_v25 }
 0x435   :  { %v1505_v2 = vadd.f32 %v1504_v1, %v1483_v27 }
 0x437   :  { %v1507_v8 = vmul.f32 0.0078125, %v1505_v2 }
 0x439   :  { %v4429_v11 = vsub.f32 %v4390_v40, %v1507_v8  ;;  %v4432_v14 = vsub.f32 %v4388_v39, %v1507_v8  ;;  %v4435_v22 = vsub.f32 %v4398_v48, %v1507_v8  ;;  %v4438_v12 = vsub.f32 %v4396_v47, %v1507_v8 }
 0x43a   :  { %v4441_v13 = vsub.f32 %v4406_v60, %v1507_v8  ;;  %v4443_v23 = vsub.f32 %v1425_v7, %v1507_v8  ;;  %v4445_v24 = vsub.f32 %v1430_v6, %v1507_v8  ;;  %v4447_v30 = vsub.f32 %v1435_v29, %v1507_v8 }
 0x43b   :  { %v1524_v40 = vmul.f32 %v4429_v11, %v4429_v11  ;;  %v1525_v39 = vmul.f32 %v4432_v14, %v4432_v14  ;;  %v1526_v48 = vmul.f32 %v4435_v22, %v4435_v22  ;;  %v4456_v47 = vsub.f32 %v4404_v59, %v1507_v8 }
 0x43c   :  { %v4458_v60 = vsub.f32 %v1440_v28, %v1507_v8  ;;  %v1527_v6 = vmul.f32 %v4438_v12, %v4438_v12  ;;  %v4465_v31 = vsub.f32 %v4412_v20, %v1507_v8  ;;  %v4467_v3 = vsub.f32 %v1445_v38, %v1507_v8 }
 0x43d   :  { %v1532_v7 = vsel %vm35_vm1, %v1524_v40, 0.0  ;;  %v1533_v29 = vsel %vm35_vm1, %v1525_v39, 0.0  ;;  %v1528_v4 = vmul.f32 %v4441_v13, %v4441_v13  ;;  %v1535_v59 = vsel %vm35_vm1, %v1526_v48, 0.0 }
 0x43e   :  { %v1534_v9 = vadd.f32 %v1533_v29, %v1532_v7  ;;  %v1553_v28 = vmul.f32 %v4443_v23, %v4443_v23  ;;  %v1554_v10 = vmul.f32 %v4445_v24, %v4445_v24  ;;  %v1555_v32 = vmul.f32 %v4447_v30, %v4447_v30 }
 0x43f   :  { %v4479_v20 = vsub.f32 %v4416_v5, %v1507_v8  ;;  %v4481_v36 = vsub.f32 %v1450_v37, %v1507_v8  ;;  %v1529_v35 = vmul.f32 %v4456_v47, %v4456_v47  ;;  %v1537_v41 = vsel %vm35_vm1, %v1527_v6, 0.0 }
 0x440   :  { %v1536_v38 = vadd.f32 %v1535_v59, %v1534_v9  ;;  %v1556_v42 = vmul.f32 %v4458_v60, %v4458_v60  ;;  %v1561_v43 = vsel %vm35_vm1, %v1553_v28, 0.0  ;;  %v1562_v44 = vsel %vm35_vm1, %v1554_v10, 0.0 }
 0x441   :  { %v4490_v45 = vsub.f32 %v1455_v55, %v1507_v8  ;;  %v1563_v5 = vadd.f32 %v1562_v44, %v1561_v43  ;;  %v1530_v37 = vmul.f32 %v4465_v31, %v4465_v31  ;;  %v1539_v50 = vsel %vm35_vm1, %v1528_v4, 0.0 }
 0x442   :  { %v1538_v46 = vadd.f32 %v1537_v41, %v1536_v38  ;;  %v1557_v51 = vmul.f32 %v4467_v3, %v4467_v3  ;;  %v1564_v52 = vsel %vm35_vm1, %v1555_v32, 0.0  ;;  %v4498_v56 = vsub.f32 %v1460_v53, %v1507_v8 }
 0x443   :  { %v1565_v58 = vadd.f32 %v1564_v52, %v1563_v5  ;;  %v1531_v55 = vmul.f32 %v4479_v20, %v4479_v20  ;;  %v1541_v61 = vsel %vm35_vm1, %v1529_v35, 0.0  ;;  %v1558_v62 = vmul.f32 %v4481_v36, %v4481_v36 }
 0x444   :  { %v1540_v57 = vadd.f32 %v1539_v50, %v1538_v46  ;;  %v1566_v63 = vsel %vm35_vm1, %v1556_v42, 0.0  ;;  %v1543_v17 = vsel %vm35_vm1, %v1530_v37, 0.0  ;;  %v1559_v53 = vmul.f32 %v4490_v45, %v4490_v45  ;;  %v1584_v46 = vld [vmem:[%s5232_s6 + $0x6] ss:$0 sm:$0xff]  ;;  %v4524_v50 = vld [vmem:[%s5232_s6 + $0x7] ss:$0 sm:$0xff] }
 0x445   :  { %v1567_v16 = vadd.f32 %v1566_v63, %v1565_v58  ;;  %v1568_v18 = vsel %vm35_vm1, %v1557_v51, 0.0  ;;  %v1545_v25 = vsel %vm35_vm1, %v1531_v55, 0.0  ;;  %v1560_v26 = vmul.f32 %v4498_v56, %v4498_v56 }
 0x446   :  { %v1542_v15 = vadd.f32 %v1541_v61, %v1540_v57  ;;  %v1570_v27 = vsel %vm35_vm1, %v1558_v62, 0.0  ;;  %v1572_v8 = vsel %vm35_vm1, %v1559_v53, 0.0 }
 0x447   :  { %v1569_v21 = vadd.f32 %v1568_v18, %v1567_v16  ;;  %v1574_v48 = vsel %vm35_vm1, %v1560_v26, 0.0  ;;  %v3067_v26 = vld [vmem:[%s5235_s5 + $0x30] sm:$0xff] }
 0x448   :  { %v1544_v19 = vadd.f32 %v1543_v17, %v1542_v15 }
 0x449   :  { %v1571_v2 = vadd.f32 %v1570_v27, %v1569_v21  ;;  %v3065_v27 = vld [vmem:[%s5235_s5 + $0x20] sm:$0xff] }
 0x44a   :  { %v1546_v1 = vadd.f32 %v1545_v25, %v1544_v19 }
 0x44b   :  { %v1573_v39 = vadd.f32 %v1572_v8, %v1571_v2 }
 0x44c   :  { %v1547_v40 = vrot.slane %v1546_v1, 4 }
 0x44d   :  { %v1575_v7 = vadd.f32 %v1574_v48, %v1573_v39 }
 0x44e   :  { %v1548_v6 = vadd.f32 %v1547_v40, %v1546_v1 }
 0x44f   :  { %v1576_v4 = vrot.slane %v1575_v7, 4 }
 0x450   :  { %v1549_v29 = vrot.slane %v1548_v6, 2 }
 0x451   :  { %v1577_v59 = vadd.f32 %v1576_v4, %v1575_v7 }
 0x452   :  { %v1550_v9 = vadd.f32 %v1549_v29, %v1548_v6 }
 0x453   :  { %v1578_v10 = vrot.slane %v1577_v59, 2 }
 0x454   :  { %v1551_v28 = vrot.slane %v1550_v9, 1 }
 0x455   :  { %v1579_v32 = vadd.f32 %v1578_v10, %v1577_v59 }
 0x456   :  { %v1552_v35 = vadd.f32 %v1551_v28, %v1550_v9 }
 0x457   :  { %v1580_v38 = vrot.slane %v1579_v32, 1 }
 0x459   :  { %v1581_v41 = vadd.f32 %v1580_v38, %v1579_v32 }
 0x45b   :  { %v1582_v42 = vadd.f32 %v1581_v41, %v1552_v35 }
 0x45d   :  { %v1583_v43 = vmul.f32 0.0078125, %v1582_v42 }
 0x45f   :  { %v1586_v44 = vadd.f32 1e-05, %v1583_v43 }
 0x461   :  { %3810 = vrsqrt.f32 %v1586_v44 }
 0x46e   :  { %v3811_v5 = vpop.eup %3810 }
 0x46f   :  { %v4519_v37 = vmul.f32 %v3811_v5, %v1584_v46 }
 0x471   :  { %v1589_v51 = vmul.f32 %v4519_v37, %v4429_v11  ;;  %v1605_v52 = vmul.f32 %v4519_v37, %v4443_v23  ;;  %v1590_v57 = vmul.f32 %v4519_v37, %v4432_v14  ;;  %v1606_v58 = vmul.f32 %v4519_v37, %v4445_v24 }
 0x472   :  { %v1591_v55 = vmul.f32 %v4519_v37, %v4435_v22  ;;  %v1607_v23 = vmul.f32 %v4519_v37, %v4447_v30  ;;  %v1592_v24 = vmul.f32 %v4519_v37, %v4438_v12  ;;  %v1608_v21 = vmul.f32 %v4519_v37, %v4458_v60 }
 0x473   :  { %v1597_v61 = vadd.f32 %v1589_v51, %v4524_v50  ;;  %v1613_v62 = vadd.f32 %v1605_v52, %v4524_v50  ;;  %v1598_v63 = vadd.f32 %v1590_v57, %v4524_v50  ;;  %v1614_v11 = vadd.f32 %v1606_v58, %v4524_v50 }
 0x474   :  { %v1599_v14 = vadd.f32 %v1591_v55, %v4524_v50  ;;  %v1615_v19 = vadd.f32 %v1607_v23, %v4524_v50  ;;  %v1600_v12 = vadd.f32 %v1592_v24, %v4524_v50  ;;  %v1593_v25 = vmul.f32 %v4519_v37, %v4441_v13 }
 0x475   :  { %v1621_v15 = vmul.f32 0.2, %v1597_v61  ;;  %v1637_v16 = vmul.f32 0.2, %v1613_v62  ;;  %v1622_v17 = vmul.f32 0.2, %v1598_v63  ;;  %v1616_v2 = vadd.f32 %v1608_v21, %v4524_v50 }
 0x476   :  { %v1638_v18 = vmul.f32 0.2, %v1614_v11  ;;  %v1623_v30 = vmul.f32 0.2, %v1599_v14  ;;  %v1639_v1 = vmul.f32 0.2, %v1615_v19  ;;  %v1609_v8 = vmul.f32 %v4519_v37, %v4467_v3 }
 0x477   :  { %v4545_v22 = vmax.f32 %v1597_v61, %v1621_v15  ;;  %v4547_v53 = vmax.f32 %v1613_v62, %v1637_v16  ;;  %v4566_v60 = vmax.f32 %v1598_v63, %v1622_v17  ;;  %v1594_v39 = vmul.f32 %v4519_v37, %v4456_v47 }
 0x478   :  { %v4575_v13 = vmax.f32 %v1614_v11, %v1638_v18  ;;  %v4582_v40 = vmax.f32 %v1599_v14, %v1623_v30  ;;  %v4593_v3 = vmax.f32 %v1615_v19, %v1639_v1  ;;  %v1640_v48 = vmul.f32 0.2, %v1616_v2 }
 0x479   :  { %3616 = vmatmul.mubr.msk.f32.vlgmr.msra.gmra.mxu1 %vm35_vm1, %v4545_v22  ;;  %3643 = vmatprep.mubr.msk.f32.mxu0 %vm35_vm1, %v4545_v22  ;;  %v1617_v6 = vadd.f32 %v1609_v8, %v4524_v50  ;;  %v1610_v7 = vmul.f32 %v4519_v37, %v4481_v36  ;;  %v1602_v4 = vadd.f32 %v1594_v39, %v4524_v50 }
 0x47a   :  { %3618 = vmatprep.mubr.msk.f32.mxu1 %vm35_vm1, %v4547_v53  ;;  %3644 = vmatmul.mubr.msk.f32.vlgmr.msra.gmra.mxu0 %vm35_vm1, %v4547_v53  ;;  %v1595_v9 = vmul.f32 %v4519_v37, %v4465_v31  ;;  %v1611_v36 = vmul.f32 %v4519_v37, %v4490_v45  ;;  %v1648_v59 = vmax.f32 %v1616_v2, %v1640_v48 }
 0x47b   :  { %3668 = vmatpush3.msra.mxu1 %v4379_v34  ;;  %3696 = vmatpush3.msra.mxu0 %v4384_v33  ;;  %v1624_v34 = vmul.f32 0.2, %v1600_v12  ;;  %v1601_v33 = vadd.f32 %v1593_v25, %v4524_v50  ;;  %v1641_v28 = vmul.f32 0.2, %v1617_v6  ;;  %v1618_v10 = vadd.f32 %v1610_v7, %v4524_v50 }
 0x47c   :  { %3646 = vmatprep.mubr.msk.f32.mxu0 %vm35_vm1, %v4566_v60  ;;  %3669 = vmatprep.subr.mxu1 %v3067_v26  ;;  %v1626_v32 = vmul.f32 0.2, %v1602_v4  ;;  %v1603_v35 = vadd.f32 %v1595_v9, %v4524_v50  ;;  %v1596_v38 = vmul.f32 %v4519_v37, %v4479_v20  ;;  %v1619_v45 = vadd.f32 %v1611_v36, %v4524_v50 }
 0x47d   :  { %3619 = vmatmul.mubr.msk.f32.gmra.mxu1 %vm35_vm1, %v4566_v60  ;;  %3697 = vmatprep.subr.mxu0 %v3065_v27  ;;  %v4601_v47 = vmax.f32 %v1600_v12, %v1624_v34  ;;  %v1625_v29 = vmul.f32 0.2, %v1601_v33  ;;  %v1649_v41 = vmax.f32 %v1617_v6, %v1641_v28  ;;  %v1642_v42 = vmul.f32 0.2, %v1618_v10 }
 0x47e   :  { %3621 = vmatprep.mubr.msk.f32.mxu1 %vm35_vm1, %v4575_v13  ;;  %3647 = vmatmul.mubr.msk.f32.gmra.mxu0 %vm35_vm1, %v4575_v13  ;;  %v1612_v43 = vmul.f32 %v4519_v37, %v4498_v56  ;;  %v1634_v44 = vmax.f32 %v1602_v4, %v1626_v32  ;;  %v1627_v46 = vmul.f32 0.2, %v1603_v35  ;;  %v1604_v5 = vadd.f32 %v1596_v38, %v4524_v50 }
 0x47f   :  { %3649 = vmatprep.mubr.msk.f32.mxu0 %vm35_vm1, %v4582_v40  ;;  %3670 = vmatpush3.msra.mxu1 %v3067_v26  ;;  %v1633_v31 = vmax.f32 %v1601_v33, %v1625_v29  ;;  %v1643_v20 = vmul.f32 0.2, %v1619_v45  ;;  %v1650_v51 = vmax.f32 %v1618_v10, %v1642_v42 }
 0x480   :  { %3698 = vmatpush3.msra.mxu0 %v3065_v27  ;;  %3723 = vmatprep.subr.mxu1 %v3826_v0  ;;  %v1620_v52 = vadd.f32 %v1612_v43, %v4524_v50  ;;  %v1635_v57 = vmax.f32 %v1603_v35, %v1627_v46  ;;  %v1628_v56 = vmul.f32 0.2, %v1604_v5 }
 0x481   :  { %3622 = vmatmul.mubr.msk.f32.gmra.mxu1 %vm35_vm1, %v4582_v40  ;;  %3758 = vmatprep.subr.mxu0 %v3826_v0  ;;  %v1651_v37 = vmax.f32 %v1619_v45, %v1643_v20 }
 0x482   :  { %3624 = vmatprep.mubr.msk.f32.mxu1 %vm35_vm1, %v4593_v3  ;;  %3650 = vmatmul.mubr.msk.f32.gmra.mxu0 %vm35_vm1, %v4593_v3  ;;  %v1644_v58 = vmul.f32 0.2, %v1620_v52  ;;  %v1636_v55 = vmax.f32 %v1604_v5, %v1628_v56 }
 0x483   :  { %3652 = vmatprep.mubr.msk.f32.mxu0 %vm35_vm1, %v4601_v47 }
 0x484   :  { %v1652_v50 = vmax.f32 %v1620_v52, %v1644_v58 }
 0x485   :  { %3625 = vmatmul.mubr.msk.f32.gmra.mxu1 %vm35_vm1, %v4601_v47 }
 0x486   :  { %3627 = vmatprep.mubr.msk.f32.mxu1 %vm35_vm1, %v1648_v59  ;;  %3653 = vmatmul.mubr.msk.f32.gmra.mxu0 %vm35_vm1, %v1648_v59 }
 0x487   :  { %3655 = vmatprep.mubr.msk.f32.mxu0 %vm35_vm1, %v1633_v31 }
 0x489   :  { %3628 = vmatmul.mubr.msk.f32.gmra.mxu1 %vm35_vm1, %v1633_v31 }
 0x48a   :  { %3630 = vmatprep.mubr.msk.f32.mxu1 %vm35_vm1, %v1649_v41  ;;  %3656 = vmatmul.mubr.msk.f32.gmra.mxu0 %vm35_vm1, %v1649_v41 }
 0x48b   :  { %3658 = vmatprep.mubr.msk.f32.mxu0 %vm35_vm1, %v1634_v44 }
 0x48d   :  { %3631 = vmatmul.mubr.msk.f32.gmra.mxu1 %vm35_vm1, %v1634_v44 }
 0x48e   :  { %3633 = vmatprep.mubr.msk.f32.mxu1 %vm35_vm1, %v1650_v51  ;;  %3659 = vmatmul.mubr.msk.f32.gmra.mxu0 %vm35_vm1, %v1650_v51 }
 0x48f   :  { %3661 = vmatprep.mubr.msk.f32.mxu0 %vm35_vm1, %v1635_v57 }
 0x491   :  { %3634 = vmatmul.mubr.msk.f32.gmra.mxu1 %vm35_vm1, %v1635_v57 }
 0x492   :  { %3636 = vmatprep.mubr.msk.f32.mxu1 %vm35_vm1, %v1651_v37  ;;  %3662 = vmatmul.mubr.msk.f32.gmra.mxu0 %vm35_vm1, %v1651_v37 }
 0x493   :  { %3664 = vmatprep.mubr.msk.f32.mxu0 %vm35_vm1, %v1636_v55 }
 0x495   :  { %3637 = vmatmul.mubr.msk.f32.gmra.mxu1 %vm35_vm1, %v1636_v55 }
 0x496   :  { %3665 = vmatmul.mubr.msk.f32.gmra.mxu0 %vm35_vm1, %v1652_v50  ;;  %3671 = vmatprep.mubr.msk.f32.mxu1 %vm35_vm1, %v4547_v53 }
 0x497   :  { %3699 = vmatprep.mubr.msk.f32.mxu0 %vm35_vm1, %v4545_v22 }
 0x499   :  { %3672 = vmatmul.mubr.msk.f32.vlgmr.msra.gmra.mxu1 %vm35_vm1, %v4566_v60 }
 0x49a   :  { %3674 = vmatprep.mubr.msk.f32.mxu1 %vm35_vm1, %v4575_v13  ;;  %3700 = vmatmul.mubr.msk.f32.vlgmr.msra.gmra.mxu0 %vm35_vm1, %v4547_v53 }
 0x49b   :  { %3702 = vmatprep.mubr.msk.f32.mxu0 %vm35_vm1, %v4566_v60 }
 0x49d   :  { %3675 = vmatmul.mubr.msk.f32.gmra.mxu1 %vm35_vm1, %v4582_v40 }
 0x49e   :  { %3677 = vmatprep.mubr.msk.f32.mxu1 %vm35_vm1, %v4593_v3  ;;  %3703 = vmatmul.mubr.msk.f32.gmra.mxu0 %vm35_vm1, %v4575_v13 }
 0x49f   :  { %3705 = vmatprep.mubr.msk.f32.mxu0 %vm35_vm1, %v4582_v40 }
 0x4a1   :  { %3678 = vmatmul.mubr.msk.f32.gmra.mxu1 %vm35_vm1, %v4601_v47 }
 0x4a2   :  { %3680 = vmatprep.mubr.msk.f32.mxu1 %vm35_vm1, %v1648_v59  ;;  %3706 = vmatmul.mubr.msk.f32.gmra.mxu0 %vm35_vm1, %v4593_v3 }
 0x4a3   :  { %3708 = vmatprep.mubr.msk.f32.mxu0 %vm35_vm1, %v4601_v47 }
 0x4a5   :  { %3681 = vmatmul.mubr.msk.f32.gmra.mxu1 %vm35_vm1, %v1633_v31 }
 0x4a6   :  { %3683 = vmatprep.mubr.msk.f32.mxu1 %vm35_vm1, %v1649_v41  ;;  %3709 = vmatmul.mubr.msk.f32.gmra.mxu0 %vm35_vm1, %v1648_v59 }
 0x4a7   :  { %3711 = vmatprep.mubr.msk.f32.mxu0 %vm35_vm1, %v1633_v31 }
 0x4a9   :  { %3684 = vmatmul.mubr.msk.f32.gmra.mxu1 %vm35_vm1, %v1634_v44 }
 0x4aa   :  { %3686 = vmatprep.mubr.msk.f32.mxu1 %vm35_vm1, %v1650_v51  ;;  %3712 = vmatmul.mubr.msk.f32.gmra.mxu0 %vm35_vm1, %v1649_v41 }
 0x4ab   :  { %3714 = vmatprep.mubr.msk.f32.mxu0 %vm35_vm1, %v1634_v44 }
 0x4ad   :  { %3687 = vmatmul.mubr.msk.f32.gmra.mxu1 %vm35_vm1, %v1635_v57 }
 0x4ae   :  { %3689 = vmatprep.mubr.msk.f32.mxu1 %vm35_vm1, %v1651_v37  ;;  %3715 = vmatmul.mubr.msk.f32.gmra.mxu0 %vm35_vm1, %v1650_v51 }
 0x4af   :  { %3717 = vmatprep.mubr.msk.f32.mxu0 %vm35_vm1, %v1635_v57 }
 0x4b1   :  { %3690 = vmatmul.mubr.msk.f32.gmra.mxu1 %vm35_vm1, %v1636_v55 }
 0x4b2   :  { %3692 = vmatprep.mubr.msk.f32.mxu1 %vm35_vm1, %v1652_v50  ;;  %3718 = vmatmul.mubr.msk.f32.gmra.mxu0 %vm35_vm1, %v1651_v37 }
 0x4b3   :  { %3720 = vmatprep.mubr.msk.f32.mxu0 %vm35_vm1, %v1636_v55 }
 0x4b5   :  { %3693 = vmatmul.mubr.f32.gmra.mxu1 %v3826_v0 }
 0x4b6   :  { %3721 = vmatmul.mubr.msk.f32.gmra.mxu0 %vm35_vm1, %v1652_v50  ;;  %3755 = vmatprep.mubr.msk.f32.mxu1 %vm3827_vm0, %v3826_v0 }
 0x4b7   :  { %3790 = vmatprep.mubr.msk.f32.mxu0 %vm3827_vm0, %v3826_v0 }
 0x539   :  { %v3617_v61 = vpop.f32.mrf.mxu1 }
 0x53a   :  { %v3645_v62 = vpop.f32.mrf.mxu0 }
 0x53b   :  { %v1771_v63 = vpop.f32.mrf.mxu1  ;;  %v4692_v23 = vadd.f32 %v3645_v62, %v3617_v61 }
 0x53c   :  { %v1919_v11 = vpop.f32.mrf.mxu0 }
 0x53d   :  { %v4694_v15 = vadd.f32 %v1919_v11, %v1771_v63  ;;  %v3620_v16 = vpop.f32.mrf.mxu1  ;;  %v2296_v53 = vsel %vm2294_vm4, %v4692_v23, 0.0 }
 0x53e   :  { %v3648_v14 = vpop.f32.mrf.mxu0 }
 0x53f   :  { %v2295_v24 = vsel %vm2294_vm4, %v4694_v15, 0.0  ;;  %v1781_v17 = vpop.f32.mrf.mxu1  ;;  %v4700_v18 = vadd.f32 %v3648_v14, %v3620_v16 }
 0x540   :  { %v1929_v22 = vpop.f32.mrf.mxu0  ;;  %v2297_v30 = vadd.f32 %v2296_v53, %v2295_v24 }
 0x541   :  { %v4702_v19 = vadd.f32 %v1929_v22, %v1781_v17  ;;  %v3623_v21 = vpop.f32.mrf.mxu1  ;;  %v2300_v13 = vsel %vm2294_vm4, %v4700_v18, 0.0 }
 0x542   :  { %v3651_v12 = vpop.f32.mrf.mxu0 }
 0x543   :  { %v2298_v25 = vsel %vm2294_vm4, %v4702_v19, 0.0  ;;  %v1791_v26 = vpop.f32.mrf.mxu1  ;;  %v4708_v1 = vadd.f32 %v3651_v12, %v3623_v21 }
 0x544   :  { %v2299_v60 = vadd.f32 %v2298_v25, %v2297_v30  ;;  %v1939_v27 = vpop.f32.mrf.mxu0 }
 0x545   :  { %v4710_v2 = vadd.f32 %v1939_v27, %v1791_v26  ;;  %v3626_v8 = vpop.f32.mrf.mxu1  ;;  %v2304_v6 = vsel %vm2294_vm4, %v4708_v1, 0.0 }
 0x546   :  { %v2301_v40 = vadd.f32 %v2300_v13, %v2299_v60  ;;  %v3654_v34 = vpop.f32.mrf.mxu0 }
 0x547   :  { %v2302_v33 = vsel %vm2294_vm4, %v4710_v2, 0.0  ;;  %v1801_v39 = vpop.f32.mrf.mxu1  ;;  %v4720_v28 = vadd.f32 %v3654_v34, %v3626_v8 }
 0x548   :  { %v2303_v3 = vadd.f32 %v2302_v33, %v2301_v40  ;;  %v1949_v48 = vpop.f32.mrf.mxu0 }
 0x549   :  { %v4716_v7 = vadd.f32 %v1949_v48, %v1801_v39  ;;  %v3629_v47 = vpop.f32.mrf.mxu1  ;;  %v2308_v41 = vsel %vm2294_vm4, %v4720_v28, 0.0 }
 0x54a   :  { %v2305_v29 = vadd.f32 %v2304_v6, %v2303_v3  ;;  %v3657_v4 = vpop.f32.mrf.mxu0 }
 0x54b   :  { %v2306_v9 = vsel %vm2294_vm4, %v4716_v7, 0.0  ;;  %v1811_v36 = vpop.f32.mrf.mxu1  ;;  %v4728_v51 = vadd.f32 %v3657_v4, %v3629_v47 }
 0x54c   :  { %v1959_v59 = vpop.f32.mrf.mxu0  ;;  %v2307_v31 = vadd.f32 %v2306_v9, %v2305_v29 }
 0x54d   :  { %v3632_v10 = vpop.f32.mrf.mxu1  ;;  %v4722_v35 = vadd.f32 %v1959_v59, %v1811_v36  ;;  %v2312_v50 = vsel %vm2294_vm4, %v4728_v51, 0.0 }
 0x54e   :  { %v3660_v32 = vpop.f32.mrf.mxu0  ;;  %v2309_v43 = vadd.f32 %v2308_v41, %v2307_v31 }
 0x54f   :  { %v1821_v38 = vpop.f32.mrf.mxu1  ;;  %v2310_v46 = vsel %vm2294_vm4, %v4722_v35, 0.0  ;;  %v4736_v24 = vadd.f32 %v3660_v32, %v3632_v10 }
 0x550   :  { %v1969_v45 = vpop.f32.mrf.mxu0  ;;  %v2311_v57 = vadd.f32 %v2310_v46, %v2309_v43 }
 0x551   :  { %v3635_v42 = vpop.f32.mrf.mxu1  ;;  %v4730_v37 = vadd.f32 %v1969_v45, %v1821_v38  ;;  %v2316_v27 = vsel %vm2294_vm4, %v4736_v24, 0.0 }
 0x552   :  { %v3663_v44 = vpop.f32.mrf.mxu0  ;;  %v2313_v62 = vadd.f32 %v2312_v50, %v2311_v57 }
 0x553   :  { %v1831_v5 = vpop.f32.mrf.mxu1  ;;  %v2314_v11 = vsel %vm2294_vm4, %v4730_v37, 0.0  ;;  %v4758_v9 = vadd.f32 %v3663_v44, %v3635_v42 }
 0x554   :  { %v1979_v20 = vpop.f32.mrf.mxu0  ;;  %v2315_v21 = vadd.f32 %v2314_v11, %v2313_v62 }
 0x555   :  { %v3638_v52 = vpop.f32.mrf.mxu1  ;;  %v4742_v12 = vadd.f32 %v1979_v20, %v1831_v5  ;;  %v2320_v44 = vsel %vm2294_vm4, %v4758_v9, 0.0 }
 0x556   :  { %v3666_v56 = vpop.f32.mrf.mxu0  ;;  %v2317_v33 = vadd.f32 %v2316_v27, %v2315_v21 }
 0x557   :  { %v1841_v58 = vpop.f32.mrf.mxu1  ;;  %v2318_v48 = vsel %vm2294_vm4, %v4742_v12, 0.0  ;;  %v4782_v21 = vadd.f32 %v3666_v56, %v3638_v52 }
 0x558   :  { %v1989_v55 = vpop.f32.mrf.mxu0  ;;  %v2319_v32 = vadd.f32 %v2318_v48, %v2317_v33 }
 0x559   :  { %v3673_v61 = vpop.f32.mrf.mxu1  ;;  %v4766_v41 = vadd.f32 %v1989_v55, %v1841_v58  ;;  %v2324_v52 = vsel %vm2294_vm4, %v4782_v21, 0.0 }
 0x55a   :  { %v3701_v63 = vpop.f32.mrf.mxu0  ;;  %v2321_v62 = vadd.f32 %v2320_v44, %v2319_v32 }
 0x55b   :  { %v2070_v16 = vpop.f32.mrf.mxu1  ;;  %v4738_v17 = vadd.f32 %v3701_v63, %v3673_v61  ;;  %v2322_v63 = vsel %vm2294_vm4, %v4766_v41, 0.0 }
 0x55c   :  { %v2215_v14 = vpop.f32.mrf.mxu0  ;;  %v2323_v27 = vadd.f32 %v2322_v63, %v2321_v62 }
 0x55d   :  { %v4740_v22 = vadd.f32 %v2215_v14, %v2070_v16  ;;  %v3676_v53 = vpop.f32.mrf.mxu1  ;;  %v2333_v13 = vsel %vm2294_vm4, %v4738_v17, 0.0 }
 0x55e   :  { %v3704_v30 = vpop.f32.mrf.mxu0 }
 0x55f   :  { %v2332_v25 = vsel %vm2294_vm4, %v4740_v22, 0.0  ;;  %v2080_v26 = vpop.f32.mrf.mxu1  ;;  %v4750_v8 = vadd.f32 %v3704_v30, %v3676_v53 }
 0x560   :  { %v2225_v60 = vpop.f32.mrf.mxu0  ;;  %v2334_v39 = vadd.f32 %v2333_v13, %v2332_v25 }
 0x561   :  { %v4752_v40 = vadd.f32 %v2225_v60, %v2080_v26  ;;  %v3679_v34 = vpop.f32.mrf.mxu1  ;;  %v2337_v36 = vsel %vm2294_vm4, %v4750_v8, 0.0 }
 0x562   :  { %v3707_v3 = vpop.f32.mrf.mxu0 }
 0x563   :  { %v2335_v6 = vsel %vm2294_vm4, %v4752_v40, 0.0  ;;  %v2090_v47 = vpop.f32.mrf.mxu1  ;;  %v4762_v59 = vadd.f32 %v3707_v3, %v3679_v34 }
 0x564   :  { %v2336_v29 = vadd.f32 %v2335_v6, %v2334_v39  ;;  %v2235_v4 = vpop.f32.mrf.mxu0 }
 0x565   :  { %v4764_v10 = vadd.f32 %v2235_v4, %v2090_v47  ;;  %v3682_v31 = vpop.f32.mrf.mxu1  ;;  %v2341_v20 = vsel %vm2294_vm4, %v4762_v59, 0.0  ;;  %v2325_v4 = vadd.f32 %v2324_v52, %v2323_v27 }
 0x566   :  { %v2338_v38 = vadd.f32 %v2337_v36, %v2336_v29  ;;  %v3710_v45 = vpop.f32.mrf.mxu0 }
 0x567   :  { %v2339_v43 = vsel %vm2294_vm4, %v4764_v10, 0.0  ;;  %v2100_v46 = vpop.f32.mrf.mxu1  ;;  %v4774_v57 = vadd.f32 %v3710_v45, %v3682_v31 }
 0x568   :  { %v2340_v5 = vadd.f32 %v2339_v43, %v2338_v38  ;;  %v2245_v42 = vpop.f32.mrf.mxu0 }
 0x569   :  { %v4776_v50 = vadd.f32 %v2245_v42, %v2100_v46  ;;  %v3685_v61 = vpop.f32.mrf.mxu1  ;;  %v2345_v30 = vsel %vm2294_vm4, %v4774_v57, 0.0 }
 0x56a   :  { %v2342_v58 = vadd.f32 %v2341_v20, %v2340_v5  ;;  %v3713_v55 = vpop.f32.mrf.mxu0  ;;  %v2326_v20 = vrot.slane %v2325_v4, 4 }
 0x56b   :  { %v2343_v11 = vsel %vm2294_vm4, %v4776_v50, 0.0  ;;  %v2110_v16 = vpop.f32.mrf.mxu1  ;;  %v4786_v25 = vadd.f32 %v3713_v55, %v3685_v61 }
 0x56c   :  { %v2344_v14 = vadd.f32 %v2343_v11, %v2342_v58  ;;  %v2255_v53 = vpop.f32.mrf.mxu0 }
 0x56d   :  { %v4788_v26 = vadd.f32 %v2255_v53, %v2110_v16  ;;  %v3688_v60 = vpop.f32.mrf.mxu1  ;;  %v2349_v56 = vsel %vm2294_vm4, %v4786_v25, 0.0 }
 0x56e   :  { %v2346_v13 = vadd.f32 %v2345_v30, %v2344_v14  ;;  %v3716_v34 = vpop.f32.mrf.mxu0  ;;  %v2327_v30 = vadd.f32 %v2326_v20, %v2325_v4 }
 0x56f   :  { %v2347_v33 = vsel %vm2294_vm4, %v4788_v26, 0.0  ;;  %v2120_v39 = vpop.f32.mrf.mxu1  ;;  %v4796_v6 = vadd.f32 %v3716_v34, %v3688_v60 }
 0x570   :  { %v2348_v3 = vadd.f32 %v2347_v33, %v2346_v13  ;;  %v2265_v48 = vpop.f32.mrf.mxu0  ;;  %v2328_v33 = vrot.slane %v2327_v30, 2 }
 0x571   :  { %v4798_v47 = vadd.f32 %v2265_v48, %v2120_v39  ;;  %v3691_v29 = vpop.f32.mrf.mxu1  ;;  %v2353_v46 = vsel %vm2294_vm4, %v4796_v6, 0.0 }
 0x572   :  { %v2350_v36 = vadd.f32 %v2349_v56, %v2348_v3  ;;  %v3719_v31 = vpop.f32.mrf.mxu0  ;;  %v2329_v48 = vadd.f32 %v2328_v33, %v2327_v30 }
 0x573   :  { %v2351_v32 = vsel %vm2294_vm4, %v4798_v47, 0.0  ;;  %v2130_v38 = vpop.f32.mrf.mxu1  ;;  %v4804_v5 = vadd.f32 %v3719_v31, %v3691_v29 }
 0x574   :  { %v2352_v45 = vadd.f32 %v2351_v32, %v2350_v36  ;;  %v2275_v43 = vpop.f32.mrf.mxu0  ;;  %v2330_v29 = vrot.slane %v2329_v48, 1 }
 0x575   :  { %v4806_v42 = vadd.f32 %v2275_v43, %v2130_v38  ;;  %v3694_v44 = vpop.f32.mrf.mxu1  ;;  %v2357_v16 = vsel %vm2294_vm4, %v4804_v5, 0.0 }
 0x576   :  { %v2354_v61 = vadd.f32 %v2353_v46, %v2352_v45  ;;  %v3722_v62 = vpop.f32.mrf.mxu0  ;;  %v2331_v32 = vadd.f32 %v2330_v29, %v2329_v48 }
 0x577   :  { %v2355_v58 = vsel %vm2294_vm4, %v4806_v42, 0.0  ;;  %v2140_v55 = vpop.f32.mrf.mxu1  ;;  %v4812_v14 = vadd.f32 %v3722_v62, %v3694_v44 }
 0x578   :  { %v2356_v63 = vadd.f32 %v2355_v58, %v2354_v61  ;;  %v2285_v11 = vpop.f32.mrf.mxu0 }
 0x579   :  { %v4814_v53 = vadd.f32 %v2285_v11, %v2140_v55  ;;  %v2361_v34 = vsel %vm2294_vm4, %v4812_v14, 0.0 }
 0x57a   :  { %v2358_v60 = vadd.f32 %v2357_v16, %v2356_v63 }
 0x57b   :  { %v2359_v27 = vsel %vm2294_vm4, %v4814_v53, 0.0 }
 0x57c   :  { %v2360_v13 = vadd.f32 %v2359_v27, %v2358_v60 }
 0x57e   :  { %v2362_v39 = vadd.f32 %v2361_v34, %v2360_v13 }
 0x580   :  { %v2363_v3 = vrot.slane %v2362_v39, 4 }
 0x582   :  { %v2364_v52 = vadd.f32 %v2363_v3, %v2362_v39 }
 0x584   :  { %v2365_v56 = vrot.slane %v2364_v52, 2 }
 0x586   :  { %v2366_v36 = vadd.f32 %v2365_v56, %v2364_v52 }
 0x588   :  { %v2367_v31 = vrot.slane %v2366_v36, 1 }
 0x58a   :  { %v2368_v38 = vadd.f32 %v2367_v31, %v2366_v36 }
 0x58c   :  { %v2369_v4 = vadd.f32 %v2368_v38, %v2331_v32 }
 0x58e   :  { %v4820_v45 = vmul.f32 0.00390625, %v2369_v4 }
 0x590   :  { %v4824_v43 = vsub.f32 %v4694_v15, %v4820_v45  ;;  %v4828_v46 = vsub.f32 %v4692_v23, %v4820_v45  ;;  %v4832_v44 = vsub.f32 %v4702_v19, %v4820_v45  ;;  %v4836_v20 = vsub.f32 %v4700_v18, %v4820_v45 }
 0x591   :  { %v4844_v15 = vsub.f32 %v4710_v2, %v4820_v45  ;;  %v4850_v19 = vsub.f32 %v4708_v1, %v4820_v45  ;;  %v4858_v63 = vsub.f32 %v4740_v22, %v4820_v45  ;;  %v4862_v2 = vsub.f32 %v4738_v17, %v4820_v45 }
 0x592   :  { %v2404_v61 = vmul.f32 %v4824_v43, %v4824_v43  ;;  %v2405_v62 = vmul.f32 %v4828_v46, %v4828_v46  ;;  %v2406_v23 = vmul.f32 %v4832_v44, %v4832_v44  ;;  %v2407_v18 = vmul.f32 %v4836_v20, %v4836_v20 }
 0x593   :  { %v4866_v1 = vsub.f32 %v4716_v7, %v4820_v45  ;;  %v2408_v16 = vmul.f32 %v4844_v15, %v4844_v15  ;;  %v4873_v60 = vsub.f32 %v4752_v40, %v4820_v45  ;;  %v4877_v27 = vsub.f32 %v4720_v28, %v4820_v45 }
 0x594   :  { %v2420_v58 = vsel %vm2294_vm4, %v2404_v61, 0.0  ;;  %v2421_v55 = vsel %vm2294_vm4, %v2405_v62, 0.0  ;;  %v2423_v30 = vsel %vm2294_vm4, %v2406_v23, 0.0  ;;  %v2409_v17 = vmul.f32 %v4850_v19, %v4850_v19 }
 0x595   :  { %v2422_v11 = vadd.f32 %v2421_v55, %v2420_v58  ;;  %v2425_v7 = vsel %vm2294_vm4, %v2407_v18, 0.0  ;;  %v4884_v13 = vsub.f32 %v4750_v8, %v4820_v45  ;;  %v2457_v33 = vmul.f32 %v4858_v63, %v4858_v63 }
 0x596   :  { %v2458_v40 = vmul.f32 %v4862_v2, %v4862_v2  ;;  %v4892_v28 = vsub.f32 %v4722_v35, %v4820_v45  ;;  %v2410_v39 = vmul.f32 %v4866_v1, %v4866_v1  ;;  %v2427_v3 = vsel %vm2294_vm4, %v2408_v16, 0.0 }
 0x597   :  { %v2424_v22 = vadd.f32 %v2423_v30, %v2422_v11  ;;  %v4899_v8 = vsub.f32 %v4764_v10, %v4820_v45  ;;  %v2459_v52 = vmul.f32 %v4873_v60, %v4873_v60  ;;  %v4905_v56 = vsub.f32 %v4728_v51, %v4820_v45 }
 0x598   :  { %v4909_v35 = vsub.f32 %v4762_v59, %v4820_v45  ;;  %v2411_v29 = vmul.f32 %v4877_v27, %v4877_v27  ;;  %v2429_v36 = vsel %vm2294_vm4, %v2409_v17, 0.0  ;;  %v2460_v10 = vmul.f32 %v4884_v13, %v4884_v13 }
 0x599   :  { %v2426_v34 = vadd.f32 %v2425_v7, %v2424_v22  ;;  %v2473_v32 = vsel %vm2294_vm4, %v2457_v33, 0.0  ;;  %v2474_v38 = vsel %vm2294_vm4, %v2458_v40, 0.0  ;;  %v4920_v51 = vsub.f32 %v4730_v37, %v4820_v45 }
 0x59a   :  { %v2412_v59 = vmul.f32 %v4892_v28, %v4892_v28  ;;  %v2431_v4 = vsel %vm2294_vm4, %v2410_v39, 0.0  ;;  %v2475_v61 = vadd.f32 %v2474_v38, %v2473_v32  ;;  %v4927_v62 = vsub.f32 %v4776_v50, %v4820_v45 }
 0x59b   :  { %v2428_v48 = vadd.f32 %v2427_v3, %v2426_v34  ;;  %v2461_v18 = vmul.f32 %v4899_v8, %v4899_v8  ;;  %v2476_v58 = vsel %vm2294_vm4, %v2459_v52, 0.0  ;;  %v4934_v37 = vsub.f32 %v4736_v24, %v4820_v45 }
 0x59c   :  { %v2413_v55 = vmul.f32 %v4905_v56, %v4905_v56  ;;  %v2433_v11 = vsel %vm2294_vm4, %v2411_v29, 0.0  ;;  %v2477_v16 = vadd.f32 %v2476_v58, %v2475_v61  ;;  %v4941_v50 = vsub.f32 %v4774_v57, %v4820_v45 }
 0x59d   :  { %v2430_v31 = vadd.f32 %v2429_v36, %v2428_v48  ;;  %v2462_v22 = vmul.f32 %v4909_v35, %v4909_v35  ;;  %v2478_v17 = vsel %vm2294_vm4, %v2460_v10, 0.0  ;;  %v4948_v24 = vsub.f32 %v4742_v12, %v4820_v45 }
 0x59e   :  { %v2414_v7 = vmul.f32 %v4920_v51, %v4920_v51  ;;  %v2435_v34 = vsel %vm2294_vm4, %v2412_v59, 0.0  ;;  %v2479_v33 = vadd.f32 %v2478_v17, %v2477_v16  ;;  %v4955_v57 = vsub.f32 %v4788_v26, %v4820_v45 }
 0x59f   :  { %v2432_v23 = vadd.f32 %v2431_v4, %v2430_v31  ;;  %v2463_v39 = vmul.f32 %v4927_v62, %v4927_v62  ;;  %v2480_v3 = vsel %vm2294_vm4, %v2461_v18, 0.0  ;;  %v4962_v12 = vsub.f32 %v4758_v9, %v4820_v45 }
 0x5a0   :  { %v2415_v48 = vmul.f32 %v4934_v37, %v4934_v37  ;;  %v2437_v52 = vsel %vm2294_vm4, %v2413_v55, 0.0  ;;  %v2481_v29 = vadd.f32 %v2480_v3, %v2479_v33  ;;  %v4969_v26 = vsub.f32 %v4786_v25, %v4820_v45 }
 0x5a1   :  { %v2434_v30 = vadd.f32 %v2433_v11, %v2432_v23  ;;  %v2464_v31 = vmul.f32 %v4941_v50, %v4941_v50  ;;  %v2482_v10 = vsel %vm2294_vm4, %v2462_v22, 0.0  ;;  %v4976_v9 = vsub.f32 %v4766_v41, %v4820_v45 }
 0x5a2   :  { %v2416_v32 = vmul.f32 %v4948_v24, %v4948_v24  ;;  %v2439_v38 = vsel %vm2294_vm4, %v2414_v7, 0.0  ;;  %v2483_v59 = vadd.f32 %v2482_v10, %v2481_v29  ;;  %v4983_v25 = vsub.f32 %v4798_v47, %v4820_v45 }
 0x5a3   :  { %v2436_v40 = vadd.f32 %v2435_v34, %v2434_v30  ;;  %v2465_v61 = vmul.f32 %v4955_v57, %v4955_v57  ;;  %v2484_v23 = vsel %vm2294_vm4, %v2463_v39, 0.0  ;;  %v4990_v41 = vsub.f32 %v4782_v21, %v4820_v45 }
 0x5a4   :  { %v2417_v18 = vmul.f32 %v4962_v12, %v4962_v12  ;;  %v2441_v58 = vsel %vm2294_vm4, %v2415_v48, 0.0  ;;  %v2485_v55 = vadd.f32 %v2484_v23, %v2483_v59  ;;  %v4997_v47 = vsub.f32 %v4796_v6, %v4820_v45 }
 0x5a5   :  { %v2438_v36 = vadd.f32 %v2437_v52, %v2436_v40  ;;  %v2466_v16 = vmul.f32 %v4969_v26, %v4969_v26  ;;  %v2486_v30 = vsel %vm2294_vm4, %v2464_v31, 0.0  ;;  %v2418_v21 = vmul.f32 %v4976_v9, %v4976_v9 }
 0x5a6   :  { %v2443_v22 = vsel %vm2294_vm4, %v2416_v32, 0.0  ;;  %v2487_v17 = vadd.f32 %v2486_v30, %v2485_v55  ;;  %v5007_v7 = vsub.f32 %v4806_v42, %v4820_v45  ;;  %v2467_v6 = vmul.f32 %v4983_v25, %v4983_v25 }
 0x5a7   :  { %v2440_v4 = vadd.f32 %v2439_v38, %v2438_v36  ;;  %v2488_v33 = vsel %vm2294_vm4, %v2465_v61, 0.0  ;;  %v2419_v40 = vmul.f32 %v4990_v41, %v4990_v41  ;;  %v2445_v39 = vsel %vm2294_vm4, %v2417_v18, 0.0 }
 0x5a8   :  { %v2489_v3 = vadd.f32 %v2488_v33, %v2487_v17  ;;  %v5017_v48 = vsub.f32 %v4804_v5, %v4820_v45  ;;  %v2468_v42 = vmul.f32 %v4997_v47, %v4997_v47  ;;  %v2490_v29 = vsel %vm2294_vm4, %v2466_v16, 0.0 }
 0x5a9   :  { %v2442_v11 = vadd.f32 %v2441_v58, %v2440_v4  ;;  %v2447_v36 = vsel %vm2294_vm4, %v2418_v21, 0.0  ;;  %v2402_v10 = vsub.f32 %v4814_v53, %v4820_v45  ;;  %v2469_v38 = vmul.f32 %v5007_v7, %v5007_v7 }
 0x5aa   :  { %v2491_v31 = vadd.f32 %v2490_v29, %v2489_v3  ;;  %v2492_v59 = vsel %vm2294_vm4, %v2467_v6, 0.0  ;;  %v2449_v5 = vsel %vm2294_vm4, %v2419_v40, 0.0  ;;  %v2403_v61 = vsub.f32 %v4812_v14, %v4820_v45 }
 0x5ab   :  { %v2444_v34 = vadd.f32 %v2443_v22, %v2442_v11  ;;  %v2470_v18 = vmul.f32 %v5017_v48, %v5017_v48  ;;  %v2494_v58 = vsel %vm2294_vm4, %v2468_v42, 0.0  ;;  %v2471_v11 = vmul.f32 %v2402_v10, %v2402_v10 }
 0x5ac   :  { %v2493_v4 = vadd.f32 %v2492_v59, %v2491_v31  ;;  %v2496_v16 = vsel %vm2294_vm4, %v2469_v38, 0.0  ;;  %v2472_v22 = vmul.f32 %v2403_v61, %v2403_v61  ;;  %v2646_v31 = vld [vmem:[%s5236_s8] sm:$0x7] }
 0x5ad   :  { %v2446_v52 = vadd.f32 %v2445_v39, %v2444_v34  ;;  %v2498_v17 = vsel %vm2294_vm4, %v2470_v18, 0.0  ;;  %v2500_v6 = vsel %vm2294_vm4, %v2471_v11, 0.0 }
 0x5ae   :  { %v2495_v55 = vadd.f32 %v2494_v58, %v2493_v4  ;;  %v2502_v33 = vsel %vm2294_vm4, %v2472_v22, 0.0 }
 0x5af   :  { %v2448_v32 = vadd.f32 %v2447_v36, %v2446_v52  ;;  %v3829_v36 = vmov 0  }
 0x5b0   :  { %v2497_v30 = vadd.f32 %v2496_v16, %v2495_v55  ;;  %3797 = vset.pattern.permute.xlu0 %v3829_v36  ;;  %v2512_v55 = vld [vmem:[%s5232_s6 + $0x20] ss:$0 sm:$0xff]  ;;  %v5051_v16 = vld [vmem:[%s5232_s6 + $0x21] ss:$0 sm:$0xff] }
 0x5b1   :  { %v2450_v23 = vadd.f32 %v2449_v5, %v2448_v32  ;;  %2649 = vperm.xlu0 %3797, %v2646_v31  }
 0x5b2   :  { %v2499_v34 = vadd.f32 %v2498_v17, %v2497_v30 }
 0x5b3   :  { %v2451_v53 = vrot.slane %v2450_v23, 4 }
 0x5b4   :  { %v2501_v45 = vadd.f32 %v2500_v6, %v2499_v34 }
 0x5b5   :  { %v2452_v21 = vadd.f32 %v2451_v53, %v2450_v23 }
 0x5b6   :  { %v2503_v40 = vadd.f32 %v2502_v33, %v2501_v45 }
 0x5b7   :  { %v2453_v14 = vrot.slane %v2452_v21, 2 }
 0x5b8   :  { %v2504_v3 = vrot.slane %v2503_v40, 4 }
 0x5b9   :  { %v2454_v39 = vadd.f32 %v2453_v14, %v2452_v21 }
 0x5ba   :  { %v2505_v52 = vadd.f32 %v2504_v3, %v2503_v40 }
 0x5bb   :  { %v2455_v42 = vrot.slane %v2454_v39, 1 }
 0x5bc   :  { %v2506_v29 = vrot.slane %v2505_v52, 2 }
 0x5bd   :  { %v2456_v38 = vadd.f32 %v2455_v42, %v2454_v39 }
 0x5be   :  { %v2507_v32 = vadd.f32 %v2506_v29, %v2505_v52 }
 0x5c0   :  { %v2508_v59 = vrot.slane %v2507_v32, 1 }
 0x5c2   :  { %v2509_v5 = vadd.f32 %v2508_v59, %v2507_v32 }
 0x5c4   :  { %v2510_v4 = vadd.f32 %v2509_v5, %v2456_v38 }
 0x5c6   :  { %v2511_v23 = vmul.f32 0.00390625, %v2510_v4 }
 0x5c8   :  { %v2514_v18 = vadd.f32 1e-05, %v2511_v23 }
 0x5ca   :  { %3812 = vrsqrt.f32 %v2514_v18 }
 0x5d7   :  { %v3813_v58 = vpop.eup %3812 }
 0x5d8   :  { %v5044_v53 = vmul.f32 %v3813_v58, %v2512_v55 }
 0x5da   :  { %v2549_v11 = vmul.f32 %v5044_v53, %v4858_v63  ;;  %v2550_v30 = vmul.f32 %v5044_v53, %v4862_v2  ;;  %v2532_v22 = vmul.f32 %v5044_v53, %v4990_v41  ;;  %v2531_v63 = vmul.f32 %v5044_v53, %v4976_v9 }
 0x5db   :  { %v2530_v6 = vmul.f32 %v5044_v53, %v4962_v12  ;;  %v2564_v2 = vmul.f32 %v5044_v53, %v2403_v61  ;;  %v2563_v33 = vmul.f32 %v5044_v53, %v2402_v10  ;;  %v2529_v41 = vmul.f32 %v5044_v53, %v4948_v24 }
 0x5dc   :  { %v5056_v21 = vadd.f32 %v2549_v11, %v5051_v16  ;;  %v5061_v17 = vadd.f32 %v2550_v30, %v5051_v16  ;;  %v2548_v34 = vadd.f32 %v2532_v22, %v5051_v16  ;;  %v2547_v14 = vadd.f32 %v2531_v63, %v5051_v16 }
 0x5dd   :  { %v2546_v40 = vadd.f32 %v2530_v6, %v5051_v16  ;;  %v2580_v9 = vadd.f32 %v2564_v2, %v5051_v16  ;;  %v2579_v12 = vadd.f32 %v2563_v33, %v5051_v16  ;;  %v2528_v52 = vmul.f32 %v5044_v53, %v4934_v37 }
 0x5de   :  { %v2596_v45 = vmul.f32 0.2, %v2548_v34  ;;  %v2595_v39 = vmul.f32 0.2, %v2547_v14  ;;  %v2562_v10 = vmul.f32 %v5044_v53, %v5017_v48  ;;  %v2545_v24 = vadd.f32 %v2529_v41, %v5051_v16 }
 0x5df   :  { %v2594_v61 = vmul.f32 0.2, %v2546_v40  ;;  %v2628_v29 = vmul.f32 0.2, %v2580_v9  ;;  %v2627_v36 = vmul.f32 0.2, %v2579_v12  ;;  %v2527_v31 = vmul.f32 %v5044_v53, %v4920_v51 }
 0x5e0   :  { %v2612_v3 = vmax.f32 %v2548_v34, %v2596_v45  ;;  %v2611_v42 = vmax.f32 %v2547_v14, %v2595_v39  ;;  %v2561_v32 = vmul.f32 %v5044_v53, %v5007_v7  ;;  %v2544_v37 = vadd.f32 %v2528_v52, %v5051_v16 }
 0x5e1   :  { %v2578_v48 = vadd.f32 %v2562_v10, %v5051_v16  ;;  %v2593_v38 = vmul.f32 0.2, %v2545_v24  ;;  %v2610_v59 = vmax.f32 %v2546_v40, %v2594_v61  ;;  %v2644_v5 = vmax.f32 %v2580_v9, %v2628_v29 }
 0x5e2   :  { %3724 = vmatpush3.xpose.msk.msra.mxu1 %vm2294_vm4, %v2612_v3  ;;  %v2526_v4 = vmul.f32 %v5044_v53, %v4905_v56  ;;  %v2643_v51 = vmax.f32 %v2579_v12, %v2627_v36  ;;  %v2560_v7 = vmul.f32 %v5044_v53, %v4997_v47  ;;  %v2543_v23 = vadd.f32 %v2527_v31, %v5051_v16 }
 0x5e3   :  { %3725 = vmatprep.subr.mxu1 %v3826_v0  ;;  %3759 = vmatpush3.xpose.msk.msra.mxu0 %vm2294_vm4, %v2644_v5  ;;  %v2577_v18 = vadd.f32 %v2561_v32, %v5051_v16  ;;  %v2592_v58 = vmul.f32 0.2, %v2544_v37  ;;  %v2609_v55 = vmax.f32 %v2545_v24, %v2593_v38  ;;  %v2626_v11 = vmul.f32 0.2, %v2578_v48 }
 0x5e4   :  { %3760 = vmatprep.subr.mxu0 %v3826_v0  ;;  %v2525_v56 = vmul.f32 %v5044_v53, %v4892_v28  ;;  %v2559_v47 = vmul.f32 %v5044_v53, %v4983_v25  ;;  %v2542_v30 = vadd.f32 %v2526_v4, %v5051_v16  ;;  %v2576_v22 = vadd.f32 %v2560_v7, %v5051_v16 }
 0x5e5   :  { %v2591_v63 = vmul.f32 0.2, %v2543_v23  ;;  %v2608_v34 = vmax.f32 %v2544_v37, %v2592_v58  ;;  %v2625_v6 = vmul.f32 0.2, %v2577_v18  ;;  %v2642_v14 = vmax.f32 %v2578_v48, %v2626_v11 }
 0x5e6   :  { %3726 = vmatpush3.xpose.msk.msra.mxu1 %vm2294_vm4, %v2611_v42  ;;  %v2524_v28 = vmul.f32 %v5044_v53, %v4877_v27  ;;  %v2558_v25 = vmul.f32 %v5044_v53, %v4969_v26  ;;  %v2541_v2 = vadd.f32 %v2525_v56, %v5051_v16  ;;  %v2575_v45 = vadd.f32 %v2559_v47, %v5051_v16 }
 0x5e7   :  { %3727 = vmatprep.subr.mxu1 %v3826_v0  ;;  %3761 = vmatpush3.xpose.msk.msra.mxu0 %vm2294_vm4, %v2643_v51  ;;  %v2590_v33 = vmul.f32 0.2, %v2542_v30  ;;  %v2607_v41 = vmax.f32 %v2543_v23, %v2591_v63  ;;  %v2624_v40 = vmul.f32 0.2, %v2576_v22  ;;  %v2641_v39 = vmax.f32 %v2577_v18, %v2625_v6 }
 0x5e8   :  { %3762 = vmatprep.subr.mxu0 %v3826_v0  ;;  %v2523_v27 = vmul.f32 %v5044_v53, %v4866_v1  ;;  %v2557_v26 = vmul.f32 %v5044_v53, %v4955_v57  ;;  %v2540_v3 = vadd.f32 %v2524_v28, %v5051_v16  ;;  %v2574_v9 = vadd.f32 %v2558_v25, %v5051_v16 }
 0x5e9   :  { %v2589_v12 = vmul.f32 0.2, %v2541_v2  ;;  %v2606_v52 = vmax.f32 %v2542_v30, %v2590_v33  ;;  %v2623_v10 = vmul.f32 0.2, %v2575_v45  ;;  %v2640_v24 = vmax.f32 %v2576_v22, %v2624_v40 }
 0x5ea   :  { %3728 = vmatpush3.xpose.msk.msra.mxu1 %vm2294_vm4, %v2610_v59  ;;  %v2522_v1 = vmul.f32 %v5044_v53, %v4850_v19  ;;  %v2556_v57 = vmul.f32 %v5044_v53, %v4941_v50  ;;  %v2539_v61 = vadd.f32 %v2523_v27, %v5051_v16  ;;  %v2573_v42 = vadd.f32 %v2557_v26, %v5051_v16 }
 0x5eb   :  { %3729 = vmatprep.subr.mxu1 %v3826_v0  ;;  %3763 = vmatpush3.xpose.msk.msra.mxu0 %vm2294_vm4, %v2642_v14  ;;  %v2588_v29 = vmul.f32 0.2, %v2540_v3  ;;  %v2605_v36 = vmax.f32 %v2541_v2, %v2589_v12  ;;  %v2622_v31 = vmul.f32 0.2, %v2574_v9  ;;  %v2639_v32 = vmax.f32 %v2575_v45, %v2623_v10 }
 0x5ec   :  { %3764 = vmatprep.subr.mxu0 %v3826_v0  ;;  %v2521_v19 = vmul.f32 %v5044_v53, %v4844_v15  ;;  %v2555_v50 = vmul.f32 %v5044_v53, %v4927_v62  ;;  %v2538_v37 = vadd.f32 %v2522_v1, %v5051_v16  ;;  %v2572_v48 = vadd.f32 %v2556_v57, %v5051_v16 }
 0x5ed   :  { %v2587_v38 = vmul.f32 0.2, %v2539_v61  ;;  %v2604_v59 = vmax.f32 %v2540_v3, %v2588_v29  ;;  %v2621_v5 = vmul.f32 0.2, %v2573_v42  ;;  %v2638_v4 = vmax.f32 %v2574_v9, %v2622_v31 }
 0x5ee   :  { %3730 = vmatpush3.xpose.msk.msra.mxu1 %vm2294_vm4, %v2609_v55  ;;  %v2520_v15 = vmul.f32 %v5044_v53, %v4836_v20  ;;  %v2554_v62 = vmul.f32 %v5044_v53, %v4909_v35  ;;  %v2537_v51 = vadd.f32 %v2521_v19, %v5051_v16  ;;  %v2571_v7 = vadd.f32 %v2555_v50, %v5051_v16 }
 0x5ef   :  { %3731 = vmatprep.subr.mxu1 %v3826_v0  ;;  %3765 = vmatpush3.xpose.msk.msra.mxu0 %vm2294_vm4, %v2641_v39  ;;  %v2586_v23 = vmul.f32 0.2, %v2538_v37  ;;  %v2603_v18 = vmax.f32 %v2539_v61, %v2587_v38  ;;  %v2620_v58 = vmul.f32 0.2, %v2572_v48  ;;  %v2637_v55 = vmax.f32 %v2573_v42, %v2621_v5  ;;  %v2645_v61 = vld [vmem:[%s5237_s7] sm:$0x7] }
 0x5f0   :  { %3766 = vmatprep.subr.mxu0 %v3826_v0  ;;  %v2519_v20 = vmul.f32 %v5044_v53, %v4832_v44  ;;  %v2553_v35 = vmul.f32 %v5044_v53, %v4899_v8  ;;  %v2536_v11 = vadd.f32 %v2520_v15, %v5051_v16  ;;  %v2570_v56 = vadd.f32 %v2554_v62, %v5051_v16 }
 0x5f1   :  { %v2585_v47 = vmul.f32 0.2, %v2537_v51  ;;  %v2602_v30 = vmax.f32 %v2538_v37, %v2586_v23  ;;  %v2619_v22 = vmul.f32 0.2, %v2571_v7  ;;  %v2636_v63 = vmax.f32 %v2572_v48, %v2620_v58 }
 0x5f2   :  { %3732 = vmatpush3.xpose.msk.msra.mxu1 %vm2294_vm4, %v2608_v34  ;;  %v2518_v44 = vmul.f32 %v5044_v53, %v4828_v46  ;;  %v2552_v8 = vmul.f32 %v5044_v53, %v4884_v13  ;;  %v2535_v34 = vadd.f32 %v2519_v20, %v5051_v16  ;;  %v2569_v6 = vadd.f32 %v2553_v35, %v5051_v16 }
 0x5f3   :  { %3733 = vmatprep.subr.mxu1 %v3826_v0  ;;  %3767 = vmatpush3.xpose.msk.msra.mxu0 %vm2294_vm4, %v2640_v24  ;;  %v2584_v14 = vmul.f32 0.2, %v2536_v11  ;;  %v2601_v28 = vmax.f32 %v2537_v51, %v2585_v47  ;;  %v2618_v25 = vmul.f32 0.2, %v2570_v56  ;;  %v2635_v2 = vmax.f32 %v2571_v7, %v2619_v22 }
 0x5f4   :  { %3768 = vmatprep.subr.mxu0 %v3826_v0  ;;  %v2517_v46 = vmul.f32 %v5044_v53, %v4824_v43  ;;  %v2551_v13 = vmul.f32 %v5044_v53, %v4873_v60  ;;  %v2534_v45 = vadd.f32 %v2518_v44, %v5051_v16  ;;  %v2568_v33 = vadd.f32 %v2552_v8, %v5051_v16 }
 0x5f5   :  { %v2600_v40 = vmax.f32 %v2536_v11, %v2584_v14  ;;  %v2617_v39 = vmul.f32 0.2, %v2569_v6  ;;  %v2634_v27 = vmax.f32 %v2570_v56, %v2618_v25  ;;  %v2614_v1 = vmul.f32 0.2, %v5061_v17 }
 0x5f6   :  { %3734 = vmatpush3.xpose.msk.msra.mxu1 %vm2294_vm4, %v2607_v41  ;;  %v2583_v41 = vmul.f32 0.2, %v2535_v34  ;;  %v2533_v43 = vadd.f32 %v2517_v46, %v5051_v16  ;;  %v2567_v60 = vadd.f32 %v2551_v13, %v5051_v16  ;;  %v2582_v53 = vmul.f32 0.2, %v2534_v45 }
 0x5f7   :  { %3735 = vmatprep.subr.mxu1 %v3826_v0  ;;  %3769 = vmatpush3.xpose.msk.msra.mxu0 %vm2294_vm4, %v2639_v32  ;;  %v2616_v3 = vmul.f32 0.2, %v2568_v33  ;;  %v2633_v9 = vmax.f32 %v2569_v6, %v2617_v39  ;;  %v2613_v42 = vmul.f32 0.2, %v5056_v21  ;;  %v2630_v29 = vmax.f32 %v5061_v17, %v2614_v1 }
 0x5f8   :  { %3770 = vmatprep.subr.mxu0 %v3826_v0  ;;  %v2599_v26 = vmax.f32 %v2535_v34, %v2583_v41  ;;  %v2581_v12 = vmul.f32 0.2, %v2533_v43  ;;  %v2615_v10 = vmul.f32 0.2, %v2567_v60 }
 0x5f9   :  { %v2632_v16 = vmax.f32 %v2568_v33, %v2616_v3 }
 0x5fa   :  { %3736 = vmatpush3.xpose.msk.msra.mxu1 %vm2294_vm4, %v2606_v52  ;;  %v2598_v52 = vmax.f32 %v2534_v45, %v2582_v53  ;;  %v2597_v24 = vmax.f32 %v2533_v43, %v2581_v12  ;;  %v2631_v57 = vmax.f32 %v2567_v60, %v2615_v10 }
 0x5fb   :  { %3737 = vmatprep.subr.mxu1 %v3826_v0  ;;  %3771 = vmatpush3.xpose.msk.msra.mxu0 %vm2294_vm4, %v2638_v4 }
 0x5fc   :  { %3772 = vmatprep.subr.mxu0 %v3826_v0 }
 0x5fe   :  { %3738 = vmatpush3.xpose.msk.msra.mxu1 %vm2294_vm4, %v2605_v36  ;;  %v2629_v36 = vmax.f32 %v5056_v21, %v2613_v42 }
 0x5ff   :  { %3739 = vmatprep.subr.mxu1 %v3826_v0  ;;  %3773 = vmatpush3.xpose.msk.msra.mxu0 %vm2294_vm4, %v2637_v55 }
 0x600   :  { %3774 = vmatprep.subr.mxu0 %v3826_v0 }
 0x602   :  { %3740 = vmatpush3.xpose.msk.msra.mxu1 %vm2294_vm4, %v2604_v59 }
 0x603   :  { %3741 = vmatprep.subr.mxu1 %v3826_v0  ;;  %3775 = vmatpush3.xpose.msk.msra.mxu0 %vm2294_vm4, %v2636_v63 }
 0x604   :  { %3776 = vmatprep.subr.mxu0 %v3826_v0 }
 0x606   :  { %3742 = vmatpush3.xpose.msk.msra.mxu1 %vm2294_vm4, %v2603_v18 }
 0x607   :  { %3743 = vmatprep.subr.mxu1 %v3826_v0  ;;  %3777 = vmatpush3.xpose.msk.msra.mxu0 %vm2294_vm4, %v2635_v2 }
 0x608   :  { %3778 = vmatprep.subr.mxu0 %v3826_v0 }
 0x60a   :  { %3744 = vmatpush3.xpose.msk.msra.mxu1 %vm2294_vm4, %v2602_v30 }
 0x60b   :  { %3745 = vmatprep.subr.mxu1 %v3826_v0  ;;  %3779 = vmatpush3.xpose.msk.msra.mxu0 %vm2294_vm4, %v2634_v27 }
 0x60c   :  { %3780 = vmatprep.subr.mxu0 %v3826_v0 }
 0x60e   :  { %3746 = vmatpush3.xpose.msk.msra.mxu1 %vm2294_vm4, %v2601_v28 }
 0x60f   :  { %3747 = vmatprep.subr.mxu1 %v3826_v0  ;;  %3781 = vmatpush3.xpose.msk.msra.mxu0 %vm2294_vm4, %v2633_v9 }
 0x610   :  { %3782 = vmatprep.subr.mxu0 %v3826_v0 }
 0x612   :  { %3748 = vmatpush3.xpose.msk.msra.mxu1 %vm2294_vm4, %v2600_v40 }
 0x613   :  { %3749 = vmatprep.subr.mxu1 %v3826_v0  ;;  %3783 = vmatpush3.xpose.msk.msra.mxu0 %vm2294_vm4, %v2632_v16 }
 0x614   :  { %3784 = vmatprep.subr.mxu0 %v3826_v0 }
 0x616   :  { %3750 = vmatpush3.xpose.msk.msra.mxu1 %vm2294_vm4, %v2599_v26 }
 0x617   :  { %3751 = vmatprep.subr.mxu1 %v3826_v0  ;;  %3785 = vmatpush3.xpose.msk.msra.mxu0 %vm2294_vm4, %v2631_v57 }
 0x618   :  { %3786 = vmatprep.subr.mxu0 %v3826_v0 }
 0x61a   :  { %3752 = vmatpush3.xpose.msk.msra.mxu1 %vm2294_vm4, %v2598_v52 }
 0x61b   :  { %3753 = vmatprep.subr.mxu1 %v3826_v0  ;;  %3787 = vmatpush3.xpose.msk.msra.mxu0 %vm2294_vm4, %v2630_v29 }
 0x61c   :  { %3788 = vmatprep.subr.mxu0 %v3826_v0 }
 0x61e   :  { %3754 = vmatpush3.xpose.msk.msra.mxu1 %vm2294_vm4, %v2597_v24 }
 0x61f   :  { %3789 = vmatpush3.xpose.msk.msra.mxu0 %vm2294_vm4, %v2629_v36 }
 0x621   :  { %3756 = vmatmul.mubr.msk.f32.vlgmr.msra.gmra.mxu1 %vm2294_vm4, %v2645_v61 }
 0x622   :  { %3791 = vmatmul.mubr.msk.f32.vlgmr.msra.gmra.mxu0 %vm2294_vm4, %v2645_v61 }
 0x62c   :  { %v2650_v31 = vpop.permute.xlu0 %2649 }
 0x6e1   :  { %v2769_v32 = vpop.f32.mrf.mxu1 }
 0x6e2   :  { %v2770_v19 = vadd.f32 %v2769_v32, %v2650_v31  ;;  %v2887_v17 = vpop.f32.mrf.mxu0 }
 0x6e3   :  { %v3757_v50 = vpop.f32.mrf.mxu1  ;;  %v2888_v38 = vadd.f32 %v2887_v17, %v2650_v31 }
 0x6e4   :  { %v2898_v37 = vsub.f32 0.0, %v2770_v19  ;;  %3814 = vtanh.f32 %v2770_v19  ;;  %v3792_v59 = vpop.f32.mrf.mxu0 }
 0x6e5   :  { %v2899_v5 = vsub.f32 0.0, %v2888_v38 }
 0x6e6   :  { %v2900_v48 = vmul.f32 1.442695, %v2898_v37 }
 0x6e7   :  { %v2902_v0 = vmul.f32 1.442695, %v2899_v5 }
 0x6e8   :  { %3816 = vpow2.f32 %v2900_v48 }
 0x6e9   :  { %3818 = vtanh.f32 %v2888_v38 }
 0x6ea   :  { %3820 = vpow2.f32 %v2902_v0 }
 0x6f1   :  { %v3815_v21 = vpop.eup %3814 }
 0x6f5   :  { %v3817_v4 = vpop.eup %3816 }
 0x6f6   :  { %v3819_v15 = vpop.eup %3818  ;;  %v2904_v62 = vadd.f32 1.0, %v3817_v4 }
 0x6f7   :  { %v2895_v51 = vcombine.low %v3815_v21, %v3819_v15  ;;  %v3821_v7 = vpop.eup %3820 }
 0x6f8   :  { %3822 = vrcp.f32 %v2904_v62  ;;  %v2905_v23 = vadd.f32 1.0, %v3821_v7 }
 0x6f9   :  { %2897 = vst [vmem:[%s5238_s9] sm:$0x33] %v2895_v51 }
 0x6fa   :  { %3824 = vrcp.f32 %v2905_v23 }
 0x705   :  { %v3823_v18 = vpop.eup %3822 }
 0x707   :  { %v3825_v58 = vpop.eup %3824 }
 0x708   :  { %v2910_v55 = vcombine.low %v3823_v18, %v3825_v58 }
 0x70a   :  { %v2917_v20 = vrot.slane %v2910_v55, %v4128_v54 }
 0x70c   :  { %v2924_v35 = vrot.slane %v2917_v20, %v4128_v54 }
 0x70e   :  { %v2925_v11 = vcombine.high %v2924_v35, %v2924_v35 }
 0x710   :  { %3134 = vst.msk [vmem:[%s5238_s9 + $0x2] ss:$4 sm:$0x3] %vm2929_vm5, %v2925_v11 }

</bundles_post_ra>
